<compile_context>
chip_gen: v6e
topology: v6e:2x2x1
jax: 0.10.0
libtpu: 0.0.40
codegen_flags: <defaults>
</compile_context>

<pallas_src>
import functools

import jax
import jax.numpy as jnp
from jax import lax
from jax.experimental import pallas as pl
from jax.experimental.pallas import tpu as pltpu

F32 = jnp.float32
EPS_LN = 1e-5
EPS_BN = 1e-5

# MXU operand dtype.  bf16 engages the wide bf16 MXU on v6e/v7x (and is also the fast
# path on v5e) while keeping f32 accumulation via preferred_element_type.  Set to
# jnp.float32 only if bit-parity with the f32 PyTorch module is required.
MATMUL_DTYPE = jnp.bfloat16

# Selective-scan time-chunk size (rows per fori_loop iteration); reduced automatically
# if it does not divide L.
SCAN_CHUNK = 8


# ----------------------------- in-kernel math helpers -----------------------------
def _mm(a, b):
    return jnp.dot(a.astype(MATMUL_DTYPE), b.astype(MATMUL_DTYPE),
                   preferred_element_type=F32)


def _sigmoid(x):
    return 1.0 / (1.0 + jnp.exp(-x))


def _silu(x):
    return x * _sigmoid(x)


def _softplus(x):
    return jnp.maximum(x, 0.0) + jnp.log(1.0 + jnp.exp(-jnp.abs(x)))


def _layernorm(x, g, b):
    mu = jnp.mean(x, axis=-1, keepdims=True)
    var = jnp.mean((x - mu) ** 2, axis=-1, keepdims=True)
    return (x - mu) * lax.rsqrt(var + EPS_LN) * g + b


# ----------------------------- kernel parameter ordering -----------------------------
_PARAM_ORDER = (
    # FFN1
    "ff1_ln_g", "ff1_ln_b", "ff1_w1", "ff1_b1", "ff1_w2", "ff1_b2",
    # BiMamba shared pre-norm + wide in-projection (both directions)
    "mm_ln_g", "mm_ln_b", "mm_in_w",
    # Mamba forward direction
    "mf_conv_w", "mf_conv_b", "mf_x_w", "mf_dt_w", "mf_dt_b", "mf_A", "mf_D",
    # Mamba backward direction
    "mb_conv_w", "mb_conv_b", "mb_x_w", "mb_dt_w", "mb_dt_b", "mb_A", "mb_D",
    # stacked output projection [out_w_f ; out_w_b]
    "mm_out_w",
    # Convolution module
    "cv_ln_g", "cv_ln_b", "cv_pw1_w", "cv_pw1_b",
    "cv_dw_w", "cv_dw_b", "cv_bn_scale", "cv_bn_shift", "cv_pw2_w", "cv_pw2_b",
    # FFN2
    "ff2_ln_g", "ff2_ln_b", "ff2_w1", "ff2_b1", "ff2_w2", "ff2_b2",
    # final LayerNorm
    "ln_g", "ln_b",
)


# ----------------------------- fused Encoder_Block kernel -----------------------------
def _encoder_block_kernel(x_ref, *refs, L, CH, d_inner, d_state, dt_rank,
                          d_conv, cdim, depth_ks):
    n_p = len(_PARAM_ORDER)
    prm = dict(zip(_PARAM_ORDER, refs[:n_p]))
    o_ref = refs[n_p]
    (mconv_sc, cconv_sc,
     uf_sc, dtf_sc, bf_sc, cf_sc, yf_sc,
     ub_sc, dtb_sc, bb_sc, cb_sc, yb_sc) = refs[n_p + 1:]

    mpad = d_conv - 1
    cpad = (depth_ks - 1) // 2

    # Zero the 8-row halo regions once (aligned (8, *) stores); only the interiors
    # (rows 8 .. 8+L-1) are overwritten below, so the halo stays zero for both uses.
    mconv_sc[0:8, :] = jnp.zeros((8, d_inner), F32)
    mconv_sc[8 + L:16 + L, :] = jnp.zeros((8, d_inner), F32)
    cconv_sc[0:8, :] = jnp.zeros((8, cdim), F32)
    cconv_sc[8 + L:16 + L, :] = jnp.zeros((8, cdim), F32)

    x = x_ref[0].astype(F32)                                    # (L, D)

    # ---------------- FFN1: x + 0.5 * FFN(x)  (dropout = identity, eval) ----------------
    h = _layernorm(x, prm["ff1_ln_g"][...], prm["ff1_ln_b"][...])
    h = _silu(_mm(h, prm["ff1_w1"][...]) + prm["ff1_b1"][...])
    h = _mm(h, prm["ff1_w2"][...]) + prm["ff1_b2"][...]
    x = x + 0.5 * h

    # ---------------- BiMamba: x + fwd(x) + bwd(x) ----------------
    xn = _layernorm(x, prm["mm_ln_g"][...], prm["mm_ln_b"][...])

    # one wide in-projection for both directions: [xi_f | z_f | xi_b | z_b]
    proj = _mm(xn, prm["mm_in_w"][...])                         # (L, 4*d_inner)
    xi_f = proj[:, 0 * d_inner:1 * d_inner]
    z_f = proj[:, 1 * d_inner:2 * d_inner]
    xi_b = proj[:, 2 * d_inner:3 * d_inner]
    z_b = proj[:, 3 * d_inner:4 * d_inner]

    def ssm_inputs(xi, pre, reverse, u_sc, dt_sc, b_sc, c_sc):
        """Depthwise (anti-)causal conv + SiLU + fused x_proj; stash u/dt/B/C rows."""
        mconv_sc[8:8 + L, :] = xi                               # aligned interior write
        cw = prm[pre + "conv_w"][...]                           # (d_conv, d_inner)
        acc = jnp.zeros((L, d_inner), F32)
        for k in range(d_conv):
            # reverse=True reproduces fwd_mamba(reverse_time(x)) reversed back:
            # anti-causal taps read rows t + pad - k instead of t - pad + k.
            start = (8 + mpad - k) if reverse else (8 - mpad + k)
            acc = acc + cw[k:k + 1, :] * mconv_sc[start:start + L, :]
        u = _silu(acc + prm[pre + "conv_b"][...])               # (L, d_inner)
        dtBC = _mm(u, prm[pre + "x_w"][...])                    # (L, dt_rank + 2*S)
        dt = _softplus(_mm(dtBC[:, 0:dt_rank], prm[pre + "dt_w"][...])
                       + prm[pre + "dt_b"][...])                # (L, d_inner)
        u_sc[...] = u
        dt_sc[...] = dt
        b_sc[...] = dtBC[:, dt_rank:dt_rank + d_state]
        c_sc[...] = dtBC[:, dt_rank + d_state:dt_rank + 2 * d_state]

    ssm_inputs(xi_f, "mf_", False, uf_sc, dtf_sc, bf_sc, cf_sc)
    ssm_inputs(xi_b, "mb_", True, ub_sc, dtb_sc, bb_sc, cb_sc)

    # Fused bidirectional selective scan, chunked over time: one fori_loop carries both
    # direction states; per chunk dA/dBu are precomputed as (CH, S, I) blocks (batched
    # EUP exp) and the short serial recurrence is a static unroll; y rows are written
    # back as aligned chunks.
    # NOTE: keep CH*d_state*d_inner well under the vreg budget at production dims,
    # otherwise lower CH (or spill h to VMEM).
    A_f = prm["mf_A"][...]                                      # (S, I) = -exp(A_log)
    A_b = prm["mb_A"][...]
    n_chunks = L // CH

    def chunk_step(c, carry):
        hf, hb = carry                                          # each (S, I)
        cf = pl.multiple_of(c * CH, CH)                         # fwd chunk start
        cb = pl.multiple_of((n_chunks - 1 - c) * CH, CH)        # bwd chunk start

        dt_f = dtf_sc[pl.ds(cf, CH), :]                         # (CH, I)
        u_f = uf_sc[pl.ds(cf, CH), :]
        b_f = bf_sc[pl.ds(cf, CH), :]                           # (CH, S)
        c_f = cf_sc[pl.ds(cf, CH), :]
        dt_b = dtb_sc[pl.ds(cb, CH), :]
        u_b = ub_sc[pl.ds(cb, CH), :]
        b_b = bb_sc[pl.ds(cb, CH), :]
        c_b = cb_sc[pl.ds(cb, CH), :]

        dA_f = jnp.exp(dt_f[:, None, :] * A_f[None, :, :])      # (CH, S, I)
        dBu_f = dt_f[:, None, :] * b_f[:, :, None] * u_f[:, None, :]
        dA_b = jnp.exp(dt_b[:, None, :] * A_b[None, :, :])
        dBu_b = dt_b[:, None, :] * b_b[:, :, None] * u_b[:, None, :]

        yf_rows, yb_rows = [], []
        for k in range(CH):                                     # static unroll
            hf = dA_f[k] * hf + dBu_f[k]
            yf_rows.append(jnp.sum(c_f[k, :, None] * hf, axis=0, keepdims=True))
            kb = CH - 1 - k                                     # bwd: reverse in-chunk
            hb = dA_b[kb] * hb + dBu_b[kb]
            yb_rows.append(jnp.sum(c_b[kb, :, None] * hb, axis=0, keepdims=True))

        yf_sc[pl.ds(cf, CH), :] = jnp.concatenate(yf_rows, axis=0)
        yb_sc[pl.ds(cb, CH), :] = jnp.concatenate(yb_rows[::-1], axis=0)
        return hf, hb

    h0 = jnp.zeros((d_state, d_inner), F32)
    lax.fori_loop(0, n_chunks, chunk_step, (h0, h0))

    # skip term + gate, then one stacked output projection folds x + y_f + y_b.
    y_f = (yf_sc[...] + prm["mf_D"][...] * uf_sc[...]) * _silu(z_f)
    y_b = (yb_sc[...] + prm["mb_D"][...] * ub_sc[...]) * _silu(z_b)
    y = jnp.concatenate([y_f, y_b], axis=1)                     # (L, 2*d_inner)
    x = x + _mm(y, prm["mm_out_w"][...])

    # ---------------- Convolution module: x + Conv(x) ----------------
    h = _layernorm(x, prm["cv_ln_g"][...], prm["cv_ln_b"][...])
    pw1 = _mm(h, prm["cv_pw1_w"][...]) + prm["cv_pw1_b"][...]   # (L, 2*cdim)
    h = pw1[:, 0:cdim] * _sigmoid(pw1[:, cdim:2 * cdim])        # GLU
    cconv_sc[8:8 + L, :] = h                                    # aligned interior write
    dw = prm["cv_dw_w"][...]                                    # (depth_ks, cdim)
    acc = jnp.zeros((L, cdim), F32)
    for k in range(depth_ks):                                   # 'same' depthwise conv
        acc = acc + dw[k:k + 1, :] * cconv_sc[8 - cpad + k:8 - cpad + k + L, :]
    h = acc + prm["cv_dw_b"][...]
    h = h * prm["cv_bn_scale"][...] + prm["cv_bn_shift"][...]   # folded eval BatchNorm1d
    h = _silu(h)
    h = _mm(h, prm["cv_pw2_w"][...]) + prm["cv_pw2_b"][...]
    x = x + h

    # ---------------- FFN2: x + 0.5 * FFN(x) ----------------
    h = _layernorm(x, prm["ff2_ln_g"][...], prm["ff2_ln_b"][...])
    h = _silu(_mm(h, prm["ff2_w1"][...]) + prm["ff2_b1"][...])
    h = _mm(h, prm["ff2_w2"][...]) + prm["ff2_b2"][...]
    x = x + 0.5 * h

    # ---------------- final LayerNorm ----------------
    o_ref[0] = _layernorm(x, prm["ln_g"][...], prm["ln_b"][...]).astype(o_ref.dtype)


def encoder_block(x, kp):
    B, L, D = x.shape
    d_inner = kp["mm_in_w"].shape[1] // 4
    dt_rank = kp["mf_dt_w"].shape[0]
    d_state = (kp["mf_x_w"].shape[1] - dt_rank) // 2
    d_conv = kp["mf_conv_w"].shape[0]
    depth_ks, cdim = kp["cv_dw_w"].shape
    mpad = d_conv - 1
    cpad = (depth_ks - 1) // 2
    assert mpad <= 8 and cpad <= 8 and (depth_ks - 1 - cpad) <= 8, \
        "conv halo buffers assume <= 8 rows of padding per side"

    CH = SCAN_CHUNK
    while CH > 1 and L % CH != 0:
        CH //= 2

    params = [kp[k] for k in _PARAM_ORDER]

    def full_spec(a):
        nd = a.ndim
        # Constant index_map: each weight is fetched once and stays VMEM-resident.
        # TODO(synk): pipeline_mode=pl.Buffered(1) would drop the second (never used)
        # weight buffer -- worth enabling at production dims to fit v7x's 64 MiB/TC.
        return pl.BlockSpec(a.shape, lambda b, _n=nd: (0,) * _n)

    kern = functools.partial(_encoder_block_kernel, L=L, CH=CH, d_inner=d_inner,
                             d_state=d_state, dt_rank=dt_rank, d_conv=d_conv,
                             cdim=cdim, depth_ks=depth_ks)

    # TODO(synk): at production dims with L < 128/256, batch Bt>1 sequences per grid
    # step (flatten (Bt*L, D) for the matmuls, vectorize the chunked scan over Bt) to
    # fill the MXU M dimension and amortize the per-grid-step overhead.
    return pl.pallas_call(
        kern,
        out_shape=jax.ShapeDtypeStruct((B, L, D), x.dtype),
        grid=(B,),
        in_specs=[pl.BlockSpec((1, L, D), lambda b: (b, 0, 0))] +
                 [full_spec(a) for a in params],
        out_specs=pl.BlockSpec((1, L, D), lambda b: (b, 0, 0)),
        scratch_shapes=[
            pltpu.VMEM((L + 16, d_inner), F32),   # mamba conv halo (data rows 8..8+L-1)
            pltpu.VMEM((L + 16, cdim), F32),      # conv-module halo (data rows 8..8+L-1)
            pltpu.VMEM((L, d_inner), F32),        # u   (fwd)
            pltpu.VMEM((L, d_inner), F32),        # dt  (fwd)
            pltpu.VMEM((L, d_state), F32),        # B   (fwd)
            pltpu.VMEM((L, d_state), F32),        # C   (fwd)
            pltpu.VMEM((L, d_inner), F32),        # y   (fwd)
            pltpu.VMEM((L, d_inner), F32),        # u   (bwd)
            pltpu.VMEM((L, d_inner), F32),        # dt  (bwd)
            pltpu.VMEM((L, d_state), F32),        # B   (bwd)
            pltpu.VMEM((L, d_state), F32),        # C   (bwd)
            pltpu.VMEM((L, d_inner), F32),        # y   (bwd)
        ],
        compiler_params=pltpu.CompilerParams(
            dimension_semantics=("parallel",),    # batch items independent (2 TCs on v7x)
            vmem_limit_bytes=48 * 1024 * 1024),   # headroom under v7x's 64 MiB/TC
    )(x, *params)


# ----------------------------- parameter init / prep -----------------------------
def init_raw_params(key, D, ff_expand, d_state, d_conv, mamba_expand, conv_expand, depth_ks):
    """Parameters in the PyTorch-module layout (fused projections, raw BN stats, A_log)."""
    d_inner = mamba_expand * D
    dt_rank = -(-D // 16)
    cdim = conv_expand * D
    F = ff_expand * D
    keys = iter(jax.random.split(key, 64))

    def nrm(shape, scale=0.05):
        return (scale * jax.random.normal(next(keys), shape)).astype(F32)

    def ffn():
        return dict(ln_g=jnp.ones((1, D), F32), ln_b=jnp.zeros((1, D), F32),
                    w1=nrm((D, F)), b1=jnp.zeros((1, F), F32),
                    w2=nrm((F, D)), b2=jnp.zeros((1, D), F32))

    def mamba():
        A_log = jnp.log(jnp.broadcast_to(
            jnp.arange(1, d_state + 1, dtype=F32)[:, None], (d_state, d_inner)))
        return dict(in_w=nrm((D, 2 * d_inner)),
                    conv_w=nrm((d_conv, d_inner)),
                    conv_b=jnp.zeros((1, d_inner), F32),
                    x_w=nrm((d_inner, dt_rank + 2 * d_state)),
                    dt_w=nrm((dt_rank, d_inner)),
                    dt_b=jnp.full((1, d_inner), 0.1, F32),
                    A_log=A_log,
                    D=jnp.ones((1, d_inner), F32),
                    out_w=nrm((d_inner, D)))

    conv = dict(ln_g=jnp.ones((1, D), F32), ln_b=jnp.zeros((1, D), F32),
                pw1_w=nrm((D, 2 * cdim)), pw1_b=jnp.zeros((1, 2 * cdim), F32),
                dw_w=nrm((depth_ks, cdim)), dw_b=jnp.zeros((1, cdim), F32),
                bn_g=jnp.ones((1, cdim), F32), bn_b=jnp.zeros((1, cdim), F32),
                bn_rm=jnp.zeros((1, cdim), F32), bn_rv=jnp.ones((1, cdim), F32),
                pw2_w=nrm((cdim, D)), pw2_b=jnp.zeros((1, D), F32))

    return dict(ff1=ffn(), ff2=ffn(),
                mamba_ln_g=jnp.ones((1, D), F32), mamba_ln_b=jnp.zeros((1, D), F32),
                mamba_fwd=mamba(), mamba_bwd=mamba(),
                conv=conv,
                ln_g=jnp.ones((1, D), F32), ln_b=jnp.zeros((1, D), F32))


def prepare_params(raw):
    """One-time parameter prep (outside the kernel):
       - merge per-direction projections into wide matrices (in_proj of both directions,
         stacked out_proj, fused x_proj kept whole, GLU pointwise kept whole),
       - precompute A = -exp(A_log),
       - fold eval-mode BatchNorm1d into a scale/shift pair,
       - pre-cast matmul weight matrices to MATMUL_DTYPE (bf16 MXU path)."""
    out = {}
    wdt = MATMUL_DTYPE

    def ffn(dst, p):
        out[dst + "ln_g"], out[dst + "ln_b"] = p["ln_g"], p["ln_b"]
        out[dst + "w1"], out[dst + "b1"] = p["w1"].astype(wdt), p["b1"]
        out[dst + "w2"], out[dst + "b2"] = p["w2"].astype(wdt), p["b2"]

    ffn("ff1_", raw["ff1"])
    out["mm_ln_g"], out["mm_ln_b"] = raw["mamba_ln_g"], raw["mamba_ln_b"]

    pf, pb = raw["mamba_fwd"], raw["mamba_bwd"]
    d_inner = pf["in_w"].shape[1] // 2
    # one wide in-projection for both directions: [xi_f | z_f | xi_b | z_b]
    out["mm_in_w"] = jnp.concatenate(
        [pf["in_w"][:, :d_inner], pf["in_w"][:, d_inner:],
         pb["in_w"][:, :d_inner], pb["in_w"][:, d_inner:]], axis=1).astype(wdt)
    for dst, p in (("mf_", pf), ("mb_", pb)):
        out[dst + "conv_w"], out[dst + "conv_b"] = p["conv_w"], p["conv_b"]
        out[dst + "x_w"] = p["x_w"].astype(wdt)
        out[dst + "dt_w"], out[dst + "dt_b"] = p["dt_w"].astype(wdt), p["dt_b"]
        out[dst + "A"] = -jnp.exp(p["A_log"])
        out[dst + "D"] = p["D"]
    # stacked output projection so x + y_f + y_b folds into one matmul + add
    out["mm_out_w"] = jnp.concatenate([pf["out_w"], pb["out_w"]], axis=0).astype(wdt)

    c = raw["conv"]
    out["cv_ln_g"], out["cv_ln_b"] = c["ln_g"], c["ln_b"]
    out["cv_pw1_w"], out["cv_pw1_b"] = c["pw1_w"].astype(wdt), c["pw1_b"]
    out["cv_dw_w"], out["cv_dw_b"] = c["dw_w"], c["dw_b"]
    scale = c["bn_g"] * lax.rsqrt(c["bn_rv"] + EPS_BN)
    out["cv_bn_scale"] = scale
    out["cv_bn_shift"] = c["bn_b"] - c["bn_rm"] * scale
    out["cv_pw2_w"], out["cv_pw2_b"] = c["pw2_w"].astype(wdt), c["pw2_b"]

    ffn("ff2_", raw["ff2"])
    out["ln_g"], out["ln_b"] = raw["ln_g"], raw["ln_b"]
    return out


# ----------------------------- main -----------------------------
if __name__ == "__main__":
    # small, module-consistent shapes
    B, L, D = 2, 8, 32
    ff_expand, d_state, d_conv = 4, 8, 4
    mamba_expand, conv_expand, depth_ks = 2, 2, 3

    key = jax.random.PRNGKey(0)
    kx, kp = jax.random.split(key)
    x = jax.random.normal(kx, (B, L, D), dtype=F32)
    raw = init_raw_params(kp, D, ff_expand, d_state, d_conv,
                          mamba_expand, conv_expand, depth_ks)
    kparams = prepare_params(raw)

    out = jax.jit(encoder_block)(x, kparams)
    out = jax.block_until_ready(out)
    assert out.shape == (B, L, D) and bool(jnp.all(jnp.isfinite(out)))
    print("KERNEL_OK")
</pallas_src>

<mosaic_0001>
module attributes {stable_mosaic.version = 11 : i64} {
  func.func @_encoder_block_kernel(%arg0: i32, %arg1: memref<1x8x32xf32, #tpu.memory_space<vmem>>, %arg2: memref<1x32xf32, #tpu.memory_space<vmem>>, %arg3: memref<1x32xf32, #tpu.memory_space<vmem>>, %arg4: memref<32x128xbf16, #tpu.memory_space<vmem>>, %arg5: memref<1x128xf32, #tpu.memory_space<vmem>>, %arg6: memref<128x32xbf16, #tpu.memory_space<vmem>>, %arg7: memref<1x32xf32, #tpu.memory_space<vmem>>, %arg8: memref<1x32xf32, #tpu.memory_space<vmem>>, %arg9: memref<1x32xf32, #tpu.memory_space<vmem>>, %arg10: memref<32x256xbf16, #tpu.memory_space<vmem>>, %arg11: memref<4x64xf32, #tpu.memory_space<vmem>>, %arg12: memref<1x64xf32, #tpu.memory_space<vmem>>, %arg13: memref<64x18xbf16, #tpu.memory_space<vmem>>, %arg14: memref<2x64xbf16, #tpu.memory_space<vmem>>, %arg15: memref<1x64xf32, #tpu.memory_space<vmem>>, %arg16: memref<8x64xf32, #tpu.memory_space<vmem>>, %arg17: memref<1x64xf32, #tpu.memory_space<vmem>>, %arg18: memref<4x64xf32, #tpu.memory_space<vmem>>, %arg19: memref<1x64xf32, #tpu.memory_space<vmem>>, %arg20: memref<64x18xbf16, #tpu.memory_space<vmem>>, %arg21: memref<2x64xbf16, #tpu.memory_space<vmem>>, %arg22: memref<1x64xf32, #tpu.memory_space<vmem>>, %arg23: memref<8x64xf32, #tpu.memory_space<vmem>>, %arg24: memref<1x64xf32, #tpu.memory_space<vmem>>, %arg25: memref<128x32xbf16, #tpu.memory_space<vmem>>, %arg26: memref<1x32xf32, #tpu.memory_space<vmem>>, %arg27: memref<1x32xf32, #tpu.memory_space<vmem>>, %arg28: memref<32x128xbf16, #tpu.memory_space<vmem>>, %arg29: memref<1x128xf32, #tpu.memory_space<vmem>>, %arg30: memref<3x64xf32, #tpu.memory_space<vmem>>, %arg31: memref<1x64xf32, #tpu.memory_space<vmem>>, %arg32: memref<1x64xf32, #tpu.memory_space<vmem>>, %arg33: memref<1x64xf32, #tpu.memory_space<vmem>>, %arg34: memref<64x32xbf16, #tpu.memory_space<vmem>>, %arg35: memref<1x32xf32, #tpu.memory_space<vmem>>, %arg36: memref<1x32xf32, #tpu.memory_space<vmem>>, %arg37: memref<1x32xf32, #tpu.memory_space<vmem>>, %arg38: memref<32x128xbf16, #tpu.memory_space<vmem>>, %arg39: memref<1x128xf32, #tpu.memory_space<vmem>>, %arg40: memref<128x32xbf16, #tpu.memory_space<vmem>>, %arg41: memref<1x32xf32, #tpu.memory_space<vmem>>, %arg42: memref<1x32xf32, #tpu.memory_space<vmem>>, %arg43: memref<1x32xf32, #tpu.memory_space<vmem>>, %arg44: memref<1x8x32xf32, #tpu.memory_space<vmem>>, %arg45: memref<24x64xf32, #tpu.memory_space<vmem>>, %arg46: memref<24x64xf32, #tpu.memory_space<vmem>>, %arg47: memref<8x64xf32, #tpu.memory_space<vmem>>, %arg48: memref<8x64xf32, #tpu.memory_space<vmem>>, %arg49: memref<8x8xf32, #tpu.memory_space<vmem>>, %arg50: memref<8x8xf32, #tpu.memory_space<vmem>>, %arg51: memref<8x64xf32, #tpu.memory_space<vmem>>, %arg52: memref<8x64xf32, #tpu.memory_space<vmem>>, %arg53: memref<8x64xf32, #tpu.memory_space<vmem>>, %arg54: memref<8x8xf32, #tpu.memory_space<vmem>>, %arg55: memref<8x8xf32, #tpu.memory_space<vmem>>, %arg56: memref<8x64xf32, #tpu.memory_space<vmem>>) attributes {dimension_semantics = [#tpu.dimension_semantics<parallel>], iteration_bounds = array<i64: 2>, scalar_prefetch = 0 : i64, scratch_operands = 12 : i64, tpu.core_type = #tpu.core_type<tc>, window_params = [{transform_indices = @transform_0, window_bounds = array<i64: 1, 8, 32>}, {pipeline_mode = #tpu.pipeline_mode<synchronous>, transform_indices = @transform_1, window_bounds = array<i64: 1, 32>}, {pipeline_mode = #tpu.pipeline_mode<synchronous>, transform_indices = @transform_2, window_bounds = array<i64: 1, 32>}, {pipeline_mode = #tpu.pipeline_mode<synchronous>, transform_indices = @transform_3, window_bounds = array<i64: 32, 128>}, {pipeline_mode = #tpu.pipeline_mode<synchronous>, transform_indices = @transform_4, window_bounds = array<i64: 1, 128>}, {pipeline_mode = #tpu.pipeline_mode<synchronous>, transform_indices = @transform_5, window_bounds = array<i64: 128, 32>}, {pipeline_mode = #tpu.pipeline_mode<synchronous>, transform_indices = @transform_6, window_bounds = array<i64: 1, 32>}, {pipeline_mode = #tpu.pipeline_mode<synchronous>, transform_indices = @transform_7, window_bounds = array<i64: 1, 32>}, {pipeline_mode = #tpu.pipeline_mode<synchronous>, transform_indices = @transform_8, window_bounds = array<i64: 1, 32>}, {pipeline_mode = #tpu.pipeline_mode<synchronous>, transform_indices = @transform_9, window_bounds = array<i64: 32, 256>}, {pipeline_mode = #tpu.pipeline_mode<synchronous>, transform_indices = @transform_10, window_bounds = array<i64: 4, 64>}, {pipeline_mode = #tpu.pipeline_mode<synchronous>, transform_indices = @transform_11, window_bounds = array<i64: 1, 64>}, {pipeline_mode = #tpu.pipeline_mode<synchronous>, transform_indices = @transform_12, window_bounds = array<i64: 64, 18>}, {pipeline_mode = #tpu.pipeline_mode<synchronous>, transform_indices = @transform_13, window_bounds = array<i64: 2, 64>}, {pipeline_mode = #tpu.pipeline_mode<synchronous>, transform_indices = @transform_14, window_bounds = array<i64: 1, 64>}, {pipeline_mode = #tpu.pipeline_mode<synchronous>, transform_indices = @transform_15, window_bounds = array<i64: 8, 64>}, {pipeline_mode = #tpu.pipeline_mode<synchronous>, transform_indices = @transform_16, window_bounds = array<i64: 1, 64>}, {pipeline_mode = #tpu.pipeline_mode<synchronous>, transform_indices = @transform_17, window_bounds = array<i64: 4, 64>}, {pipeline_mode = #tpu.pipeline_mode<synchronous>, transform_indices = @transform_18, window_bounds = array<i64: 1, 64>}, {pipeline_mode = #tpu.pipeline_mode<synchronous>, transform_indices = @transform_19, window_bounds = array<i64: 64, 18>}, {pipeline_mode = #tpu.pipeline_mode<synchronous>, transform_indices = @transform_20, window_bounds = array<i64: 2, 64>}, {pipeline_mode = #tpu.pipeline_mode<synchronous>, transform_indices = @transform_21, window_bounds = array<i64: 1, 64>}, {pipeline_mode = #tpu.pipeline_mode<synchronous>, transform_indices = @transform_22, window_bounds = array<i64: 8, 64>}, {pipeline_mode = #tpu.pipeline_mode<synchronous>, transform_indices = @transform_23, window_bounds = array<i64: 1, 64>}, {pipeline_mode = #tpu.pipeline_mode<synchronous>, transform_indices = @transform_24, window_bounds = array<i64: 128, 32>}, {pipeline_mode = #tpu.pipeline_mode<synchronous>, transform_indices = @transform_25, window_bounds = array<i64: 1, 32>}, {pipeline_mode = #tpu.pipeline_mode<synchronous>, transform_indices = @transform_26, window_bounds = array<i64: 1, 32>}, {pipeline_mode = #tpu.pipeline_mode<synchronous>, transform_indices = @transform_27, window_bounds = array<i64: 32, 128>}, {pipeline_mode = #tpu.pipeline_mode<synchronous>, transform_indices = @transform_28, window_bounds = array<i64: 1, 128>}, {pipeline_mode = #tpu.pipeline_mode<synchronous>, transform_indices = @transform_29, window_bounds = array<i64: 3, 64>}, {pipeline_mode = #tpu.pipeline_mode<synchronous>, transform_indices = @transform_30, window_bounds = array<i64: 1, 64>}, {pipeline_mode = #tpu.pipeline_mode<synchronous>, transform_indices = @transform_31, window_bounds = array<i64: 1, 64>}, {pipeline_mode = #tpu.pipeline_mode<synchronous>, transform_indices = @transform_32, window_bounds = array<i64: 1, 64>}, {pipeline_mode = #tpu.pipeline_mode<synchronous>, transform_indices = @transform_33, window_bounds = array<i64: 64, 32>}, {pipeline_mode = #tpu.pipeline_mode<synchronous>, transform_indices = @transform_34, window_bounds = array<i64: 1, 32>}, {pipeline_mode = #tpu.pipeline_mode<synchronous>, transform_indices = @transform_35, window_bounds = array<i64: 1, 32>}, {pipeline_mode = #tpu.pipeline_mode<synchronous>, transform_indices = @transform_36, window_bounds = array<i64: 1, 32>}, {pipeline_mode = #tpu.pipeline_mode<synchronous>, transform_indices = @transform_37, window_bounds = array<i64: 32, 128>}, {pipeline_mode = #tpu.pipeline_mode<synchronous>, transform_indices = @transform_38, window_bounds = array<i64: 1, 128>}, {pipeline_mode = #tpu.pipeline_mode<synchronous>, transform_indices = @transform_39, window_bounds = array<i64: 128, 32>}, {pipeline_mode = #tpu.pipeline_mode<synchronous>, transform_indices = @transform_40, window_bounds = array<i64: 1, 32>}, {pipeline_mode = #tpu.pipeline_mode<synchronous>, transform_indices = @transform_41, window_bounds = array<i64: 1, 32>}, {pipeline_mode = #tpu.pipeline_mode<synchronous>, transform_indices = @transform_42, window_bounds = array<i64: 1, 32>}, {transform_indices = @transform_43, window_bounds = array<i64: 1, 8, 32>}]} {
    %cst = arith.constant 0.000000e+00 : f32
    %0 = vector.broadcast %cst : f32 to vector<8x64xf32>
    %c0 = arith.constant 0 : index
    %c0_0 = arith.constant 0 : index
    %1 = vector.load %arg45[%c0, %c0_0] : memref<24x64xf32, #tpu.memory_space<vmem>>, vector<8x64xf32>
    tpu.vector_store %arg45[%c0, %c0_0], %0 {strides = array<i32>} : memref<24x64xf32, #tpu.memory_space<vmem>>, vector<8x64xf32>,
    %cst_1 = arith.constant 0.000000e+00 : f32
    %2 = vector.broadcast %cst_1 : f32 to vector<8x64xf32>
    %c16 = arith.constant 16 : index
    %c0_2 = arith.constant 0 : index
    %3 = vector.load %arg45[%c16, %c0_2] : memref<24x64xf32, #tpu.memory_space<vmem>>, vector<8x64xf32>
    tpu.vector_store %arg45[%c16, %c0_2], %2 {strides = array<i32>} : memref<24x64xf32, #tpu.memory_space<vmem>>, vector<8x64xf32>,
    %cst_3 = arith.constant 0.000000e+00 : f32
    %4 = vector.broadcast %cst_3 : f32 to vector<8x64xf32>
    %c0_4 = arith.constant 0 : index
    %c0_5 = arith.constant 0 : index
    %5 = vector.load %arg46[%c0_4, %c0_5] : memref<24x64xf32, #tpu.memory_space<vmem>>, vector<8x64xf32>
    tpu.vector_store %arg46[%c0_4, %c0_5], %4 {strides = array<i32>} : memref<24x64xf32, #tpu.memory_space<vmem>>, vector<8x64xf32>,
    %cst_6 = arith.constant 0.000000e+00 : f32
    %6 = vector.broadcast %cst_6 : f32 to vector<8x64xf32>
    %c16_7 = arith.constant 16 : index
    %c0_8 = arith.constant 0 : index
    %7 = vector.load %arg46[%c16_7, %c0_8] : memref<24x64xf32, #tpu.memory_space<vmem>>, vector<8x64xf32>
    tpu.vector_store %arg46[%c16_7, %c0_8], %6 {strides = array<i32>} : memref<24x64xf32, #tpu.memory_space<vmem>>, vector<8x64xf32>,
    %c0_9 = arith.constant 0 : index
    %c0_10 = arith.constant 0 : index
    %c0_11 = arith.constant 0 : index
    %8 = vector.load %arg1[%c0_9, %c0_10, %c0_11] : memref<1x8x32xf32, #tpu.memory_space<vmem>>, vector<1x8x32xf32>
    %9 = vector.shape_cast %8 : vector<1x8x32xf32> to vector<8x32xf32>
    %c0_12 = arith.constant 0 : index
    %c0_13 = arith.constant 0 : index
    %10 = vector.load %arg2[%c0_12, %c0_13] : memref<1x32xf32, #tpu.memory_space<vmem>>, vector<1x32xf32>
    %c0_14 = arith.constant 0 : index
    %c0_15 = arith.constant 0 : index
    %11 = vector.load %arg3[%c0_14, %c0_15] : memref<1x32xf32, #tpu.memory_space<vmem>>, vector<1x32xf32>
    %cst_16 = arith.constant dense<0.000000e+00> : vector<8xf32>
    %12 = vector.multi_reduction <add>, %9, %cst_16 [1] : vector<8x32xf32> to vector<8xf32>
    %13 = vector.shape_cast %12 : vector<8xf32> to vector<8x1xf32>
    %cst_17 = arith.constant 3.200000e+01 : f32
    %14 = vector.broadcast %cst_17 : f32 to vector<8x1xf32>
    %15 = arith.divf %13, %14 : vector<8x1xf32>
    %16 = vector.broadcast %15 : vector<8x1xf32> to vector<8x32xf32>
    %17 = arith.subf %9, %16 : vector<8x32xf32>
    %18 = arith.mulf %17, %17 : vector<8x32xf32>
    %cst_18 = arith.constant dense<0.000000e+00> : vector<8xf32>
    %19 = vector.multi_reduction <add>, %18, %cst_18 [1] : vector<8x32xf32> to vector<8xf32>
    %20 = vector.shape_cast %19 : vector<8xf32> to vector<8x1xf32>
    %cst_19 = arith.constant 3.200000e+01 : f32
    %21 = vector.broadcast %cst_19 : f32 to vector<8x1xf32>
    %22 = arith.divf %20, %21 : vector<8x1xf32>
    %23 = vector.broadcast %15 : vector<8x1xf32> to vector<8x32xf32>
    %24 = arith.subf %9, %23 : vector<8x32xf32>
    %cst_20 = arith.constant 9.99999974E-6 : f32
    %25 = vector.broadcast %cst_20 : f32 to vector<8x1xf32>
    %26 = arith.addf %22, %25 : vector<8x1xf32>
    %27 = math.rsqrt %26 : vector<8x1xf32>
    %28 = vector.broadcast %27 : vector<8x1xf32> to vector<8x32xf32>
    %29 = arith.mulf %24, %28 : vector<8x32xf32>
    %30 = vector.broadcast %10 : vector<1x32xf32> to vector<8x32xf32>
    %31 = arith.mulf %29, %30 : vector<8x32xf32>
    %32 = vector.broadcast %11 : vector<1x32xf32> to vector<8x32xf32>
    %33 = arith.addf %31, %32 : vector<8x32xf32>
    %c0_21 = arith.constant 0 : index
    %c0_22 = arith.constant 0 : index
    %34 = vector.load %arg4[%c0_21, %c0_22] : memref<32x128xbf16, #tpu.memory_space<vmem>>, vector<32x128xbf16>
    %35 = arith.truncf %33 : vector<8x32xf32> to vector<8x32xbf16>
    %cst_23 = arith.constant dense<0.000000e+00> : vector<8x128xf32>
    %36 = tpu.matmul %35, %34, %cst_23 {dimension_numbers = #tpu.dot_dimension_numbers<[1], [0], [0], [1], [0, 0, 1, 1], [], []>} : vector<8x32xbf16>, vector<32x128xbf16>, vector<8x128xf32> -> vector<8x128xf32>
    %c0_24 = arith.constant 0 : index
    %c0_25 = arith.constant 0 : index
    %37 = vector.load %arg5[%c0_24, %c0_25] : memref<1x128xf32, #tpu.memory_space<vmem>>, vector<1x128xf32>
    %38 = vector.broadcast %37 : vector<1x128xf32> to vector<8x128xf32>
    %39 = arith.addf %36, %38 : vector<8x128xf32>
    %cst_26 = arith.constant 0.000000e+00 : f32
    %40 = vector.broadcast %cst_26 : f32 to vector<8x128xf32>
    %41 = arith.subf %40, %39 : vector<8x128xf32>
    %42 = math.exp %41 : vector<8x128xf32>
    %cst_27 = arith.constant 1.000000e+00 : f32
    %43 = vector.broadcast %cst_27 : f32 to vector<8x128xf32>
    %44 = arith.addf %43, %42 : vector<8x128xf32>
    %cst_28 = arith.constant 1.000000e+00 : f32
    %45 = vector.broadcast %cst_28 : f32 to vector<8x128xf32>
    %46 = arith.divf %45, %44 : vector<8x128xf32>
    %47 = arith.mulf %39, %46 : vector<8x128xf32>
    %c0_29 = arith.constant 0 : index
    %c0_30 = arith.constant 0 : index
    %48 = vector.load %arg6[%c0_29, %c0_30] : memref<128x32xbf16, #tpu.memory_space<vmem>>, vector<128x32xbf16>
    %49 = arith.truncf %47 : vector<8x128xf32> to vector<8x128xbf16>
    %cst_31 = arith.constant dense<0.000000e+00> : vector<8x32xf32>
    %50 = tpu.matmul %49, %48, %cst_31 {dimension_numbers = #tpu.dot_dimension_numbers<[1], [0], [0], [1], [0, 0, 1, 1], [], []>} : vector<8x128xbf16>, vector<128x32xbf16>, vector<8x32xf32> -> vector<8x32xf32>
    %c0_32 = arith.constant 0 : index
    %c0_33 = arith.constant 0 : index
    %51 = vector.load %arg7[%c0_32, %c0_33] : memref<1x32xf32, #tpu.memory_space<vmem>>, vector<1x32xf32>
    %52 = vector.broadcast %51 : vector<1x32xf32> to vector<8x32xf32>
    %53 = arith.addf %50, %52 : vector<8x32xf32>
    %cst_34 = arith.constant 5.000000e-01 : f32
    %54 = vector.broadcast %cst_34 : f32 to vector<8x32xf32>
    %55 = arith.mulf %54, %53 : vector<8x32xf32>
    %56 = arith.addf %9, %55 : vector<8x32xf32>
    %c0_35 = arith.constant 0 : index
    %c0_36 = arith.constant 0 : index
    %57 = vector.load %arg8[%c0_35, %c0_36] : memref<1x32xf32, #tpu.memory_space<vmem>>, vector<1x32xf32>
    %c0_37 = arith.constant 0 : index
    %c0_38 = arith.constant 0 : index
    %58 = vector.load %arg9[%c0_37, %c0_38] : memref<1x32xf32, #tpu.memory_space<vmem>>, vector<1x32xf32>
    %cst_39 = arith.constant dense<0.000000e+00> : vector<8xf32>
    %59 = vector.multi_reduction <add>, %56, %cst_39 [1] : vector<8x32xf32> to vector<8xf32>
    %60 = vector.shape_cast %59 : vector<8xf32> to vector<8x1xf32>
    %cst_40 = arith.constant 3.200000e+01 : f32
    %61 = vector.broadcast %cst_40 : f32 to vector<8x1xf32>
    %62 = arith.divf %60, %61 : vector<8x1xf32>
    %63 = vector.broadcast %62 : vector<8x1xf32> to vector<8x32xf32>
    %64 = arith.subf %56, %63 : vector<8x32xf32>
    %65 = arith.mulf %64, %64 : vector<8x32xf32>
    %cst_41 = arith.constant dense<0.000000e+00> : vector<8xf32>
    %66 = vector.multi_reduction <add>, %65, %cst_41 [1] : vector<8x32xf32> to vector<8xf32>
    %67 = vector.shape_cast %66 : vector<8xf32> to vector<8x1xf32>
    %cst_42 = arith.constant 3.200000e+01 : f32
    %68 = vector.broadcast %cst_42 : f32 to vector<8x1xf32>
    %69 = arith.divf %67, %68 : vector<8x1xf32>
    %70 = vector.broadcast %62 : vector<8x1xf32> to vector<8x32xf32>
    %71 = arith.subf %56, %70 : vector<8x32xf32>
    %cst_43 = arith.constant 9.99999974E-6 : f32
    %72 = vector.broadcast %cst_43 : f32 to vector<8x1xf32>
    %73 = arith.addf %69, %72 : vector<8x1xf32>
    %74 = math.rsqrt %73 : vector<8x1xf32>
    %75 = vector.broadcast %74 : vector<8x1xf32> to vector<8x32xf32>
    %76 = arith.mulf %71, %75 : vector<8x32xf32>
    %77 = vector.broadcast %57 : vector<1x32xf32> to vector<8x32xf32>
    %78 = arith.mulf %76, %77 : vector<8x32xf32>
    %79 = vector.broadcast %58 : vector<1x32xf32> to vector<8x32xf32>
    %80 = arith.addf %78, %79 : vector<8x32xf32>
    %c0_44 = arith.constant 0 : index
    %c0_45 = arith.constant 0 : index
    %81 = vector.load %arg10[%c0_44, %c0_45] : memref<32x256xbf16, #tpu.memory_space<vmem>>, vector<32x256xbf16>
    %82 = arith.truncf %80 : vector<8x32xf32> to vector<8x32xbf16>
    %cst_46 = arith.constant dense<0.000000e+00> : vector<8x256xf32>
    %83 = tpu.matmul %82, %81, %cst_46 {dimension_numbers = #tpu.dot_dimension_numbers<[1], [0], [0], [1], [0, 0, 1, 1], [], []>} : vector<8x32xbf16>, vector<32x256xbf16>, vector<8x256xf32> -> vector<8x256xf32>
    %84 = vector.extract_strided_slice %83 {offsets = [0, 0], sizes = [8, 64], strides = [1, 1]} : vector<8x256xf32> to vector<8x64xf32>
    %85 = vector.extract_strided_slice %83 {offsets = [0, 64], sizes = [8, 64], strides = [1, 1]} : vector<8x256xf32> to vector<8x64xf32>
    %86 = vector.extract_strided_slice %83 {offsets = [0, 128], sizes = [8, 64], strides = [1, 1]} : vector<8x256xf32> to vector<8x64xf32>
    %87 = vector.extract_strided_slice %83 {offsets = [0, 192], sizes = [8, 64], strides = [1, 1]} : vector<8x256xf32> to vector<8x64xf32>
    %c8 = arith.constant 8 : index
    %c0_47 = arith.constant 0 : index
    %88 = vector.load %arg45[%c8, %c0_47] : memref<24x64xf32, #tpu.memory_space<vmem>>, vector<8x64xf32>
    tpu.vector_store %arg45[%c8, %c0_47], %84 {strides = array<i32>} : memref<24x64xf32, #tpu.memory_space<vmem>>, vector<8x64xf32>,
    %c0_48 = arith.constant 0 : index
    %c0_49 = arith.constant 0 : index
    %89 = vector.load %arg11[%c0_48, %c0_49] : memref<4x64xf32, #tpu.memory_space<vmem>>, vector<4x64xf32>
    %cst_50 = arith.constant 0.000000e+00 : f32
    %90 = vector.broadcast %cst_50 : f32 to vector<8x64xf32>
    %91 = vector.extract_strided_slice %89 {offsets = [0, 0], sizes = [1, 64], strides = [1, 1]} : vector<4x64xf32> to vector<1x64xf32>
    %c5 = arith.constant 5 : index
    %c0_51 = arith.constant 0 : index
    %92 = vector.load %arg45[%c5, %c0_51] : memref<24x64xf32, #tpu.memory_space<vmem>>, vector<8x64xf32>
    %93 = vector.broadcast %91 : vector<1x64xf32> to vector<8x64xf32>
    %94 = arith.mulf %93, %92 : vector<8x64xf32>
    %95 = arith.addf %90, %94 : vector<8x64xf32>
    %96 = vector.extract_strided_slice %89 {offsets = [1, 0], sizes = [1, 64], strides = [1, 1]} : vector<4x64xf32> to vector<1x64xf32>
    %c6 = arith.constant 6 : index
    %c0_52 = arith.constant 0 : index
    %97 = vector.load %arg45[%c6, %c0_52] : memref<24x64xf32, #tpu.memory_space<vmem>>, vector<8x64xf32>
    %98 = vector.broadcast %96 : vector<1x64xf32> to vector<8x64xf32>
    %99 = arith.mulf %98, %97 : vector<8x64xf32>
    %100 = arith.addf %95, %99 : vector<8x64xf32>
    %101 = vector.extract_strided_slice %89 {offsets = [2, 0], sizes = [1, 64], strides = [1, 1]} : vector<4x64xf32> to vector<1x64xf32>
    %c7 = arith.constant 7 : index
    %c0_53 = arith.constant 0 : index
    %102 = vector.load %arg45[%c7, %c0_53] : memref<24x64xf32, #tpu.memory_space<vmem>>, vector<8x64xf32>
    %103 = vector.broadcast %101 : vector<1x64xf32> to vector<8x64xf32>
    %104 = arith.mulf %103, %102 : vector<8x64xf32>
    %105 = arith.addf %100, %104 : vector<8x64xf32>
    %106 = vector.extract_strided_slice %89 {offsets = [3, 0], sizes = [1, 64], strides = [1, 1]} : vector<4x64xf32> to vector<1x64xf32>
    %c8_54 = arith.constant 8 : index
    %c0_55 = arith.constant 0 : index
    %107 = vector.load %arg45[%c8_54, %c0_55] : memref<24x64xf32, #tpu.memory_space<vmem>>, vector<8x64xf32>
    %108 = vector.broadcast %106 : vector<1x64xf32> to vector<8x64xf32>
    %109 = arith.mulf %108, %107 : vector<8x64xf32>
    %110 = arith.addf %105, %109 : vector<8x64xf32>
    %c0_56 = arith.constant 0 : index
    %c0_57 = arith.constant 0 : index
    %111 = vector.load %arg12[%c0_56, %c0_57] : memref<1x64xf32, #tpu.memory_space<vmem>>, vector<1x64xf32>
    %112 = vector.broadcast %111 : vector<1x64xf32> to vector<8x64xf32>
    %113 = arith.addf %110, %112 : vector<8x64xf32>
    %cst_58 = arith.constant 0.000000e+00 : f32
    %114 = vector.broadcast %cst_58 : f32 to vector<8x64xf32>
    %115 = arith.subf %114, %113 : vector<8x64xf32>
    %116 = math.exp %115 : vector<8x64xf32>
    %cst_59 = arith.constant 1.000000e+00 : f32
    %117 = vector.broadcast %cst_59 : f32 to vector<8x64xf32>
    %118 = arith.addf %117, %116 : vector<8x64xf32>
    %cst_60 = arith.constant 1.000000e+00 : f32
    %119 = vector.broadcast %cst_60 : f32 to vector<8x64xf32>
    %120 = arith.divf %119, %118 : vector<8x64xf32>
    %121 = arith.mulf %113, %120 : vector<8x64xf32>
    %c0_61 = arith.constant 0 : index
    %c0_62 = arith.constant 0 : index
    %122 = vector.load %arg13[%c0_61, %c0_62] : memref<64x18xbf16, #tpu.memory_space<vmem>>, vector<64x18xbf16>
    %123 = arith.truncf %121 : vector<8x64xf32> to vector<8x64xbf16>
    %cst_63 = arith.constant dense<0.000000e+00> : vector<8x18xf32>
    %124 = tpu.matmul %123, %122, %cst_63 {dimension_numbers = #tpu.dot_dimension_numbers<[1], [0], [0], [1], [0, 0, 1, 1], [], []>} : vector<8x64xbf16>, vector<64x18xbf16>, vector<8x18xf32> -> vector<8x18xf32>
    %125 = vector.extract_strided_slice %124 {offsets = [0, 0], sizes = [8, 2], strides = [1, 1]} : vector<8x18xf32> to vector<8x2xf32>
    %c0_64 = arith.constant 0 : index
    %c0_65 = arith.constant 0 : index
    %126 = vector.load %arg14[%c0_64, %c0_65] : memref<2x64xbf16, #tpu.memory_space<vmem>>, vector<2x64xbf16>
    %127 = arith.truncf %125 : vector<8x2xf32> to vector<8x2xbf16>
    %cst_66 = arith.constant dense<0.000000e+00> : vector<8x64xf32>
    %128 = tpu.matmul %127, %126, %cst_66 {dimension_numbers = #tpu.dot_dimension_numbers<[1], [0], [0], [1], [0, 0, 1, 1], [], []>} : vector<8x2xbf16>, vector<2x64xbf16>, vector<8x64xf32> -> vector<8x64xf32>
    %c0_67 = arith.constant 0 : index
    %c0_68 = arith.constant 0 : index
    %129 = vector.load %arg15[%c0_67, %c0_68] : memref<1x64xf32, #tpu.memory_space<vmem>>, vector<1x64xf32>
    %130 = vector.broadcast %129 : vector<1x64xf32> to vector<8x64xf32>
    %131 = arith.addf %128, %130 : vector<8x64xf32>
    %cst_69 = arith.constant 0.000000e+00 : f32
    %132 = vector.broadcast %cst_69 : f32 to vector<8x64xf32>
    %133 = arith.maximumf %131, %132 : vector<8x64xf32>
    %134 = math.absf %131 : vector<8x64xf32>
    %cst_70 = arith.constant 0.000000e+00 : f32
    %135 = vector.broadcast %cst_70 : f32 to vector<8x64xf32>
    %136 = arith.subf %135, %134 : vector<8x64xf32>
    %137 = math.exp %136 : vector<8x64xf32>
    %cst_71 = arith.constant 1.000000e+00 : f32
    %138 = vector.broadcast %cst_71 : f32 to vector<8x64xf32>
    %139 = arith.addf %138, %137 : vector<8x64xf32>
    %140 = math.log %139 : vector<8x64xf32>
    %141 = arith.addf %133, %140 : vector<8x64xf32>
    %c0_72 = arith.constant 0 : index
    %c0_73 = arith.constant 0 : index
    %142 = vector.load %arg47[%c0_72, %c0_73] : memref<8x64xf32, #tpu.memory_space<vmem>>, vector<8x64xf32>
    tpu.vector_store %arg47[%c0_72, %c0_73], %121 {strides = array<i32>} : memref<8x64xf32, #tpu.memory_space<vmem>>, vector<8x64xf32>,
    %c0_74 = arith.constant 0 : index
    %c0_75 = arith.constant 0 : index
    %143 = vector.load %arg48[%c0_74, %c0_75] : memref<8x64xf32, #tpu.memory_space<vmem>>, vector<8x64xf32>
    tpu.vector_store %arg48[%c0_74, %c0_75], %141 {strides = array<i32>} : memref<8x64xf32, #tpu.memory_space<vmem>>, vector<8x64xf32>,
    %144 = vector.extract_strided_slice %124 {offsets = [0, 2], sizes = [8, 8], strides = [1, 1]} : vector<8x18xf32> to vector<8x8xf32>
    %c0_76 = arith.constant 0 : index
    %c0_77 = arith.constant 0 : index
    %145 = vector.load %arg49[%c0_76, %c0_77] : memref<8x8xf32, #tpu.memory_space<vmem>>, vector<8x8xf32>
    tpu.vector_store %arg49[%c0_76, %c0_77], %144 {strides = array<i32>} : memref<8x8xf32, #tpu.memory_space<vmem>>, vector<8x8xf32>,
    %146 = vector.extract_strided_slice %124 {offsets = [0, 10], sizes = [8, 8], strides = [1, 1]} : vector<8x18xf32> to vector<8x8xf32>
    %c0_78 = arith.constant 0 : index
    %c0_79 = arith.constant 0 : index
    %147 = vector.load %arg50[%c0_78, %c0_79] : memref<8x8xf32, #tpu.memory_space<vmem>>, vector<8x8xf32>
    tpu.vector_store %arg50[%c0_78, %c0_79], %146 {strides = array<i32>} : memref<8x8xf32, #tpu.memory_space<vmem>>, vector<8x8xf32>,
    %c8_80 = arith.constant 8 : index
    %c0_81 = arith.constant 0 : index
    %148 = vector.load %arg45[%c8_80, %c0_81] : memref<24x64xf32, #tpu.memory_space<vmem>>, vector<8x64xf32>
    tpu.vector_store %arg45[%c8_80, %c0_81], %86 {strides = array<i32>} : memref<24x64xf32, #tpu.memory_space<vmem>>, vector<8x64xf32>,
    %c0_82 = arith.constant 0 : index
    %c0_83 = arith.constant 0 : index
    %149 = vector.load %arg18[%c0_82, %c0_83] : memref<4x64xf32, #tpu.memory_space<vmem>>, vector<4x64xf32>
    %cst_84 = arith.constant 0.000000e+00 : f32
    %150 = vector.broadcast %cst_84 : f32 to vector<8x64xf32>
    %151 = vector.extract_strided_slice %149 {offsets = [0, 0], sizes = [1, 64], strides = [1, 1]} : vector<4x64xf32> to vector<1x64xf32>
    %c11 = arith.constant 11 : index
    %c0_85 = arith.constant 0 : index
    %152 = vector.load %arg45[%c11, %c0_85] : memref<24x64xf32, #tpu.memory_space<vmem>>, vector<8x64xf32>
    %153 = vector.broadcast %151 : vector<1x64xf32> to vector<8x64xf32>
    %154 = arith.mulf %153, %152 : vector<8x64xf32>
    %155 = arith.addf %150, %154 : vector<8x64xf32>
    %156 = vector.extract_strided_slice %149 {offsets = [1, 0], sizes = [1, 64], strides = [1, 1]} : vector<4x64xf32> to vector<1x64xf32>
    %c10 = arith.constant 10 : index
    %c0_86 = arith.constant 0 : index
    %157 = vector.load %arg45[%c10, %c0_86] : memref<24x64xf32, #tpu.memory_space<vmem>>, vector<8x64xf32>
    %158 = vector.broadcast %156 : vector<1x64xf32> to vector<8x64xf32>
    %159 = arith.mulf %158, %157 : vector<8x64xf32>
    %160 = arith.addf %155, %159 : vector<8x64xf32>
    %161 = vector.extract_strided_slice %149 {offsets = [2, 0], sizes = [1, 64], strides = [1, 1]} : vector<4x64xf32> to vector<1x64xf32>
    %c9 = arith.constant 9 : index
    %c0_87 = arith.constant 0 : index
    %162 = vector.load %arg45[%c9, %c0_87] : memref<24x64xf32, #tpu.memory_space<vmem>>, vector<8x64xf32>
    %163 = vector.broadcast %161 : vector<1x64xf32> to vector<8x64xf32>
    %164 = arith.mulf %163, %162 : vector<8x64xf32>
    %165 = arith.addf %160, %164 : vector<8x64xf32>
    %166 = vector.extract_strided_slice %149 {offsets = [3, 0], sizes = [1, 64], strides = [1, 1]} : vector<4x64xf32> to vector<1x64xf32>
    %c8_88 = arith.constant 8 : index
    %c0_89 = arith.constant 0 : index
    %167 = vector.load %arg45[%c8_88, %c0_89] : memref<24x64xf32, #tpu.memory_space<vmem>>, vector<8x64xf32>
    %168 = vector.broadcast %166 : vector<1x64xf32> to vector<8x64xf32>
    %169 = arith.mulf %168, %167 : vector<8x64xf32>
    %170 = arith.addf %165, %169 : vector<8x64xf32>
    %c0_90 = arith.constant 0 : index
    %c0_91 = arith.constant 0 : index
    %171 = vector.load %arg19[%c0_90, %c0_91] : memref<1x64xf32, #tpu.memory_space<vmem>>, vector<1x64xf32>
    %172 = vector.broadcast %171 : vector<1x64xf32> to vector<8x64xf32>
    %173 = arith.addf %170, %172 : vector<8x64xf32>
    %cst_92 = arith.constant 0.000000e+00 : f32
    %174 = vector.broadcast %cst_92 : f32 to vector<8x64xf32>
    %175 = arith.subf %174, %173 : vector<8x64xf32>
    %176 = math.exp %175 : vector<8x64xf32>
    %cst_93 = arith.constant 1.000000e+00 : f32
    %177 = vector.broadcast %cst_93 : f32 to vector<8x64xf32>
    %178 = arith.addf %177, %176 : vector<8x64xf32>
    %cst_94 = arith.constant 1.000000e+00 : f32
    %179 = vector.broadcast %cst_94 : f32 to vector<8x64xf32>
    %180 = arith.divf %179, %178 : vector<8x64xf32>
    %181 = arith.mulf %173, %180 : vector<8x64xf32>
    %c0_95 = arith.constant 0 : index
    %c0_96 = arith.constant 0 : index
    %182 = vector.load %arg20[%c0_95, %c0_96] : memref<64x18xbf16, #tpu.memory_space<vmem>>, vector<64x18xbf16>
    %183 = arith.truncf %181 : vector<8x64xf32> to vector<8x64xbf16>
    %cst_97 = arith.constant dense<0.000000e+00> : vector<8x18xf32>
    %184 = tpu.matmul %183, %182, %cst_97 {dimension_numbers = #tpu.dot_dimension_numbers<[1], [0], [0], [1], [0, 0, 1, 1], [], []>} : vector<8x64xbf16>, vector<64x18xbf16>, vector<8x18xf32> -> vector<8x18xf32>
    %185 = vector.extract_strided_slice %184 {offsets = [0, 0], sizes = [8, 2], strides = [1, 1]} : vector<8x18xf32> to vector<8x2xf32>
    %c0_98 = arith.constant 0 : index
    %c0_99 = arith.constant 0 : index
    %186 = vector.load %arg21[%c0_98, %c0_99] : memref<2x64xbf16, #tpu.memory_space<vmem>>, vector<2x64xbf16>
    %187 = arith.truncf %185 : vector<8x2xf32> to vector<8x2xbf16>
    %cst_100 = arith.constant dense<0.000000e+00> : vector<8x64xf32>
    %188 = tpu.matmul %187, %186, %cst_100 {dimension_numbers = #tpu.dot_dimension_numbers<[1], [0], [0], [1], [0, 0, 1, 1], [], []>} : vector<8x2xbf16>, vector<2x64xbf16>, vector<8x64xf32> -> vector<8x64xf32>
    %c0_101 = arith.constant 0 : index
    %c0_102 = arith.constant 0 : index
    %189 = vector.load %arg22[%c0_101, %c0_102] : memref<1x64xf32, #tpu.memory_space<vmem>>, vector<1x64xf32>
    %190 = vector.broadcast %189 : vector<1x64xf32> to vector<8x64xf32>
    %191 = arith.addf %188, %190 : vector<8x64xf32>
    %cst_103 = arith.constant 0.000000e+00 : f32
    %192 = vector.broadcast %cst_103 : f32 to vector<8x64xf32>
    %193 = arith.maximumf %191, %192 : vector<8x64xf32>
    %194 = math.absf %191 : vector<8x64xf32>
    %cst_104 = arith.constant 0.000000e+00 : f32
    %195 = vector.broadcast %cst_104 : f32 to vector<8x64xf32>
    %196 = arith.subf %195, %194 : vector<8x64xf32>
    %197 = math.exp %196 : vector<8x64xf32>
    %cst_105 = arith.constant 1.000000e+00 : f32
    %198 = vector.broadcast %cst_105 : f32 to vector<8x64xf32>
    %199 = arith.addf %198, %197 : vector<8x64xf32>
    %200 = math.log %199 : vector<8x64xf32>
    %201 = arith.addf %193, %200 : vector<8x64xf32>
    %c0_106 = arith.constant 0 : index
    %c0_107 = arith.constant 0 : index
    %202 = vector.load %arg52[%c0_106, %c0_107] : memref<8x64xf32, #tpu.memory_space<vmem>>, vector<8x64xf32>
    tpu.vector_store %arg52[%c0_106, %c0_107], %181 {strides = array<i32>} : memref<8x64xf32, #tpu.memory_space<vmem>>, vector<8x64xf32>,
    %c0_108 = arith.constant 0 : index
    %c0_109 = arith.constant 0 : index
    %203 = vector.load %arg53[%c0_108, %c0_109] : memref<8x64xf32, #tpu.memory_space<vmem>>, vector<8x64xf32>
    tpu.vector_store %arg53[%c0_108, %c0_109], %201 {strides = array<i32>} : memref<8x64xf32, #tpu.memory_space<vmem>>, vector<8x64xf32>,
    %204 = vector.extract_strided_slice %184 {offsets = [0, 2], sizes = [8, 8], strides = [1, 1]} : vector<8x18xf32> to vector<8x8xf32>
    %c0_110 = arith.constant 0 : index
    %c0_111 = arith.constant 0 : index
    %205 = vector.load %arg54[%c0_110, %c0_111] : memref<8x8xf32, #tpu.memory_space<vmem>>, vector<8x8xf32>
    tpu.vector_store %arg54[%c0_110, %c0_111], %204 {strides = array<i32>} : memref<8x8xf32, #tpu.memory_space<vmem>>, vector<8x8xf32>,
    %206 = vector.extract_strided_slice %184 {offsets = [0, 10], sizes = [8, 8], strides = [1, 1]} : vector<8x18xf32> to vector<8x8xf32>
    %c0_112 = arith.constant 0 : index
    %c0_113 = arith.constant 0 : index
    %207 = vector.load %arg55[%c0_112, %c0_113] : memref<8x8xf32, #tpu.memory_space<vmem>>, vector<8x8xf32>
    tpu.vector_store %arg55[%c0_112, %c0_113], %206 {strides = array<i32>} : memref<8x8xf32, #tpu.memory_space<vmem>>, vector<8x8xf32>,
    %c0_114 = arith.constant 0 : index
    %c0_115 = arith.constant 0 : index
    %208 = vector.load %arg16[%c0_114, %c0_115] : memref<8x64xf32, #tpu.memory_space<vmem>>, vector<8x64xf32>
    %c0_116 = arith.constant 0 : index
    %c0_117 = arith.constant 0 : index
    %209 = vector.load %arg23[%c0_116, %c0_117] : memref<8x64xf32, #tpu.memory_space<vmem>>, vector<8x64xf32>
    %cst_118 = arith.constant 0.000000e+00 : f32
    %210 = vector.broadcast %cst_118 : f32 to vector<8x64xf32>
    %c0_i32 = arith.constant 0 : i32
    %c8_i32 = arith.constant 8 : i32
    %211 = arith.muli %c0_i32, %c8_i32 : i32
    %212 = tpu.assume_multiple %211, 8 : i32
    %c0_i32_119 = arith.constant 0 : i32
    %213 = arith.subi %c0_i32_119, %c0_i32 : i32
    %c8_i32_120 = arith.constant 8 : i32
    %214 = arith.muli %213, %c8_i32_120 : i32
    %215 = tpu.assume_multiple %214, 8 : i32
    %216 = arith.index_cast %212 : i32 to index
    %c0_121 = arith.constant 0 : index
    %217 = vector.load %arg48[%216, %c0_121] : memref<8x64xf32, #tpu.memory_space<vmem>>, vector<8x64xf32>
    %218 = arith.index_cast %212 : i32 to index
    %c0_122 = arith.constant 0 : index
    %219 = vector.load %arg47[%218, %c0_122] : memref<8x64xf32, #tpu.memory_space<vmem>>, vector<8x64xf32>
    %220 = arith.index_cast %212 : i32 to index
    %c0_123 = arith.constant 0 : index
    %221 = vector.load %arg49[%220, %c0_123] : memref<8x8xf32, #tpu.memory_space<vmem>>, vector<8x8xf32>
    %222 = arith.index_cast %212 : i32 to index
    %c0_124 = arith.constant 0 : index
    %223 = vector.load %arg50[%222, %c0_124] : memref<8x8xf32, #tpu.memory_space<vmem>>, vector<8x8xf32>
    %224 = arith.index_cast %215 : i32 to index
    %c0_125 = arith.constant 0 : index
    %225 = vector.load %arg53[%224, %c0_125] : memref<8x64xf32, #tpu.memory_space<vmem>>, vector<8x64xf32>
    %226 = arith.index_cast %215 : i32 to index
    %c0_126 = arith.constant 0 : index
    %227 = vector.load %arg52[%226, %c0_126] : memref<8x64xf32, #tpu.memory_space<vmem>>, vector<8x64xf32>
    %228 = arith.index_cast %215 : i32 to index
    %c0_127 = arith.constant 0 : index
    %229 = vector.load %arg54[%228, %c0_127] : memref<8x8xf32, #tpu.memory_space<vmem>>, vector<8x8xf32>
    %230 = arith.index_cast %215 : i32 to index
    %c0_128 = arith.constant 0 : index
    %231 = vector.load %arg55[%230, %c0_128] : memref<8x8xf32, #tpu.memory_space<vmem>>, vector<8x8xf32>
    %232 = vector.shape_cast %217 : vector<8x64xf32> to vector<8x1x64xf32>
    %233 = vector.shape_cast %208 : vector<8x64xf32> to vector<1x8x64xf32>
    %234 = vector.broadcast %232 : vector<8x1x64xf32> to vector<8x8x64xf32>
    %235 = vector.broadcast %233 : vector<1x8x64xf32> to vector<8x8x64xf32>
    %236 = arith.mulf %234, %235 : vector<8x8x64xf32>
    %237 = math.exp %236 : vector<8x8x64xf32>
    %238 = vector.shape_cast %217 : vector<8x64xf32> to vector<8x1x64xf32>
    %239 = vector.shape_cast %221 : vector<8x8xf32> to vector<8x8x1xf32>
    %240 = vector.broadcast %238 : vector<8x1x64xf32> to vector<8x8x64xf32>
    %241 = vector.broadcast %239 : vector<8x8x1xf32> to vector<8x8x64xf32>
    %242 = arith.mulf %240, %241 : vector<8x8x64xf32>
    %243 = vector.shape_cast %219 : vector<8x64xf32> to vector<8x1x64xf32>
    %244 = vector.broadcast %243 : vector<8x1x64xf32> to vector<8x8x64xf32>
    %245 = arith.mulf %242, %244 : vector<8x8x64xf32>
    %246 = vector.shape_cast %225 : vector<8x64xf32> to vector<8x1x64xf32>
    %247 = vector.shape_cast %209 : vector<8x64xf32> to vector<1x8x64xf32>
    %248 = vector.broadcast %246 : vector<8x1x64xf32> to vector<8x8x64xf32>
    %249 = vector.broadcast %247 : vector<1x8x64xf32> to vector<8x8x64xf32>
    %250 = arith.mulf %248, %249 : vector<8x8x64xf32>
    %251 = math.exp %250 : vector<8x8x64xf32>
    %252 = vector.shape_cast %225 : vector<8x64xf32> to vector<8x1x64xf32>
    %253 = vector.shape_cast %229 : vector<8x8xf32> to vector<8x8x1xf32>
    %254 = vector.broadcast %252 : vector<8x1x64xf32> to vector<8x8x64xf32>
    %255 = vector.broadcast %253 : vector<8x8x1xf32> to vector<8x8x64xf32>
    %256 = arith.mulf %254, %255 : vector<8x8x64xf32>
    %257 = vector.shape_cast %227 : vector<8x64xf32> to vector<8x1x64xf32>
    %258 = vector.broadcast %257 : vector<8x1x64xf32> to vector<8x8x64xf32>
    %259 = arith.mulf %256, %258 : vector<8x8x64xf32>
    %260 = vector.extract_strided_slice %237 {offsets = [0, 0, 0], sizes = [1, 8, 64], strides = [1, 1, 1]} : vector<8x8x64xf32> to vector<1x8x64xf32>
    %261 = vector.shape_cast %260 : vector<1x8x64xf32> to vector<8x64xf32>
    %262 = arith.mulf %261, %210 : vector<8x64xf32>
    %263 = vector.extract_strided_slice %245 {offsets = [0, 0, 0], sizes = [1, 8, 64], strides = [1, 1, 1]} : vector<8x8x64xf32> to vector<1x8x64xf32>
    %264 = vector.shape_cast %263 : vector<1x8x64xf32> to vector<8x64xf32>
    %265 = arith.addf %262, %264 : vector<8x64xf32>
    %266 = vector.extract_strided_slice %223 {offsets = [0, 0], sizes = [1, 8], strides = [1, 1]} : vector<8x8xf32> to vector<1x8xf32>
    %267 = vector.shape_cast %266 : vector<1x8xf32> to vector<8xf32>
    %268 = vector.shape_cast %267 : vector<8xf32> to vector<8x1xf32>
    %269 = vector.broadcast %268 : vector<8x1xf32> to vector<8x64xf32>
    %270 = arith.mulf %269, %265 : vector<8x64xf32>
    %cst_129 = arith.constant dense<0.000000e+00> : vector<64xf32>
    %271 = vector.multi_reduction <add>, %270, %cst_129 [0] : vector<8x64xf32> to vector<64xf32>
    %272 = vector.shape_cast %271 : vector<64xf32> to vector<1x64xf32>
    %273 = vector.extract_strided_slice %251 {offsets = [7, 0, 0], sizes = [1, 8, 64], strides = [1, 1, 1]} : vector<8x8x64xf32> to vector<1x8x64xf32>
    %274 = vector.shape_cast %273 : vector<1x8x64xf32> to vector<8x64xf32>
    %275 = arith.mulf %274, %210 : vector<8x64xf32>
    %276 = vector.extract_strided_slice %259 {offsets = [7, 0, 0], sizes = [1, 8, 64], strides = [1, 1, 1]} : vector<8x8x64xf32> to vector<1x8x64xf32>
    %277 = vector.shape_cast %276 : vector<1x8x64xf32> to vector<8x64xf32>
    %278 = arith.addf %275, %277 : vector<8x64xf32>
    %279 = vector.extract_strided_slice %231 {offsets = [7, 0], sizes = [1, 8], strides = [1, 1]} : vector<8x8xf32> to vector<1x8xf32>
    %280 = vector.shape_cast %279 : vector<1x8xf32> to vector<8xf32>
    %281 = vector.shape_cast %280 : vector<8xf32> to vector<8x1xf32>
    %282 = vector.broadcast %281 : vector<8x1xf32> to vector<8x64xf32>
    %283 = arith.mulf %282, %278 : vector<8x64xf32>
    %cst_130 = arith.constant dense<0.000000e+00> : vector<64xf32>
    %284 = vector.multi_reduction <add>, %283, %cst_130 [0] : vector<8x64xf32> to vector<64xf32>
    %285 = vector.shape_cast %284 : vector<64xf32> to vector<1x64xf32>
    %286 = vector.extract_strided_slice %237 {offsets = [1, 0, 0], sizes = [1, 8, 64], strides = [1, 1, 1]} : vector<8x8x64xf32> to vector<1x8x64xf32>
    %287 = vector.shape_cast %286 : vector<1x8x64xf32> to vector<8x64xf32>
    %288 = arith.mulf %287, %265 : vector<8x64xf32>
    %289 = vector.extract_strided_slice %245 {offsets = [1, 0, 0], sizes = [1, 8, 64], strides = [1, 1, 1]} : vector<8x8x64xf32> to vector<1x8x64xf32>
    %290 = vector.shape_cast %289 : vector<1x8x64xf32> to vector<8x64xf32>
    %291 = arith.addf %288, %290 : vector<8x64xf32>
    %292 = vector.extract_strided_slice %223 {offsets = [1, 0], sizes = [1, 8], strides = [1, 1]} : vector<8x8xf32> to vector<1x8xf32>
    %293 = vector.shape_cast %292 : vector<1x8xf32> to vector<8xf32>
    %294 = vector.shape_cast %293 : vector<8xf32> to vector<8x1xf32>
    %295 = vector.broadcast %294 : vector<8x1xf32> to vector<8x64xf32>
    %296 = arith.mulf %295, %291 : vector<8x64xf32>
    %cst_131 = arith.constant dense<0.000000e+00> : vector<64xf32>
    %297 = vector.multi_reduction <add>, %296, %cst_131 [0] : vector<8x64xf32> to vector<64xf32>
    %298 = vector.shape_cast %297 : vector<64xf32> to vector<1x64xf32>
    %299 = vector.extract_strided_slice %251 {offsets = [6, 0, 0], sizes = [1, 8, 64], strides = [1, 1, 1]} : vector<8x8x64xf32> to vector<1x8x64xf32>
    %300 = vector.shape_cast %299 : vector<1x8x64xf32> to vector<8x64xf32>
    %301 = arith.mulf %300, %278 : vector<8x64xf32>
    %302 = vector.extract_strided_slice %259 {offsets = [6, 0, 0], sizes = [1, 8, 64], strides = [1, 1, 1]} : vector<8x8x64xf32> to vector<1x8x64xf32>
    %303 = vector.shape_cast %302 : vector<1x8x64xf32> to vector<8x64xf32>
    %304 = arith.addf %301, %303 : vector<8x64xf32>
    %305 = vector.extract_strided_slice %231 {offsets = [6, 0], sizes = [1, 8], strides = [1, 1]} : vector<8x8xf32> to vector<1x8xf32>
    %306 = vector.shape_cast %305 : vector<1x8xf32> to vector<8xf32>
    %307 = vector.shape_cast %306 : vector<8xf32> to vector<8x1xf32>
    %308 = vector.broadcast %307 : vector<8x1xf32> to vector<8x64xf32>
    %309 = arith.mulf %308, %304 : vector<8x64xf32>
    %cst_132 = arith.constant dense<0.000000e+00> : vector<64xf32>
    %310 = vector.multi_reduction <add>, %309, %cst_132 [0] : vector<8x64xf32> to vector<64xf32>
    %311 = vector.shape_cast %310 : vector<64xf32> to vector<1x64xf32>
    %312 = vector.extract_strided_slice %237 {offsets = [2, 0, 0], sizes = [1, 8, 64], strides = [1, 1, 1]} : vector<8x8x64xf32> to vector<1x8x64xf32>
    %313 = vector.shape_cast %312 : vector<1x8x64xf32> to vector<8x64xf32>
    %314 = arith.mulf %313, %291 : vector<8x64xf32>
    %315 = vector.extract_strided_slice %245 {offsets = [2, 0, 0], sizes = [1, 8, 64], strides = [1, 1, 1]} : vector<8x8x64xf32> to vector<1x8x64xf32>
    %316 = vector.shape_cast %315 : vector<1x8x64xf32> to vector<8x64xf32>
    %317 = arith.addf %314, %316 : vector<8x64xf32>
    %318 = vector.extract_strided_slice %223 {offsets = [2, 0], sizes = [1, 8], strides = [1, 1]} : vector<8x8xf32> to vector<1x8xf32>
    %319 = vector.shape_cast %318 : vector<1x8xf32> to vector<8xf32>
    %320 = vector.shape_cast %319 : vector<8xf32> to vector<8x1xf32>
    %321 = vector.broadcast %320 : vector<8x1xf32> to vector<8x64xf32>
    %322 = arith.mulf %321, %317 : vector<8x64xf32>
    %cst_133 = arith.constant dense<0.000000e+00> : vector<64xf32>
    %323 = vector.multi_reduction <add>, %322, %cst_133 [0] : vector<8x64xf32> to vector<64xf32>
    %324 = vector.shape_cast %323 : vector<64xf32> to vector<1x64xf32>
    %325 = vector.extract_strided_slice %251 {offsets = [5, 0, 0], sizes = [1, 8, 64], strides = [1, 1, 1]} : vector<8x8x64xf32> to vector<1x8x64xf32>
    %326 = vector.shape_cast %325 : vector<1x8x64xf32> to vector<8x64xf32>
    %327 = arith.mulf %326, %304 : vector<8x64xf32>
    %328 = vector.extract_strided_slice %259 {offsets = [5, 0, 0], sizes = [1, 8, 64], strides = [1, 1, 1]} : vector<8x8x64xf32> to vector<1x8x64xf32>
    %329 = vector.shape_cast %328 : vector<1x8x64xf32> to vector<8x64xf32>
    %330 = arith.addf %327, %329 : vector<8x64xf32>
    %331 = vector.extract_strided_slice %231 {offsets = [5, 0], sizes = [1, 8], strides = [1, 1]} : vector<8x8xf32> to vector<1x8xf32>
    %332 = vector.shape_cast %331 : vector<1x8xf32> to vector<8xf32>
    %333 = vector.shape_cast %332 : vector<8xf32> to vector<8x1xf32>
    %334 = vector.broadcast %333 : vector<8x1xf32> to vector<8x64xf32>
    %335 = arith.mulf %334, %330 : vector<8x64xf32>
    %cst_134 = arith.constant dense<0.000000e+00> : vector<64xf32>
    %336 = vector.multi_reduction <add>, %335, %cst_134 [0] : vector<8x64xf32> to vector<64xf32>
    %337 = vector.shape_cast %336 : vector<64xf32> to vector<1x64xf32>
    %338 = vector.extract_strided_slice %237 {offsets = [3, 0, 0], sizes = [1, 8, 64], strides = [1, 1, 1]} : vector<8x8x64xf32> to vector<1x8x64xf32>
    %339 = vector.shape_cast %338 : vector<1x8x64xf32> to vector<8x64xf32>
    %340 = arith.mulf %339, %317 : vector<8x64xf32>
    %341 = vector.extract_strided_slice %245 {offsets = [3, 0, 0], sizes = [1, 8, 64], strides = [1, 1, 1]} : vector<8x8x64xf32> to vector<1x8x64xf32>
    %342 = vector.shape_cast %341 : vector<1x8x64xf32> to vector<8x64xf32>
    %343 = arith.addf %340, %342 : vector<8x64xf32>
    %344 = vector.extract_strided_slice %223 {offsets = [3, 0], sizes = [1, 8], strides = [1, 1]} : vector<8x8xf32> to vector<1x8xf32>
    %345 = vector.shape_cast %344 : vector<1x8xf32> to vector<8xf32>
    %346 = vector.shape_cast %345 : vector<8xf32> to vector<8x1xf32>
    %347 = vector.broadcast %346 : vector<8x1xf32> to vector<8x64xf32>
    %348 = arith.mulf %347, %343 : vector<8x64xf32>
    %cst_135 = arith.constant dense<0.000000e+00> : vector<64xf32>
    %349 = vector.multi_reduction <add>, %348, %cst_135 [0] : vector<8x64xf32> to vector<64xf32>
    %350 = vector.shape_cast %349 : vector<64xf32> to vector<1x64xf32>
    %351 = vector.extract_strided_slice %251 {offsets = [4, 0, 0], sizes = [1, 8, 64], strides = [1, 1, 1]} : vector<8x8x64xf32> to vector<1x8x64xf32>
    %352 = vector.shape_cast %351 : vector<1x8x64xf32> to vector<8x64xf32>
    %353 = arith.mulf %352, %330 : vector<8x64xf32>
    %354 = vector.extract_strided_slice %259 {offsets = [4, 0, 0], sizes = [1, 8, 64], strides = [1, 1, 1]} : vector<8x8x64xf32> to vector<1x8x64xf32>
    %355 = vector.shape_cast %354 : vector<1x8x64xf32> to vector<8x64xf32>
    %356 = arith.addf %353, %355 : vector<8x64xf32>
    %357 = vector.extract_strided_slice %231 {offsets = [4, 0], sizes = [1, 8], strides = [1, 1]} : vector<8x8xf32> to vector<1x8xf32>
    %358 = vector.shape_cast %357 : vector<1x8xf32> to vector<8xf32>
    %359 = vector.shape_cast %358 : vector<8xf32> to vector<8x1xf32>
    %360 = vector.broadcast %359 : vector<8x1xf32> to vector<8x64xf32>
    %361 = arith.mulf %360, %356 : vector<8x64xf32>
    %cst_136 = arith.constant dense<0.000000e+00> : vector<64xf32>
    %362 = vector.multi_reduction <add>, %361, %cst_136 [0] : vector<8x64xf32> to vector<64xf32>
    %363 = vector.shape_cast %362 : vector<64xf32> to vector<1x64xf32>
    %364 = vector.extract_strided_slice %237 {offsets = [4, 0, 0], sizes = [1, 8, 64], strides = [1, 1, 1]} : vector<8x8x64xf32> to vector<1x8x64xf32>
    %365 = vector.shape_cast %364 : vector<1x8x64xf32> to vector<8x64xf32>
    %366 = arith.mulf %365, %343 : vector<8x64xf32>
    %367 = vector.extract_strided_slice %245 {offsets = [4, 0, 0], sizes = [1, 8, 64], strides = [1, 1, 1]} : vector<8x8x64xf32> to vector<1x8x64xf32>
    %368 = vector.shape_cast %367 : vector<1x8x64xf32> to vector<8x64xf32>
    %369 = arith.addf %366, %368 : vector<8x64xf32>
    %370 = vector.extract_strided_slice %223 {offsets = [4, 0], sizes = [1, 8], strides = [1, 1]} : vector<8x8xf32> to vector<1x8xf32>
    %371 = vector.shape_cast %370 : vector<1x8xf32> to vector<8xf32>
    %372 = vector.shape_cast %371 : vector<8xf32> to vector<8x1xf32>
    %373 = vector.broadcast %372 : vector<8x1xf32> to vector<8x64xf32>
    %374 = arith.mulf %373, %369 : vector<8x64xf32>
    %cst_137 = arith.constant dense<0.000000e+00> : vector<64xf32>
    %375 = vector.multi_reduction <add>, %374, %cst_137 [0] : vector<8x64xf32> to vector<64xf32>
    %376 = vector.shape_cast %375 : vector<64xf32> to vector<1x64xf32>
    %377 = vector.extract_strided_slice %251 {offsets = [3, 0, 0], sizes = [1, 8, 64], strides = [1, 1, 1]} : vector<8x8x64xf32> to vector<1x8x64xf32>
    %378 = vector.shape_cast %377 : vector<1x8x64xf32> to vector<8x64xf32>
    %379 = arith.mulf %378, %356 : vector<8x64xf32>
    %380 = vector.extract_strided_slice %259 {offsets = [3, 0, 0], sizes = [1, 8, 64], strides = [1, 1, 1]} : vector<8x8x64xf32> to vector<1x8x64xf32>
    %381 = vector.shape_cast %380 : vector<1x8x64xf32> to vector<8x64xf32>
    %382 = arith.addf %379, %381 : vector<8x64xf32>
    %383 = vector.extract_strided_slice %231 {offsets = [3, 0], sizes = [1, 8], strides = [1, 1]} : vector<8x8xf32> to vector<1x8xf32>
    %384 = vector.shape_cast %383 : vector<1x8xf32> to vector<8xf32>
    %385 = vector.shape_cast %384 : vector<8xf32> to vector<8x1xf32>
    %386 = vector.broadcast %385 : vector<8x1xf32> to vector<8x64xf32>
    %387 = arith.mulf %386, %382 : vector<8x64xf32>
    %cst_138 = arith.constant dense<0.000000e+00> : vector<64xf32>
    %388 = vector.multi_reduction <add>, %387, %cst_138 [0] : vector<8x64xf32> to vector<64xf32>
    %389 = vector.shape_cast %388 : vector<64xf32> to vector<1x64xf32>
    %390 = vector.extract_strided_slice %237 {offsets = [5, 0, 0], sizes = [1, 8, 64], strides = [1, 1, 1]} : vector<8x8x64xf32> to vector<1x8x64xf32>
    %391 = vector.shape_cast %390 : vector<1x8x64xf32> to vector<8x64xf32>
    %392 = arith.mulf %391, %369 : vector<8x64xf32>
    %393 = vector.extract_strided_slice %245 {offsets = [5, 0, 0], sizes = [1, 8, 64], strides = [1, 1, 1]} : vector<8x8x64xf32> to vector<1x8x64xf32>
    %394 = vector.shape_cast %393 : vector<1x8x64xf32> to vector<8x64xf32>
    %395 = arith.addf %392, %394 : vector<8x64xf32>
    %396 = vector.extract_strided_slice %223 {offsets = [5, 0], sizes = [1, 8], strides = [1, 1]} : vector<8x8xf32> to vector<1x8xf32>
    %397 = vector.shape_cast %396 : vector<1x8xf32> to vector<8xf32>
    %398 = vector.shape_cast %397 : vector<8xf32> to vector<8x1xf32>
    %399 = vector.broadcast %398 : vector<8x1xf32> to vector<8x64xf32>
    %400 = arith.mulf %399, %395 : vector<8x64xf32>
    %cst_139 = arith.constant dense<0.000000e+00> : vector<64xf32>
    %401 = vector.multi_reduction <add>, %400, %cst_139 [0] : vector<8x64xf32> to vector<64xf32>
    %402 = vector.shape_cast %401 : vector<64xf32> to vector<1x64xf32>
    %403 = vector.extract_strided_slice %251 {offsets = [2, 0, 0], sizes = [1, 8, 64], strides = [1, 1, 1]} : vector<8x8x64xf32> to vector<1x8x64xf32>
    %404 = vector.shape_cast %403 : vector<1x8x64xf32> to vector<8x64xf32>
    %405 = arith.mulf %404, %382 : vector<8x64xf32>
    %406 = vector.extract_strided_slice %259 {offsets = [2, 0, 0], sizes = [1, 8, 64], strides = [1, 1, 1]} : vector<8x8x64xf32> to vector<1x8x64xf32>
    %407 = vector.shape_cast %406 : vector<1x8x64xf32> to vector<8x64xf32>
    %408 = arith.addf %405, %407 : vector<8x64xf32>
    %409 = vector.extract_strided_slice %231 {offsets = [2, 0], sizes = [1, 8], strides = [1, 1]} : vector<8x8xf32> to vector<1x8xf32>
    %410 = vector.shape_cast %409 : vector<1x8xf32> to vector<8xf32>
    %411 = vector.shape_cast %410 : vector<8xf32> to vector<8x1xf32>
    %412 = vector.broadcast %411 : vector<8x1xf32> to vector<8x64xf32>
    %413 = arith.mulf %412, %408 : vector<8x64xf32>
    %cst_140 = arith.constant dense<0.000000e+00> : vector<64xf32>
    %414 = vector.multi_reduction <add>, %413, %cst_140 [0] : vector<8x64xf32> to vector<64xf32>
    %415 = vector.shape_cast %414 : vector<64xf32> to vector<1x64xf32>
    %416 = vector.extract_strided_slice %237 {offsets = [6, 0, 0], sizes = [1, 8, 64], strides = [1, 1, 1]} : vector<8x8x64xf32> to vector<1x8x64xf32>
    %417 = vector.shape_cast %416 : vector<1x8x64xf32> to vector<8x64xf32>
    %418 = arith.mulf %417, %395 : vector<8x64xf32>
    %419 = vector.extract_strided_slice %245 {offsets = [6, 0, 0], sizes = [1, 8, 64], strides = [1, 1, 1]} : vector<8x8x64xf32> to vector<1x8x64xf32>
    %420 = vector.shape_cast %419 : vector<1x8x64xf32> to vector<8x64xf32>
    %421 = arith.addf %418, %420 : vector<8x64xf32>
    %422 = vector.extract_strided_slice %223 {offsets = [6, 0], sizes = [1, 8], strides = [1, 1]} : vector<8x8xf32> to vector<1x8xf32>
    %423 = vector.shape_cast %422 : vector<1x8xf32> to vector<8xf32>
    %424 = vector.shape_cast %423 : vector<8xf32> to vector<8x1xf32>
    %425 = vector.broadcast %424 : vector<8x1xf32> to vector<8x64xf32>
    %426 = arith.mulf %425, %421 : vector<8x64xf32>
    %cst_141 = arith.constant dense<0.000000e+00> : vector<64xf32>
    %427 = vector.multi_reduction <add>, %426, %cst_141 [0] : vector<8x64xf32> to vector<64xf32>
    %428 = vector.shape_cast %427 : vector<64xf32> to vector<1x64xf32>
    %429 = vector.extract_strided_slice %251 {offsets = [1, 0, 0], sizes = [1, 8, 64], strides = [1, 1, 1]} : vector<8x8x64xf32> to vector<1x8x64xf32>
    %430 = vector.shape_cast %429 : vector<1x8x64xf32> to vector<8x64xf32>
    %431 = arith.mulf %430, %408 : vector<8x64xf32>
    %432 = vector.extract_strided_slice %259 {offsets = [1, 0, 0], sizes = [1, 8, 64], strides = [1, 1, 1]} : vector<8x8x64xf32> to vector<1x8x64xf32>
    %433 = vector.shape_cast %432 : vector<1x8x64xf32> to vector<8x64xf32>
    %434 = arith.addf %431, %433 : vector<8x64xf32>
    %435 = vector.extract_strided_slice %231 {offsets = [1, 0], sizes = [1, 8], strides = [1, 1]} : vector<8x8xf32> to vector<1x8xf32>
    %436 = vector.shape_cast %435 : vector<1x8xf32> to vector<8xf32>
    %437 = vector.shape_cast %436 : vector<8xf32> to vector<8x1xf32>
    %438 = vector.broadcast %437 : vector<8x1xf32> to vector<8x64xf32>
    %439 = arith.mulf %438, %434 : vector<8x64xf32>
    %cst_142 = arith.constant dense<0.000000e+00> : vector<64xf32>
    %440 = vector.multi_reduction <add>, %439, %cst_142 [0] : vector<8x64xf32> to vector<64xf32>
    %441 = vector.shape_cast %440 : vector<64xf32> to vector<1x64xf32>
    %442 = vector.extract_strided_slice %237 {offsets = [7, 0, 0], sizes = [1, 8, 64], strides = [1, 1, 1]} : vector<8x8x64xf32> to vector<1x8x64xf32>
    %443 = vector.shape_cast %442 : vector<1x8x64xf32> to vector<8x64xf32>
    %444 = arith.mulf %443, %421 : vector<8x64xf32>
    %445 = vector.extract_strided_slice %245 {offsets = [7, 0, 0], sizes = [1, 8, 64], strides = [1, 1, 1]} : vector<8x8x64xf32> to vector<1x8x64xf32>
    %446 = vector.shape_cast %445 : vector<1x8x64xf32> to vector<8x64xf32>
    %447 = arith.addf %444, %446 : vector<8x64xf32>
    %448 = vector.extract_strided_slice %223 {offsets = [7, 0], sizes = [1, 8], strides = [1, 1]} : vector<8x8xf32> to vector<1x8xf32>
    %449 = vector.shape_cast %448 : vector<1x8xf32> to vector<8xf32>
    %450 = vector.shape_cast %449 : vector<8xf32> to vector<8x1xf32>
    %451 = vector.broadcast %450 : vector<8x1xf32> to vector<8x64xf32>
    %452 = arith.mulf %451, %447 : vector<8x64xf32>
    %cst_143 = arith.constant dense<0.000000e+00> : vector<64xf32>
    %453 = vector.multi_reduction <add>, %452, %cst_143 [0] : vector<8x64xf32> to vector<64xf32>
    %454 = vector.shape_cast %453 : vector<64xf32> to vector<1x64xf32>
    %455 = vector.extract_strided_slice %251 {offsets = [0, 0, 0], sizes = [1, 8, 64], strides = [1, 1, 1]} : vector<8x8x64xf32> to vector<1x8x64xf32>
    %456 = vector.shape_cast %455 : vector<1x8x64xf32> to vector<8x64xf32>
    %457 = arith.mulf %456, %434 : vector<8x64xf32>
    %458 = vector.extract_strided_slice %259 {offsets = [0, 0, 0], sizes = [1, 8, 64], strides = [1, 1, 1]} : vector<8x8x64xf32> to vector<1x8x64xf32>
    %459 = vector.shape_cast %458 : vector<1x8x64xf32> to vector<8x64xf32>
    %460 = arith.addf %457, %459 : vector<8x64xf32>
    %461 = vector.extract_strided_slice %231 {offsets = [0, 0], sizes = [1, 8], strides = [1, 1]} : vector<8x8xf32> to vector<1x8xf32>
    %462 = vector.shape_cast %461 : vector<1x8xf32> to vector<8xf32>
    %463 = vector.shape_cast %462 : vector<8xf32> to vector<8x1xf32>
    %464 = vector.broadcast %463 : vector<8x1xf32> to vector<8x64xf32>
    %465 = arith.mulf %464, %460 : vector<8x64xf32>
    %cst_144 = arith.constant dense<0.000000e+00> : vector<64xf32>
    %466 = vector.multi_reduction <add>, %465, %cst_144 [0] : vector<8x64xf32> to vector<64xf32>
    %467 = vector.shape_cast %466 : vector<64xf32> to vector<1x64xf32>
    %468 = tpu.concatenate %272, %298, %324, %350, %376, %402, %428, %454 in 0 : vector<1x64xf32>, vector<1x64xf32>, vector<1x64xf32>, vector<1x64xf32>, vector<1x64xf32>, vector<1x64xf32>, vector<1x64xf32>, vector<1x64xf32> -> vector<8x64xf32>
    %469 = arith.index_cast %212 : i32 to index
    %c0_145 = arith.constant 0 : index
    %470 = vector.load %arg51[%469, %c0_145] : memref<8x64xf32, #tpu.memory_space<vmem>>, vector<8x64xf32>
    tpu.vector_store %arg51[%469, %c0_145], %468 {strides = array<i32>} : memref<8x64xf32, #tpu.memory_space<vmem>>, vector<8x64xf32>,
    %471 = tpu.concatenate %467, %441, %415, %389, %363, %337, %311, %285 in 0 : vector<1x64xf32>, vector<1x64xf32>, vector<1x64xf32>, vector<1x64xf32>, vector<1x64xf32>, vector<1x64xf32>, vector<1x64xf32>, vector<1x64xf32> -> vector<8x64xf32>
    %472 = arith.index_cast %215 : i32 to index
    %c0_146 = arith.constant 0 : index
    %473 = vector.load %arg56[%472, %c0_146] : memref<8x64xf32, #tpu.memory_space<vmem>>, vector<8x64xf32>
    tpu.vector_store %arg56[%472, %c0_146], %471 {strides = array<i32>} : memref<8x64xf32, #tpu.memory_space<vmem>>, vector<8x64xf32>,
    %c1_i32 = arith.constant 1 : i32
    %c0_147 = arith.constant 0 : index
    %c0_148 = arith.constant 0 : index
    %474 = vector.load %arg51[%c0_147, %c0_148] : memref<8x64xf32, #tpu.memory_space<vmem>>, vector<8x64xf32>
    %c0_149 = arith.constant 0 : index
    %c0_150 = arith.constant 0 : index
    %475 = vector.load %arg17[%c0_149, %c0_150] : memref<1x64xf32, #tpu.memory_space<vmem>>, vector<1x64xf32>
    %c0_151 = arith.constant 0 : index
    %c0_152 = arith.constant 0 : index
    %476 = vector.load %arg47[%c0_151, %c0_152] : memref<8x64xf32, #tpu.memory_space<vmem>>, vector<8x64xf32>
    %477 = vector.broadcast %475 : vector<1x64xf32> to vector<8x64xf32>
    %478 = arith.mulf %477, %476 : vector<8x64xf32>
    %479 = arith.addf %474, %478 : vector<8x64xf32>
    %cst_153 = arith.constant 0.000000e+00 : f32
    %480 = vector.broadcast %cst_153 : f32 to vector<8x64xf32>
    %481 = arith.subf %480, %85 : vector<8x64xf32>
    %482 = math.exp %481 : vector<8x64xf32>
    %cst_154 = arith.constant 1.000000e+00 : f32
    %483 = vector.broadcast %cst_154 : f32 to vector<8x64xf32>
    %484 = arith.addf %483, %482 : vector<8x64xf32>
    %cst_155 = arith.constant 1.000000e+00 : f32
    %485 = vector.broadcast %cst_155 : f32 to vector<8x64xf32>
    %486 = arith.divf %485, %484 : vector<8x64xf32>
    %487 = arith.mulf %85, %486 : vector<8x64xf32>
    %488 = arith.mulf %479, %487 : vector<8x64xf32>
    %c0_156 = arith.constant 0 : index
    %c0_157 = arith.constant 0 : index
    %489 = vector.load %arg56[%c0_156, %c0_157] : memref<8x64xf32, #tpu.memory_space<vmem>>, vector<8x64xf32>
    %c0_158 = arith.constant 0 : index
    %c0_159 = arith.constant 0 : index
    %490 = vector.load %arg24[%c0_158, %c0_159] : memref<1x64xf32, #tpu.memory_space<vmem>>, vector<1x64xf32>
    %c0_160 = arith.constant 0 : index
    %c0_161 = arith.constant 0 : index
    %491 = vector.load %arg52[%c0_160, %c0_161] : memref<8x64xf32, #tpu.memory_space<vmem>>, vector<8x64xf32>
    %492 = vector.broadcast %490 : vector<1x64xf32> to vector<8x64xf32>
    %493 = arith.mulf %492, %491 : vector<8x64xf32>
    %494 = arith.addf %489, %493 : vector<8x64xf32>
    %cst_162 = arith.constant 0.000000e+00 : f32
    %495 = vector.broadcast %cst_162 : f32 to vector<8x64xf32>
    %496 = arith.subf %495, %87 : vector<8x64xf32>
    %497 = math.exp %496 : vector<8x64xf32>
    %cst_163 = arith.constant 1.000000e+00 : f32
    %498 = vector.broadcast %cst_163 : f32 to vector<8x64xf32>
    %499 = arith.addf %498, %497 : vector<8x64xf32>
    %cst_164 = arith.constant 1.000000e+00 : f32
    %500 = vector.broadcast %cst_164 : f32 to vector<8x64xf32>
    %501 = arith.divf %500, %499 : vector<8x64xf32>
    %502 = arith.mulf %87, %501 : vector<8x64xf32>
    %503 = arith.mulf %494, %502 : vector<8x64xf32>
    %504 = tpu.concatenate %488, %503 in 1 : vector<8x64xf32>, vector<8x64xf32> -> vector<8x128xf32>
    %c0_165 = arith.constant 0 : index
    %c0_166 = arith.constant 0 : index
    %505 = vector.load %arg25[%c0_165, %c0_166] : memref<128x32xbf16, #tpu.memory_space<vmem>>, vector<128x32xbf16>
    %506 = arith.truncf %504 : vector<8x128xf32> to vector<8x128xbf16>
    %cst_167 = arith.constant dense<0.000000e+00> : vector<8x32xf32>
    %507 = tpu.matmul %506, %505, %cst_167 {dimension_numbers = #tpu.dot_dimension_numbers<[1], [0], [0], [1], [0, 0, 1, 1], [], []>} : vector<8x128xbf16>, vector<128x32xbf16>, vector<8x32xf32> -> vector<8x32xf32>
    %508 = arith.addf %56, %507 : vector<8x32xf32>
    %c0_168 = arith.constant 0 : index
    %c0_169 = arith.constant 0 : index
    %509 = vector.load %arg26[%c0_168, %c0_169] : memref<1x32xf32, #tpu.memory_space<vmem>>, vector<1x32xf32>
    %c0_170 = arith.constant 0 : index
    %c0_171 = arith.constant 0 : index
    %510 = vector.load %arg27[%c0_170, %c0_171] : memref<1x32xf32, #tpu.memory_space<vmem>>, vector<1x32xf32>
    %cst_172 = arith.constant dense<0.000000e+00> : vector<8xf32>
    %511 = vector.multi_reduction <add>, %508, %cst_172 [1] : vector<8x32xf32> to vector<8xf32>
    %512 = vector.shape_cast %511 : vector<8xf32> to vector<8x1xf32>
    %cst_173 = arith.constant 3.200000e+01 : f32
    %513 = vector.broadcast %cst_173 : f32 to vector<8x1xf32>
    %514 = arith.divf %512, %513 : vector<8x1xf32>
    %515 = vector.broadcast %514 : vector<8x1xf32> to vector<8x32xf32>
    %516 = arith.subf %508, %515 : vector<8x32xf32>
    %517 = arith.mulf %516, %516 : vector<8x32xf32>
    %cst_174 = arith.constant dense<0.000000e+00> : vector<8xf32>
    %518 = vector.multi_reduction <add>, %517, %cst_174 [1] : vector<8x32xf32> to vector<8xf32>
    %519 = vector.shape_cast %518 : vector<8xf32> to vector<8x1xf32>
    %cst_175 = arith.constant 3.200000e+01 : f32
    %520 = vector.broadcast %cst_175 : f32 to vector<8x1xf32>
    %521 = arith.divf %519, %520 : vector<8x1xf32>
    %522 = vector.broadcast %514 : vector<8x1xf32> to vector<8x32xf32>
    %523 = arith.subf %508, %522 : vector<8x32xf32>
    %cst_176 = arith.constant 9.99999974E-6 : f32
    %524 = vector.broadcast %cst_176 : f32 to vector<8x1xf32>
    %525 = arith.addf %521, %524 : vector<8x1xf32>
    %526 = math.rsqrt %525 : vector<8x1xf32>
    %527 = vector.broadcast %526 : vector<8x1xf32> to vector<8x32xf32>
    %528 = arith.mulf %523, %527 : vector<8x32xf32>
    %529 = vector.broadcast %509 : vector<1x32xf32> to vector<8x32xf32>
    %530 = arith.mulf %528, %529 : vector<8x32xf32>
    %531 = vector.broadcast %510 : vector<1x32xf32> to vector<8x32xf32>
    %532 = arith.addf %530, %531 : vector<8x32xf32>
    %c0_177 = arith.constant 0 : index
    %c0_178 = arith.constant 0 : index
    %533 = vector.load %arg28[%c0_177, %c0_178] : memref<32x128xbf16, #tpu.memory_space<vmem>>, vector<32x128xbf16>
    %534 = arith.truncf %532 : vector<8x32xf32> to vector<8x32xbf16>
    %cst_179 = arith.constant dense<0.000000e+00> : vector<8x128xf32>
    %535 = tpu.matmul %534, %533, %cst_179 {dimension_numbers = #tpu.dot_dimension_numbers<[1], [0], [0], [1], [0, 0, 1, 1], [], []>} : vector<8x32xbf16>, vector<32x128xbf16>, vector<8x128xf32> -> vector<8x128xf32>
    %c0_180 = arith.constant 0 : index
    %c0_181 = arith.constant 0 : index
    %536 = vector.load %arg29[%c0_180, %c0_181] : memref<1x128xf32, #tpu.memory_space<vmem>>, vector<1x128xf32>
    %537 = vector.broadcast %536 : vector<1x128xf32> to vector<8x128xf32>
    %538 = arith.addf %535, %537 : vector<8x128xf32>
    %539 = vector.extract_strided_slice %538 {offsets = [0, 0], sizes = [8, 64], strides = [1, 1]} : vector<8x128xf32> to vector<8x64xf32>
    %540 = vector.extract_strided_slice %538 {offsets = [0, 64], sizes = [8, 64], strides = [1, 1]} : vector<8x128xf32> to vector<8x64xf32>
    %cst_182 = arith.constant 0.000000e+00 : f32
    %541 = vector.broadcast %cst_182 : f32 to vector<8x64xf32>
    %542 = arith.subf %541, %540 : vector<8x64xf32>
    %543 = math.exp %542 : vector<8x64xf32>
    %cst_183 = arith.constant 1.000000e+00 : f32
    %544 = vector.broadcast %cst_183 : f32 to vector<8x64xf32>
    %545 = arith.addf %544, %543 : vector<8x64xf32>
    %cst_184 = arith.constant 1.000000e+00 : f32
    %546 = vector.broadcast %cst_184 : f32 to vector<8x64xf32>
    %547 = arith.divf %546, %545 : vector<8x64xf32>
    %548 = arith.mulf %539, %547 : vector<8x64xf32>
    %c8_185 = arith.constant 8 : index
    %c0_186 = arith.constant 0 : index
    %549 = vector.load %arg46[%c8_185, %c0_186] : memref<24x64xf32, #tpu.memory_space<vmem>>, vector<8x64xf32>
    tpu.vector_store %arg46[%c8_185, %c0_186], %548 {strides = array<i32>} : memref<24x64xf32, #tpu.memory_space<vmem>>, vector<8x64xf32>,
    %c0_187 = arith.constant 0 : index
    %c0_188 = arith.constant 0 : index
    %550 = vector.load %arg30[%c0_187, %c0_188] : memref<3x64xf32, #tpu.memory_space<vmem>>, vector<3x64xf32>
    %cst_189 = arith.constant 0.000000e+00 : f32
    %551 = vector.broadcast %cst_189 : f32 to vector<8x64xf32>
    %552 = vector.extract_strided_slice %550 {offsets = [0, 0], sizes = [1, 64], strides = [1, 1]} : vector<3x64xf32> to vector<1x64xf32>
    %c7_190 = arith.constant 7 : index
    %c0_191 = arith.constant 0 : index
    %553 = vector.load %arg46[%c7_190, %c0_191] : memref<24x64xf32, #tpu.memory_space<vmem>>, vector<8x64xf32>
    %554 = vector.broadcast %552 : vector<1x64xf32> to vector<8x64xf32>
    %555 = arith.mulf %554, %553 : vector<8x64xf32>
    %556 = arith.addf %551, %555 : vector<8x64xf32>
    %557 = vector.extract_strided_slice %550 {offsets = [1, 0], sizes = [1, 64], strides = [1, 1]} : vector<3x64xf32> to vector<1x64xf32>
    %c8_192 = arith.constant 8 : index
    %c0_193 = arith.constant 0 : index
    %558 = vector.load %arg46[%c8_192, %c0_193] : memref<24x64xf32, #tpu.memory_space<vmem>>, vector<8x64xf32>
    %559 = vector.broadcast %557 : vector<1x64xf32> to vector<8x64xf32>
    %560 = arith.mulf %559, %558 : vector<8x64xf32>
    %561 = arith.addf %556, %560 : vector<8x64xf32>
    %562 = vector.extract_strided_slice %550 {offsets = [2, 0], sizes = [1, 64], strides = [1, 1]} : vector<3x64xf32> to vector<1x64xf32>
    %c9_194 = arith.constant 9 : index
    %c0_195 = arith.constant 0 : index
    %563 = vector.load %arg46[%c9_194, %c0_195] : memref<24x64xf32, #tpu.memory_space<vmem>>, vector<8x64xf32>
    %564 = vector.broadcast %562 : vector<1x64xf32> to vector<8x64xf32>
    %565 = arith.mulf %564, %563 : vector<8x64xf32>
    %566 = arith.addf %561, %565 : vector<8x64xf32>
    %c0_196 = arith.constant 0 : index
    %c0_197 = arith.constant 0 : index
    %567 = vector.load %arg31[%c0_196, %c0_197] : memref<1x64xf32, #tpu.memory_space<vmem>>, vector<1x64xf32>
    %568 = vector.broadcast %567 : vector<1x64xf32> to vector<8x64xf32>
    %569 = arith.addf %566, %568 : vector<8x64xf32>
    %c0_198 = arith.constant 0 : index
    %c0_199 = arith.constant 0 : index
    %570 = vector.load %arg32[%c0_198, %c0_199] : memref<1x64xf32, #tpu.memory_space<vmem>>, vector<1x64xf32>
    %571 = vector.broadcast %570 : vector<1x64xf32> to vector<8x64xf32>
    %572 = arith.mulf %569, %571 : vector<8x64xf32>
    %c0_200 = arith.constant 0 : index
    %c0_201 = arith.constant 0 : index
    %573 = vector.load %arg33[%c0_200, %c0_201] : memref<1x64xf32, #tpu.memory_space<vmem>>, vector<1x64xf32>
    %574 = vector.broadcast %573 : vector<1x64xf32> to vector<8x64xf32>
    %575 = arith.addf %572, %574 : vector<8x64xf32>
    %cst_202 = arith.constant 0.000000e+00 : f32
    %576 = vector.broadcast %cst_202 : f32 to vector<8x64xf32>
    %577 = arith.subf %576, %575 : vector<8x64xf32>
    %578 = math.exp %577 : vector<8x64xf32>
    %cst_203 = arith.constant 1.000000e+00 : f32
    %579 = vector.broadcast %cst_203 : f32 to vector<8x64xf32>
    %580 = arith.addf %579, %578 : vector<8x64xf32>
    %cst_204 = arith.constant 1.000000e+00 : f32
    %581 = vector.broadcast %cst_204 : f32 to vector<8x64xf32>
    %582 = arith.divf %581, %580 : vector<8x64xf32>
    %583 = arith.mulf %575, %582 : vector<8x64xf32>
    %c0_205 = arith.constant 0 : index
    %c0_206 = arith.constant 0 : index
    %584 = vector.load %arg34[%c0_205, %c0_206] : memref<64x32xbf16, #tpu.memory_space<vmem>>, vector<64x32xbf16>
    %585 = arith.truncf %583 : vector<8x64xf32> to vector<8x64xbf16>
    %cst_207 = arith.constant dense<0.000000e+00> : vector<8x32xf32>
    %586 = tpu.matmul %585, %584, %cst_207 {dimension_numbers = #tpu.dot_dimension_numbers<[1], [0], [0], [1], [0, 0, 1, 1], [], []>} : vector<8x64xbf16>, vector<64x32xbf16>, vector<8x32xf32> -> vector<8x32xf32>
    %c0_208 = arith.constant 0 : index
    %c0_209 = arith.constant 0 : index
    %587 = vector.load %arg35[%c0_208, %c0_209] : memref<1x32xf32, #tpu.memory_space<vmem>>, vector<1x32xf32>
    %588 = vector.broadcast %587 : vector<1x32xf32> to vector<8x32xf32>
    %589 = arith.addf %586, %588 : vector<8x32xf32>
    %590 = arith.addf %508, %589 : vector<8x32xf32>
    %c0_210 = arith.constant 0 : index
    %c0_211 = arith.constant 0 : index
    %591 = vector.load %arg36[%c0_210, %c0_211] : memref<1x32xf32, #tpu.memory_space<vmem>>, vector<1x32xf32>
    %c0_212 = arith.constant 0 : index
    %c0_213 = arith.constant 0 : index
    %592 = vector.load %arg37[%c0_212, %c0_213] : memref<1x32xf32, #tpu.memory_space<vmem>>, vector<1x32xf32>
    %cst_214 = arith.constant dense<0.000000e+00> : vector<8xf32>
    %593 = vector.multi_reduction <add>, %590, %cst_214 [1] : vector<8x32xf32> to vector<8xf32>
    %594 = vector.shape_cast %593 : vector<8xf32> to vector<8x1xf32>
    %cst_215 = arith.constant 3.200000e+01 : f32
    %595 = vector.broadcast %cst_215 : f32 to vector<8x1xf32>
    %596 = arith.divf %594, %595 : vector<8x1xf32>
    %597 = vector.broadcast %596 : vector<8x1xf32> to vector<8x32xf32>
    %598 = arith.subf %590, %597 : vector<8x32xf32>
    %599 = arith.mulf %598, %598 : vector<8x32xf32>
    %cst_216 = arith.constant dense<0.000000e+00> : vector<8xf32>
    %600 = vector.multi_reduction <add>, %599, %cst_216 [1] : vector<8x32xf32> to vector<8xf32>
    %601 = vector.shape_cast %600 : vector<8xf32> to vector<8x1xf32>
    %cst_217 = arith.constant 3.200000e+01 : f32
    %602 = vector.broadcast %cst_217 : f32 to vector<8x1xf32>
    %603 = arith.divf %601, %602 : vector<8x1xf32>
    %604 = vector.broadcast %596 : vector<8x1xf32> to vector<8x32xf32>
    %605 = arith.subf %590, %604 : vector<8x32xf32>
    %cst_218 = arith.constant 9.99999974E-6 : f32
    %606 = vector.broadcast %cst_218 : f32 to vector<8x1xf32>
    %607 = arith.addf %603, %606 : vector<8x1xf32>
    %608 = math.rsqrt %607 : vector<8x1xf32>
    %609 = vector.broadcast %608 : vector<8x1xf32> to vector<8x32xf32>
    %610 = arith.mulf %605, %609 : vector<8x32xf32>
    %611 = vector.broadcast %591 : vector<1x32xf32> to vector<8x32xf32>
    %612 = arith.mulf %610, %611 : vector<8x32xf32>
    %613 = vector.broadcast %592 : vector<1x32xf32> to vector<8x32xf32>
    %614 = arith.addf %612, %613 : vector<8x32xf32>
    %c0_219 = arith.constant 0 : index
    %c0_220 = arith.constant 0 : index
    %615 = vector.load %arg38[%c0_219, %c0_220] : memref<32x128xbf16, #tpu.memory_space<vmem>>, vector<32x128xbf16>
    %616 = arith.truncf %614 : vector<8x32xf32> to vector<8x32xbf16>
    %cst_221 = arith.constant dense<0.000000e+00> : vector<8x128xf32>
    %617 = tpu.matmul %616, %615, %cst_221 {dimension_numbers = #tpu.dot_dimension_numbers<[1], [0], [0], [1], [0, 0, 1, 1], [], []>} : vector<8x32xbf16>, vector<32x128xbf16>, vector<8x128xf32> -> vector<8x128xf32>
    %c0_222 = arith.constant 0 : index
    %c0_223 = arith.constant 0 : index
    %618 = vector.load %arg39[%c0_222, %c0_223] : memref<1x128xf32, #tpu.memory_space<vmem>>, vector<1x128xf32>
    %619 = vector.broadcast %618 : vector<1x128xf32> to vector<8x128xf32>
    %620 = arith.addf %617, %619 : vector<8x128xf32>
    %cst_224 = arith.constant 0.000000e+00 : f32
    %621 = vector.broadcast %cst_224 : f32 to vector<8x128xf32>
    %622 = arith.subf %621, %620 : vector<8x128xf32>
    %623 = math.exp %622 : vector<8x128xf32>
    %cst_225 = arith.constant 1.000000e+00 : f32
    %624 = vector.broadcast %cst_225 : f32 to vector<8x128xf32>
    %625 = arith.addf %624, %623 : vector<8x128xf32>
    %cst_226 = arith.constant 1.000000e+00 : f32
    %626 = vector.broadcast %cst_226 : f32 to vector<8x128xf32>
    %627 = arith.divf %626, %625 : vector<8x128xf32>
    %628 = arith.mulf %620, %627 : vector<8x128xf32>
    %c0_227 = arith.constant 0 : index
    %c0_228 = arith.constant 0 : index
    %629 = vector.load %arg40[%c0_227, %c0_228] : memref<128x32xbf16, #tpu.memory_space<vmem>>, vector<128x32xbf16>
    %630 = arith.truncf %628 : vector<8x128xf32> to vector<8x128xbf16>
    %cst_229 = arith.constant dense<0.000000e+00> : vector<8x32xf32>
    %631 = tpu.matmul %630, %629, %cst_229 {dimension_numbers = #tpu.dot_dimension_numbers<[1], [0], [0], [1], [0, 0, 1, 1], [], []>} : vector<8x128xbf16>, vector<128x32xbf16>, vector<8x32xf32> -> vector<8x32xf32>
    %c0_230 = arith.constant 0 : index
    %c0_231 = arith.constant 0 : index
    %632 = vector.load %arg41[%c0_230, %c0_231] : memref<1x32xf32, #tpu.memory_space<vmem>>, vector<1x32xf32>
    %633 = vector.broadcast %632 : vector<1x32xf32> to vector<8x32xf32>
    %634 = arith.addf %631, %633 : vector<8x32xf32>
    %cst_232 = arith.constant 5.000000e-01 : f32
    %635 = vector.broadcast %cst_232 : f32 to vector<8x32xf32>
    %636 = arith.mulf %635, %634 : vector<8x32xf32>
    %637 = arith.addf %590, %636 : vector<8x32xf32>
    %c0_233 = arith.constant 0 : index
    %c0_234 = arith.constant 0 : index
    %638 = vector.load %arg42[%c0_233, %c0_234] : memref<1x32xf32, #tpu.memory_space<vmem>>, vector<1x32xf32>
    %c0_235 = arith.constant 0 : index
    %c0_236 = arith.constant 0 : index
    %639 = vector.load %arg43[%c0_235, %c0_236] : memref<1x32xf32, #tpu.memory_space<vmem>>, vector<1x32xf32>
    %cst_237 = arith.constant dense<0.000000e+00> : vector<8xf32>
    %640 = vector.multi_reduction <add>, %637, %cst_237 [1] : vector<8x32xf32> to vector<8xf32>
    %641 = vector.shape_cast %640 : vector<8xf32> to vector<8x1xf32>
    %cst_238 = arith.constant 3.200000e+01 : f32
    %642 = vector.broadcast %cst_238 : f32 to vector<8x1xf32>
    %643 = arith.divf %641, %642 : vector<8x1xf32>
    %644 = vector.broadcast %643 : vector<8x1xf32> to vector<8x32xf32>
    %645 = arith.subf %637, %644 : vector<8x32xf32>
    %646 = arith.mulf %645, %645 : vector<8x32xf32>
    %cst_239 = arith.constant dense<0.000000e+00> : vector<8xf32>
    %647 = vector.multi_reduction <add>, %646, %cst_239 [1] : vector<8x32xf32> to vector<8xf32>
    %648 = vector.shape_cast %647 : vector<8xf32> to vector<8x1xf32>
    %cst_240 = arith.constant 3.200000e+01 : f32
    %649 = vector.broadcast %cst_240 : f32 to vector<8x1xf32>
    %650 = arith.divf %648, %649 : vector<8x1xf32>
    %651 = vector.broadcast %643 : vector<8x1xf32> to vector<8x32xf32>
    %652 = arith.subf %637, %651 : vector<8x32xf32>
    %cst_241 = arith.constant 9.99999974E-6 : f32
    %653 = vector.broadcast %cst_241 : f32 to vector<8x1xf32>
    %654 = arith.addf %650, %653 : vector<8x1xf32>
    %655 = math.rsqrt %654 : vector<8x1xf32>
    %656 = vector.broadcast %655 : vector<8x1xf32> to vector<8x32xf32>
    %657 = arith.mulf %652, %656 : vector<8x32xf32>
    %658 = vector.broadcast %638 : vector<1x32xf32> to vector<8x32xf32>
    %659 = arith.mulf %657, %658 : vector<8x32xf32>
    %660 = vector.broadcast %639 : vector<1x32xf32> to vector<8x32xf32>
    %661 = arith.addf %659, %660 : vector<8x32xf32>
    %c0_242 = arith.constant 0 : index
    %c0_243 = arith.constant 0 : index
    %c0_244 = arith.constant 0 : index
    %662 = vector.load %arg44[%c0_242, %c0_243, %c0_244] : memref<1x8x32xf32, #tpu.memory_space<vmem>>, vector<1x8x32xf32>
    %663 = vector.shape_cast %662 : vector<1x8x32xf32> to vector<8x32xf32>
    %664 = vector.shape_cast %661 : vector<8x32xf32> to vector<1x8x32xf32>
    tpu.vector_store %arg44[%c0_242, %c0_243, %c0_244], %664 {strides = array<i32>} : memref<1x8x32xf32, #tpu.memory_space<vmem>>, vector<1x8x32xf32>,
    return
  }
  func.func @transform_0(%arg0: i32) -> (i32, i32, i32) {
    %c0_i32 = arith.constant 0 : i32
    %c0_i32_0 = arith.constant 0 : i32
    %c0_i32_1 = arith.constant 0 : i32
    return %arg0, %c0_i32, %c0_i32_0 : i32, i32, i32
  }
  func.func @transform_1(%arg0: i32) -> (i32, i32) {
    %c0_i32 = arith.constant 0 : i32
    %c0_i32_0 = arith.constant 0 : i32
    %c0_i32_1 = arith.constant 0 : i32
    return %c0_i32, %c0_i32_0 : i32, i32
  }
  func.func @transform_2(%arg0: i32) -> (i32, i32) {
    %c0_i32 = arith.constant 0 : i32
    %c0_i32_0 = arith.constant 0 : i32
    %c0_i32_1 = arith.constant 0 : i32
    return %c0_i32, %c0_i32_0 : i32, i32
  }
  func.func @transform_3(%arg0: i32) -> (i32, i32) {
    %c0_i32 = arith.constant 0 : i32
    %c0_i32_0 = arith.constant 0 : i32
    %c0_i32_1 = arith.constant 0 : i32
    return %c0_i32, %c0_i32_0 : i32, i32
  }
  func.func @transform_4(%arg0: i32) -> (i32, i32) {
    %c0_i32 = arith.constant 0 : i32
    %c0_i32_0 = arith.constant 0 : i32
    %c0_i32_1 = arith.constant 0 : i32
    return %c0_i32, %c0_i32_0 : i32, i32
  }
  func.func @transform_5(%arg0: i32) -> (i32, i32) {
    %c0_i32 = arith.constant 0 : i32
    %c0_i32_0 = arith.constant 0 : i32
    %c0_i32_1 = arith.constant 0 : i32
    return %c0_i32, %c0_i32_0 : i32, i32
  }
  func.func @transform_6(%arg0: i32) -> (i32, i32) {
    %c0_i32 = arith.constant 0 : i32
    %c0_i32_0 = arith.constant 0 : i32
    %c0_i32_1 = arith.constant 0 : i32
    return %c0_i32, %c0_i32_0 : i32, i32
  }
  func.func @transform_7(%arg0: i32) -> (i32, i32) {
    %c0_i32 = arith.constant 0 : i32
    %c0_i32_0 = arith.constant 0 : i32
    %c0_i32_1 = arith.constant 0 : i32
    return %c0_i32, %c0_i32_0 : i32, i32
  }
  func.func @transform_8(%arg0: i32) -> (i32, i32) {
    %c0_i32 = arith.constant 0 : i32
    %c0_i32_0 = arith.constant 0 : i32
    %c0_i32_1 = arith.constant 0 : i32
    return %c0_i32, %c0_i32_0 : i32, i32
  }
  func.func @transform_9(%arg0: i32) -> (i32, i32) {
    %c0_i32 = arith.constant 0 : i32
    %c0_i32_0 = arith.constant 0 : i32
    %c0_i32_1 = arith.constant 0 : i32
    return %c0_i32, %c0_i32_0 : i32, i32
  }
  func.func @transform_10(%arg0: i32) -> (i32, i32) {
    %c0_i32 = arith.constant 0 : i32
    %c0_i32_0 = arith.constant 0 : i32
    %c0_i32_1 = arith.constant 0 : i32
    return %c0_i32, %c0_i32_0 : i32, i32
  }
  func.func @transform_11(%arg0: i32) -> (i32, i32) {
    %c0_i32 = arith.constant 0 : i32
    %c0_i32_0 = arith.constant 0 : i32
    %c0_i32_1 = arith.constant 0 : i32
    return %c0_i32, %c0_i32_0 : i32, i32
  }
  func.func @transform_12(%arg0: i32) -> (i32, i32) {
    %c0_i32 = arith.constant 0 : i32
    %c0_i32_0 = arith.constant 0 : i32
    %c0_i32_1 = arith.constant 0 : i32
    return %c0_i32, %c0_i32_0 : i32, i32
  }
  func.func @transform_13(%arg0: i32) -> (i32, i32) {
    %c0_i32 = arith.constant 0 : i32
    %c0_i32_0 = arith.constant 0 : i32
    %c0_i32_1 = arith.constant 0 : i32
    return %c0_i32, %c0_i32_0 : i32, i32
  }
  func.func @transform_14(%arg0: i32) -> (i32, i32) {
    %c0_i32 = arith.constant 0 : i32
    %c0_i32_0 = arith.constant 0 : i32
    %c0_i32_1 = arith.constant 0 : i32
    return %c0_i32, %c0_i32_0 : i32, i32
  }
  func.func @transform_15(%arg0: i32) -> (i32, i32) {
    %c0_i32 = arith.constant 0 : i32
    %c0_i32_0 = arith.constant 0 : i32
    %c0_i32_1 = arith.constant 0 : i32
    return %c0_i32, %c0_i32_0 : i32, i32
  }
  func.func @transform_16(%arg0: i32) -> (i32, i32) {
    %c0_i32 = arith.constant 0 : i32
    %c0_i32_0 = arith.constant 0 : i32
    %c0_i32_1 = arith.constant 0 : i32
    return %c0_i32, %c0_i32_0 : i32, i32
  }
  func.func @transform_17(%arg0: i32) -> (i32, i32) {
    %c0_i32 = arith.constant 0 : i32
    %c0_i32_0 = arith.constant 0 : i32
    %c0_i32_1 = arith.constant 0 : i32
    return %c0_i32, %c0_i32_0 : i32, i32
  }
  func.func @transform_18(%arg0: i32) -> (i32, i32) {
    %c0_i32 = arith.constant 0 : i32
    %c0_i32_0 = arith.constant 0 : i32
    %c0_i32_1 = arith.constant 0 : i32
    return %c0_i32, %c0_i32_0 : i32, i32
  }
  func.func @transform_19(%arg0: i32) -> (i32, i32) {
    %c0_i32 = arith.constant 0 : i32
    %c0_i32_0 = arith.constant 0 : i32
    %c0_i32_1 = arith.constant 0 : i32
    return %c0_i32, %c0_i32_0 : i32, i32
  }
  func.func @transform_20(%arg0: i32) -> (i32, i32) {
    %c0_i32 = arith.constant 0 : i32
    %c0_i32_0 = arith.constant 0 : i32
    %c0_i32_1 = arith.constant 0 : i32
    return %c0_i32, %c0_i32_0 : i32, i32
  }
  func.func @transform_21(%arg0: i32) -> (i32, i32) {
    %c0_i32 = arith.constant 0 : i32
    %c0_i32_0 = arith.constant 0 : i32
    %c0_i32_1 = arith.constant 0 : i32
    return %c0_i32, %c0_i32_0 : i32, i32
  }
  func.func @transform_22(%arg0: i32) -> (i32, i32) {
    %c0_i32 = arith.constant 0 : i32
    %c0_i32_0 = arith.constant 0 : i32
    %c0_i32_1 = arith.constant 0 : i32
    return %c0_i32, %c0_i32_0 : i32, i32
  }
  func.func @transform_23(%arg0: i32) -> (i32, i32) {
    %c0_i32 = arith.constant 0 : i32
    %c0_i32_0 = arith.constant 0 : i32
    %c0_i32_1 = arith.constant 0 : i32
    return %c0_i32, %c0_i32_0 : i32, i32
  }
  func.func @transform_24(%arg0: i32) -> (i32, i32) {
    %c0_i32 = arith.constant 0 : i32
    %c0_i32_0 = arith.constant 0 : i32
    %c0_i32_1 = arith.constant 0 : i32
    return %c0_i32, %c0_i32_0 : i32, i32
  }
  func.func @transform_25(%arg0: i32) -> (i32, i32) {
    %c0_i32 = arith.constant 0 : i32
    %c0_i32_0 = arith.constant 0 : i32
    %c0_i32_1 = arith.constant 0 : i32
    return %c0_i32, %c0_i32_0 : i32, i32
  }
  func.func @transform_26(%arg0: i32) -> (i32, i32) {
    %c0_i32 = arith.constant 0 : i32
    %c0_i32_0 = arith.constant 0 : i32
    %c0_i32_1 = arith.constant 0 : i32
    return %c0_i32, %c0_i32_0 : i32, i32
  }
  func.func @transform_27(%arg0: i32) -> (i32, i32) {
    %c0_i32 = arith.constant 0 : i32
    %c0_i32_0 = arith.constant 0 : i32
    %c0_i32_1 = arith.constant 0 : i32
    return %c0_i32, %c0_i32_0 : i32, i32
  }
  func.func @transform_28(%arg0: i32) -> (i32, i32) {
    %c0_i32 = arith.constant 0 : i32
    %c0_i32_0 = arith.constant 0 : i32
    %c0_i32_1 = arith.constant 0 : i32
    return %c0_i32, %c0_i32_0 : i32, i32
  }
  func.func @transform_29(%arg0: i32) -> (i32, i32) {
    %c0_i32 = arith.constant 0 : i32
    %c0_i32_0 = arith.constant 0 : i32
    %c0_i32_1 = arith.constant 0 : i32
    return %c0_i32, %c0_i32_0 : i32, i32
  }
  func.func @transform_30(%arg0: i32) -> (i32, i32) {
    %c0_i32 = arith.constant 0 : i32
    %c0_i32_0 = arith.constant 0 : i32
    %c0_i32_1 = arith.constant 0 : i32
    return %c0_i32, %c0_i32_0 : i32, i32
  }
  func.func @transform_31(%arg0: i32) -> (i32, i32) {
    %c0_i32 = arith.constant 0 : i32
    %c0_i32_0 = arith.constant 0 : i32
    %c0_i32_1 = arith.constant 0 : i32
    return %c0_i32, %c0_i32_0 : i32, i32
  }
  func.func @transform_32(%arg0: i32) -> (i32, i32) {
    %c0_i32 = arith.constant 0 : i32
    %c0_i32_0 = arith.constant 0 : i32
    %c0_i32_1 = arith.constant 0 : i32
    return %c0_i32, %c0_i32_0 : i32, i32
  }
  func.func @transform_33(%arg0: i32) -> (i32, i32) {
    %c0_i32 = arith.constant 0 : i32
    %c0_i32_0 = arith.constant 0 : i32
    %c0_i32_1 = arith.constant 0 : i32
    return %c0_i32, %c0_i32_0 : i32, i32
  }
  func.func @transform_34(%arg0: i32) -> (i32, i32) {
    %c0_i32 = arith.constant 0 : i32
    %c0_i32_0 = arith.constant 0 : i32
    %c0_i32_1 = arith.constant 0 : i32
    return %c0_i32, %c0_i32_0 : i32, i32
  }
  func.func @transform_35(%arg0: i32) -> (i32, i32) {
    %c0_i32 = arith.constant 0 : i32
    %c0_i32_0 = arith.constant 0 : i32
    %c0_i32_1 = arith.constant 0 : i32
    return %c0_i32, %c0_i32_0 : i32, i32
  }
  func.func @transform_36(%arg0: i32) -> (i32, i32) {
    %c0_i32 = arith.constant 0 : i32
    %c0_i32_0 = arith.constant 0 : i32
    %c0_i32_1 = arith.constant 0 : i32
    return %c0_i32, %c0_i32_0 : i32, i32
  }
  func.func @transform_37(%arg0: i32) -> (i32, i32) {
    %c0_i32 = arith.constant 0 : i32
    %c0_i32_0 = arith.constant 0 : i32
    %c0_i32_1 = arith.constant 0 : i32
    return %c0_i32, %c0_i32_0 : i32, i32
  }
  func.func @transform_38(%arg0: i32) -> (i32, i32) {
    %c0_i32 = arith.constant 0 : i32
    %c0_i32_0 = arith.constant 0 : i32
    %c0_i32_1 = arith.constant 0 : i32
    return %c0_i32, %c0_i32_0 : i32, i32
  }
  func.func @transform_39(%arg0: i32) -> (i32, i32) {
    %c0_i32 = arith.constant 0 : i32
    %c0_i32_0 = arith.constant 0 : i32
    %c0_i32_1 = arith.constant 0 : i32
    return %c0_i32, %c0_i32_0 : i32, i32
  }
  func.func @transform_40(%arg0: i32) -> (i32, i32) {
    %c0_i32 = arith.constant 0 : i32
    %c0_i32_0 = arith.constant 0 : i32
    %c0_i32_1 = arith.constant 0 : i32
    return %c0_i32, %c0_i32_0 : i32, i32
  }
  func.func @transform_41(%arg0: i32) -> (i32, i32) {
    %c0_i32 = arith.constant 0 : i32
    %c0_i32_0 = arith.constant 0 : i32
    %c0_i32_1 = arith.constant 0 : i32
    return %c0_i32, %c0_i32_0 : i32, i32
  }
  func.func @transform_42(%arg0: i32) -> (i32, i32) {
    %c0_i32 = arith.constant 0 : i32
    %c0_i32_0 = arith.constant 0 : i32
    %c0_i32_1 = arith.constant 0 : i32
    return %c0_i32, %c0_i32_0 : i32, i32
  }
  func.func @transform_43(%arg0: i32) -> (i32, i32, i32) {
    %c0_i32 = arith.constant 0 : i32
    %c0_i32_0 = arith.constant 0 : i32
    %c0_i32_1 = arith.constant 0 : i32
    return %arg0, %c0_i32, %c0_i32_0 : i32, i32, i32
  }
}

</mosaic_0001>

<bundles_post_ra>
// kernel: encoder_block.1
= control target key start
LH: loop header
LB: loop body
LE: loop exit
PB: predicated region body
PF: predicated region fallthrough
CT: control target
= control target key end

     0   :  { %s4260_s6 = smov 1   ;;  %s4261_s10 = smov 2   ;;  %s5156_s0 = inlined_call_operand.smem [shape: u32[44], index: -1, kind: input, shape index: {}] }
   0x1   :  { %s4320_s5 = sld [smem:[%s5156_s0]]   ;;  %s4262_s14 = smov 3  }
   0x2   :  { %s4325_s9 = sld [smem:[%s5156_s0 + %s4260_s6]]   ;;  %s4263_s18 = smov 4  }
   0x3   :  { %s4330_s13 = sld [smem:[%s5156_s0 + %s4261_s10]]   ;;  %s4264_s22 = smov 5  }
   0x4   :  { %s4335_s17 = sld [smem:[%s5156_s0 + %s4262_s14]]   ;;  %s4265_s26 = smov 6  }
   0x5   :  { %s4340_s21 = sld [smem:[%s5156_s0 + %s4263_s18]]   ;;  %s4266_s30 = smov 7  }
   0x6   :  { %s4345_s25 = sld [smem:[%s5156_s0 + %s4264_s22]]   ;;  %s4267_s4 = smov 8  }
   0x7   :  { %5169 = sst [smem:[#allocation20_spill]] %s4320_s5  ;;  %s4268_s10 = smov 9  }
   0x8   :  { %5170 = sst [smem:[#allocation21_spill]] %s4325_s9  ;;  %s4269_s15 = smov 10  }
   0x9   :  { %s4350_s29 = sld [smem:[%s5156_s0 + %s4265_s26]]   ;;  %s4270_s20 = smov 11  }
   0xa   :  { %s4355_s3 = sld [smem:[%s5156_s0 + %s4266_s30]]   ;;  %s4271_s26 = smov 12  }
   0xb   :  { %s4360_s8 = sld [smem:[%s5156_s0 + %s4267_s4]]   ;;  %s4272_s1 = smov 13  }
   0xc   :  { %s4365_s14 = sld [smem:[%s5156_s0 + %s4268_s10]]   ;;  %s4273_s7 = smov 14  }
   0xd   :  { %s4370_s19 = sld [smem:[%s5156_s0 + %s4269_s15]]   ;;  %s4274_s15 = smov 15  }
   0xe   :  { %s4375_s24 = sld [smem:[%s5156_s0 + %s4270_s20]]   ;;  %s4275_s22 = smov 16  }
   0xf   :  { %s4380_s30 = sld [smem:[%s5156_s0 + %s4271_s26]]   ;;  %s4276_s28 = smov 17  }
  0x10   :  { %5171 = sst [smem:[#allocation22_spill]] %s4355_s3 }
  0x11   :  { %5172 = sst [smem:[#allocation23_spill]] %s4360_s8 }
  0x12   :  { %s4385_s6 = sld [smem:[%s5156_s0 + %s4272_s1]]  }
  0x13   :  { %s4390_s12 = sld [smem:[%s5156_s0 + %s4273_s7]]   ;;  %s4277_s7 = smov 18  }
  0x14   :  { %s4395_s20 = sld [smem:[%s5156_s0 + %s4274_s15]]   ;;  %s4278_s15 = smov 19  }
  0x15   :  { %s4400_s27 = sld [smem:[%s5156_s0 + %s4275_s22]]   ;;  %s4279_s22 = smov 20  }
  0x16   :  { %s4405_s4 = sld [smem:[%s5156_s0 + %s4276_s28]]   ;;  %s4280_s28 = smov 21  }
  0x18   :  { %5173 = sst [smem:[#allocation24_spill]] %s4385_s6 }
  0x19   :  { %5174 = sst [smem:[#allocation25_spill]] %s4390_s12 }
  0x1a   :  { %5175 = sst [smem:[#allocation26_spill]] %s4395_s20 }
  0x1b   :  { %5176 = sst [smem:[#allocation27_spill]] %s4400_s27 }
  0x1c   :  { %5177 = sst [smem:[#allocation28_spill]] %s4405_s4 }
  0x1d   :  { %s4410_s12 = sld [smem:[%s5156_s0 + %s4277_s7]]   ;;  %s4281_s7 = smov 22  }
  0x1e   :  { %s4415_s20 = sld [smem:[%s5156_s0 + %s4278_s15]]   ;;  %s4282_s15 = smov 23  }
  0x1f   :  { %s4420_s27 = sld [smem:[%s5156_s0 + %s4279_s22]]   ;;  %s4283_s22 = smov 24  }
  0x20   :  { %s4425_s6 = sld [smem:[%s5156_s0 + %s4280_s28]]   ;;  %s4284_s28 = smov 25  }
  0x23   :  { %5178 = sst [smem:[#allocation29_spill]] %s4410_s12 }
  0x24   :  { %5179 = sst [smem:[#allocation30_spill]] %s4415_s20 }
  0x25   :  { %5180 = sst [smem:[#allocation31_spill]] %s4420_s27 }
  0x26   :  { %5181 = sst [smem:[#allocation32_spill]] %s4425_s6 }
  0x27   :  { %s4430_s12 = sld [smem:[%s5156_s0 + %s4281_s7]]   ;;  %s4285_s7 = smov 26  }
  0x28   :  { %s4435_s20 = sld [smem:[%s5156_s0 + %s4282_s15]]   ;;  %s4286_s15 = smov 27  }
  0x29   :  { %s4440_s27 = sld [smem:[%s5156_s0 + %s4283_s22]]   ;;  %s4287_s22 = smov 28  }
  0x2a   :  { %s4445_s6 = sld [smem:[%s5156_s0 + %s4284_s28]]   ;;  %s4288_s28 = smov 29  }
  0x2d   :  { %5182 = sst [smem:[#allocation33_spill]] %s4430_s12 }
  0x2e   :  { %5183 = sst [smem:[#allocation34_spill]] %s4435_s20 }
  0x2f   :  { %5184 = sst [smem:[#allocation35_spill]] %s4440_s27 }
  0x30   :  { %5185 = sst [smem:[#allocation36_spill]] %s4445_s6 }
  0x31   :  { %s4450_s12 = sld [smem:[%s5156_s0 + %s4285_s7]]   ;;  %s4289_s7 = smov 30  }
  0x32   :  { %s4455_s20 = sld [smem:[%s5156_s0 + %s4286_s15]]   ;;  %s4290_s15 = smov 31  }
  0x33   :  { %s4460_s27 = sld [smem:[%s5156_s0 + %s4287_s22]]   ;;  %s4291_s22 = smov 32  }
  0x34   :  { %s4465_s6 = sld [smem:[%s5156_s0 + %s4288_s28]]   ;;  %s4292_s28 = smov 33  }
  0x37   :  { %5186 = sst [smem:[#allocation37_spill]] %s4450_s12 }
  0x38   :  { %5187 = sst [smem:[#allocation38_spill]] %s4455_s20 }
  0x39   :  { %5188 = sst [smem:[#allocation39_spill]] %s4460_s27 }
  0x3a   :  { %5189 = sst [smem:[#allocation40_spill]] %s4465_s6 }
  0x3b   :  { %s4470_s12 = sld [smem:[%s5156_s0 + %s4289_s7]]   ;;  %s4293_s7 = smov 34  }
  0x3c   :  { %s4475_s20 = sld [smem:[%s5156_s0 + %s4290_s15]]   ;;  %s4294_s15 = smov 35  }
  0x3d   :  { %s4480_s27 = sld [smem:[%s5156_s0 + %s4291_s22]]   ;;  %s4295_s22 = smov 36  }
  0x3e   :  { %s4485_s6 = sld [smem:[%s5156_s0 + %s4292_s28]]   ;;  %s4296_s28 = smov 37  }
  0x41   :  { %5190 = sst [smem:[#allocation41_spill]] %s4470_s12 }
  0x42   :  { %5191 = sst [smem:[#allocation42_spill]] %s4475_s20 }
  0x43   :  { %5192 = sst [smem:[#allocation43_spill]] %s4480_s27 }
  0x44   :  { %5193 = sst [smem:[#allocation44_spill]] %s4485_s6 }
  0x45   :  { %s4490_s12 = sld [smem:[%s5156_s0 + %s4293_s7]]   ;;  %s4297_s7 = smov 38  }
  0x46   :  { %s4495_s20 = sld [smem:[%s5156_s0 + %s4294_s15]]   ;;  %s4298_s15 = smov 39  }
  0x47   :  { %s4500_s27 = sld [smem:[%s5156_s0 + %s4295_s22]]   ;;  %s4299_s22 = smov 40  }
  0x48   :  { %s4505_s6 = sld [smem:[%s5156_s0 + %s4296_s28]]   ;;  %s4300_s28 = smov 41  }
  0x4b   :  { %5194 = sst [smem:[#allocation45_spill]] %s4490_s12 }
  0x4c   :  { %5195 = sst [smem:[#allocation46_spill]] %s4495_s20 }
  0x4d   :  { %5196 = sst [smem:[#allocation47_spill]] %s4500_s27 }
  0x4e   :  { %5197 = sst [smem:[#allocation48_spill]] %s4505_s6 }
  0x4f   :  { %s4510_s12 = sld [smem:[%s5156_s0 + %s4297_s7]]   ;;  %s4301_s7 = smov 42  }
  0x50   :  { %s4515_s20 = sld [smem:[%s5156_s0 + %s4298_s15]]   ;;  %s4302_s15 = smov 43  }
  0x51   :  { %s4520_s27 = sld [smem:[%s5156_s0 + %s4299_s22]]  }
  0x52   :  { %s4525_s6 = sld [smem:[%s5156_s0 + %s4300_s28]]  }
  0x55   :  { %5198 = sst [smem:[#allocation49_spill]] %s4510_s12 }
  0x56   :  { %5199 = sst [smem:[#allocation50_spill]] %s4515_s20 }
  0x57   :  { %s4530_s12 = sld [smem:[%s5156_s0 + %s4301_s7]]  }
  0x58   :  { %5200 = sst [smem:[#allocation51_spill]] %s4525_s6 }
  0x59   :  { %s4535_s20 = sld [smem:[%s5156_s0 + %s4302_s15]]  }
  0x5d   :  { %5201 = sst [smem:[#allocation52_spill]] %s4530_s12 }
  0x5e   :  { %92 = vsyncpa [#allocation15], 0 }
  0x5f   :  { %93 = vsyncpa [#allocation16], 0 }
  0x60   :  { %95 = vsyncpa [#allocation16 + $0x1], 0  ;;  %s4537_s22 = smov 0   ;;  %s4539_s23 = smov 0  }
  0x61   :  { %s4541_s26 = smov 0   ;;  %s4543_s28 = smov 0  }
  0x62 LB: > { %s4558_s0 = sadd.s32 4294967295, %s4258_s28   ;;  %s3655_s1 = sadd.s32 4294967294, %s4258_s28   ;;  %s4258_s28 = sphi %s4543_s28, %s5244_s28   ;;  %s4254_s26 = sphi %s4541_s26, %s5243_s26   ;;  %s4250_s23 = sphi %s4539_s23, %s5242_s23   ;;  %s4246_s22 = sphi %s4537_s22, %s5241_s22  }
  0x63   : > { %s4562_s2 = sadd.s32 1, %s4258_s28   ;;  %s1016_s7 = sadd.s32 1, %s4254_s26 }
  0x64   : > { %s1013_s10 = ssub.s32 %s4258_s28, %s4562_s2  ;;  %p1026_p0 = scmp.ne.s32.totalorder %s4254_s26, %s4250_s23 }
  0x65   : > { %p1014_p1 = scmp.eq.s32.totalorder %s1013_s10, 0  ;;  %p1027_p2 = scmp.eq.s32.totalorder %s4558_s0, 1 }
  0x66   : > { %p1032_p3 = scmp.ne.s32.totalorder %s4250_s23, %s4246_s22  ;;  %p1033_p4 = scmp.eq.s32.totalorder %s3655_s1, 1 }
  0x67   : > { %s4573_s11 = scalar_select %p1014_p1, %s4254_s26, %s1016_s7  }
  0x68   : > { %p4575_p5 = por %p1027_p2, %p1026_p0  ;;  %p4579_p6 = por %p1033_p4, %p1032_p3 }
  0x69   : > { %5202 = sst [smem:[#allocation53_spill]] %s4573_s11  ;;  %p3656_p7 = scmp.ge.s32.totalorder %s4258_s28, 1 }
  0x6a   : > { %p1040_p8 = scmp.lt.s32.totalorder %s4258_s28, 3  ;;  %p3948_p9 = scmp.eq.s32.totalorder %s4558_s0, 0 }
  0x6b   : > { %s4303_s10 = smov [#allocation14]  }
  0x6c   : > { %p4586_p10 = pnand %p3656_p7, %p1040_p8  ;;  %s1176_s1 = sshll.u32 %s4303_s10, 4  ;;  %s1177_s1 = int_to_ptr.vmem [resolvable:$true] %s1176_s1 }
  0x6d   : > { %s4179_s7 = scalar_lea.vmem %s1177_s1, 16  ;;  %s4186_s11 = scalar_lea.vmem %s1177_s1, 32 }
  0x6e   : > { %p3940_p11 = pneg %p4586_p10  ;;  %p4180_p0 = scmp.ne.s32.totalorder %s1177_s1, %s4179_s7 }
  0x6f   : > { %p4187_p3 = scmp.lt.s32.totalorder %s1177_s1, %s1177_s1  ;;  %p4188_p4 = scmp.lt.s32.totalorder %s4186_s11, %s4179_s7 }
  0x70   : > { %p3941_p12 = pnand %p3948_p9, %p3940_p11 }
  0x71   : > { %p4189_p7 = por %p4188_p4, %p4187_p3 }
  0x72   : > { %p4170_p13 = pneg %p3941_p12 }
  0x74   : > { %p4182_p1 = pnand %p4180_p0, %p4170_p13 }
  0x76   : > { %p4183_p2 = pneg %p4182_p1 }
  0x78   : > { %p4190_p8 = pnand %p4189_p7, %p4183_p2 }
  0x7a   : > { %4193 = shalt.err (!%p4190_p8)
}
  0x7b   : > { %s5206_s12 = sld [smem:[#allocation52_spill]] }
  0x7d   : > { %1196 = sbr.rel (%p4586_p10) target bundleno = 4280 (0x10b8), region = 192 }
  0x81   : > { %3943 = dma.hbm_to_vmem [thread:$0]  (!%p3941_p12), %s5206_s12, 16, %s1177_s1, [#allocation15]  }
  0x82   : > { %4237 = dma.done.wait (%p3948_p9), [#allocation15], 16  }
  0x83   : > { %4239 = vsyncadd (%p3948_p9), [#allocation15], 4294967280  ;;  %s5207_s5 = sld [smem:[#allocation20_spill]]  ;;  %p1299_p11 = scmp.lt.s32.totalorder %s4558_s0, 1  ;;  %vm1312_vm0 = vcmask 261120   ;;  %v4034_v7 = vld [vmem:[%s4335_s17 + $0x8] sm:$0xff]  }
  0x84   : > { %s5208_s9 = sld [smem:[#allocation21_spill]]  ;;  %v4304_v8 = vmov 0.0   ;;  %vm4305_vm1 = vmmov 0   ;;  %v4035_v9 = vld [vmem:[%s4335_s17] sm:$0xff]   ;;  %v4036_v20 = vld [vmem:[%s4345_s25 + $0x38] sm:$0xff]   ;;  %v4037_v21 = vld [vmem:[%s4345_s25 + $0x30] sm:$0xff]  }
  0x85   : > { %s1300_s11 = scalar_select %p1299_p11, %s4558_s0, 1  ;;  %3802 = vmatprep.subr.bf16.mxu0 %v4304_v8  ;;  %3806 = vmatprep.mubr.msk.bf16.mxu0 %vm4305_vm1, %v4304_v8  ;;  %v3664_v16 = vld [vmem:[%s4330_s13] ss:$0 sm:$0xff]  ;;  %v4038_v22 = vld [vmem:[%s4345_s25 + $0x28] sm:$0xff]   ;;  %v4040_v24 = vld [vmem:[%s4345_s25 + $0x18] sm:$0xff]   ;;  %v4306_v59 = vmov 0  }
  0x86   : > { %3803 = vmatpush3.bf16.msra.mxu0 %v4034_v7  ;;  %3810 = vmatprep.subr.bf16.mxu1 %v4304_v8  ;;  %v4039_v23 = vld [vmem:[%s4345_s25 + $0x20] sm:$0xff]   ;;  %v4041_v25 = vld [vmem:[%s4345_s25 + $0x10] sm:$0xff]   ;;  %v4042_v26 = vld [vmem:[%s4345_s25 + $0x8] sm:$0xff]   ;;  %s5209_s3 = sld [smem:[#allocation22_spill]]  ;;  %vm1304_vm2 = vcmask 523264   ;;  %vm1761_vm3 = vcmask 1040384  }
  0x87   : > { %s3662_s10 = sshll.u32 %s1300_s11, 3  ;;  %3804 = vmatprep.subr.bf16.mxu0 %v4304_v8  ;;  %3826 = vmatprep.mubr.msk.bf16.mxu1 %vm4305_vm1, %v4304_v8  ;;  %v4043_v27 = vld [vmem:[%s4345_s25] sm:$0xff]   ;;  %v4046_v55 = vld [vmem:[%s4365_s14 + $0x14] ss:$8 sps:$4 sm:$0xff]   ;;  %v4044_v56 = vld [vmem:[%s4365_s14 + $0x10] ss:$8 sps:$4 sm:$0xff]  }
  0x88   : > { %3811 = vmatpush3.bf16.msra.mxu1 %v4036_v20  ;;  %v3665_v28 = vld [vmem:[%s4340_s21] ss:$0 sm:$0xff]  ;;  %v4049_v57 = vld [vmem:[%s4365_s14 + $0x4] ss:$8 sps:$4 sm:$0xff]   ;;  %s5210_s8 = sld [smem:[#allocation23_spill]]  ;;  %1305 = vst.msk [vmem:[#allocation2] sm:$0xff] %vm1304_vm2, %v4304_v8 }
  0x89   : > { %s1302_s7 = scalar_lea.vmem %s5207_s5, %s3662_s10  ;;  %3812 = vmatprep.subr.bf16.mxu1 %v4304_v8  ;;  %v3669_v41 = vld [vmem:[%s4350_s29] ss:$0 sm:$0xff]  ;;  %1306 = vst.msk [vmem:[#allocation2 + $0x10] sm:$0xff] %vm1304_vm2, %v4304_v8  ;;  %1307 = vst.msk [vmem:[#allocation3] sm:$0xff] %vm1304_vm2, %v4304_v8  ;;  %v4051_v7 = vld [vmem:[%s4380_s30 + $0x10] sm:$0xff]   ;;  %s5211_s4 = sld [smem:[#allocation28_spill]] }
  0x8a   : > { %v4604_v0 = vld [vmem:[%s1302_s7] sm:$0xff]  ;;  %3805 = vmatpush3.bf16.msra.mxu0 %v4035_v9  ;;  %1308 = vst.msk [vmem:[#allocation3 + $0x10] sm:$0xff] %vm1304_vm2, %v4304_v8  ;;  %v4052_v9 = vld [vmem:[%s4380_s30 + $0x8] sm:$0xff]   ;;  %s5212_s18 = sld [smem:[#allocation29_spill]]  ;;  %vm1757_vm4 = vcmask 15360   ;;  %s4307_s7 = smov 118  }
  0x8b   : > { %v1313_v1 = vsel %vm1312_vm0, %v4604_v0, 0.0  ;;  %v3663_v14 = vld [vmem:[%s5208_s9] ss:$0 sm:$0xff]  ;;  %1598 = vmatprep.subr.bf16.mxu0 %v4046_v55  ;;  %s5213_s1 = sld [smem:[#allocation30_spill]]  ;;  %vm1820_vm5 = vcmask 64512   ;;  %vm2857_vm6 = vcmask 1041408  }
  0x8c   : > { %1314 = vadd.xlane.f32.xlu0 %v1313_v1  ;;  %3813 = vmatpush3.bf16.msra.mxu1 %v4037_v21  ;;  %v4047_v58 = vld [vmem:[%s4365_s14] ss:$8 sps:$4 sm:$0xff]   ;;  %s5214_s11 = sld [smem:[#allocation24_spill]]  ;;  %vm2859_vm7 = vcmask 1042432   ;;  %vm2861_vm8 = vcmask 1043456   ;;  %vm2863_vm9 = vcmask 1044480  }
  0x8d   : > { %3814 = vmatprep.subr.bf16.mxu1 %v4304_v8  ;;  %s5215_s10 = sld [smem:[#allocation31_spill]]  ;;  %vm2865_vm10 = vcmask 1045504   ;;  %vm2867_vm11 = vcmask 1046528  }
  0x8e   : > { %s5232_s5 = sld [smem:[#allocation43_spill]] }
  0x8f   : > { %s5239_s6 = sld [smem:[#allocation51_spill]] }
  0x90   : > { %3815 = vmatpush3.bf16.msra.mxu1 %v4038_v22 }
  0x91   : > { %3816 = vmatprep.subr.bf16.mxu1 %v4304_v8 }
  0x94   : > { %3817 = vmatpush3.bf16.msra.mxu1 %v4039_v23 }
  0x95   : > { %3818 = vmatprep.subr.bf16.mxu1 %v4304_v8 }
  0x98   : > { %3819 = vmatpush3.bf16.msra.mxu1 %v4040_v24 }
  0x99   : > { %3820 = vmatprep.subr.bf16.mxu1 %v4304_v8 }
  0x9c   : > { %3821 = vmatpush3.bf16.msra.mxu1 %v4041_v25 }
  0x9d   : > { %3822 = vmatprep.subr.bf16.mxu1 %v4304_v8 }
  0xa0   : > { %3823 = vmatpush3.bf16.msra.mxu1 %v4042_v26 }
  0xa1   : > { %3824 = vmatprep.subr.bf16.mxu1 %v4304_v8 }
  0xa4   : > { %3825 = vmatpush3.bf16.msra.mxu1 %v4043_v27 }
  0xa5   : > { %3830 = vmatprep.subr.bf16.mxu1 %v4304_v8 }
 0x115   : > { %v1315_v2 = vpop.xlane.xlu0 %1314 }
 0x116   : > { %v1317_v3 = vmul.f32 0.03125, %v1315_v2  ;;  %v3679_v2 = vld [vmem:[%s5210_s8] ss:$0 sm:$0xff] }
 0x118   : > { %v1318_v4 = vsub.f32 %v4604_v0, %v1317_v3 }
 0x11a   : > { %v1319_v5 = vmul.f32 %v1318_v4, %v1318_v4 }
 0x11c   : > { %v1320_v6 = vsel %vm1312_vm0, %v1319_v5, 0.0 }
 0x11d   : > { %1321 = vadd.xlane.f32.xlu0 %v1320_v6  ;;  %v4050_v6 = vld [vmem:[%s4380_s30 + $0x18] sm:$0xff]  }
 0x1a6   : > { %v1322_v10 = vpop.xlane.xlu0 %1321 }
 0x1a7   : > { %v1323_v11 = vmul.f32 0.03125, %v1322_v10  ;;  %v4053_v10 = vld [vmem:[%s4380_s30] sm:$0xff]  }
 0x1a9   : > { %v1324_v12 = vadd.f32 1e-05, %v1323_v11  ;;  %v1630_v11 = vlaneseq }
 0x1ab   : > { %4086 = vrsqrt.f32 %v1324_v12  ;;  %v4675_v12 = vshrl.u32 %v1630_v11, 7  ;;  %v4057_v11 = vld [vmem:[%s5213_s1] sm:$0xff]  }
 0x1ad   : > { %v4696_v22 = vsub.s32 3, %v4675_v12 }
 0x1b8   : > { %v4087_v13 = vpop.eup %4086 }
 0x1b9   : > { %v1326_v15 = vmul.f32 %v4087_v13, %v1318_v4 }
 0x1bb   : > { %v1333_v17 = vmul.f32 %v3663_v14, %v1326_v15  ;;  %v4682_v14 = vsub.s32 0, %v4675_v12  ;;  %v4685_v15 = vsub.s32 1, %v4675_v12 }
 0x1bd   : > { %v1340_v18 = vadd.f32 %v3664_v16, %v1333_v17  ;;  %v1628_v17 = vld [vmem:[%s4370_s19] sm:$0xf] }
 0x1be   : > { %v1633_v20 = vrot.slane %v1628_v17, %v4682_v14  ;;  %v1640_v21 = vrot.slane %v1628_v17, %v4685_v15 }
 0x1bf   : > { %v1345_v19 = vpack.c.bf16 %v1340_v18, %v1340_v18  ;;  %v4691_v18 = vsub.s32 2, %v4675_v12 }
 0x1c1   : > { %3807 = vmatmul.mubr.msk.bf16.vlgmr.msra.gmra.mxu0 %vm1312_vm0, %v1345_v19  ;;  %v1647_v24 = vrot.slane %v1628_v17, %v4691_v18 }
 0x1c2   : > { %1599 = vmatpush1.bf16.msra.mxu0 %v4044_v56  ;;  %1618 = vmatprep.mubr.bf16.mxu0 %v4306_v59 }
 0x1c3   : > { %1600 = vmatprep.subr.bf16.mxu0 %v4049_v57  ;;  %v3693_v57 = vld [vmem:[%s5212_s18] ss:$0 sm:$0xff]  ;;  %s4308_s18 = smov 126  }
 0x1c6   : > { %1601 = vmatpush1.bf16.msra.mxu0 %v4047_v58 }
 0x1c7   : > { %3842 = vmatprep.subr.bf16.mxu0 %v4304_v8 }
 0x281   : > { %v1402_v29 = vpop.f32.mrf.mxu0 }
 0x282   : > { %v1403_v30 = vadd.f32 %v3665_v28, %v1402_v29 }
 0x283   : > { %v3808_v31 = vpop.f32.mrf.mxu0 }
 0x284   : > { %v1408_v32 = vsub.f32 0.0, %v1403_v30  ;;  %v1654_v31 = vrot.slane %v1628_v17, %v4696_v22 }
 0x285   : > { %v1405_v33 = vpop.f32.mrf.mxu0 }
 0x286   : > { %v1409_v34 = vmul.f32 1.442695, %v1408_v32 }
 0x287   : > { %v3809_v35 = vpop.f32.mrf.mxu0 }
 0x288   : > { %4088 = vpow2.f32 %v1409_v34  ;;  %v1827_v34 = vld [vmem:[%s5211_s4] sm:$0xf]  ;;  %s5231_s4 = sld [smem:[#allocation42_spill]] }
 0x295   : > { %v4089_v36 = vpop.eup %4088 }
 0x296   : > { %v1411_v37 = vadd.f32 1.0, %v4089_v36 }
 0x298   : > { %4090 = vrcp.f32 %v1411_v37  ;;  %v3685_v37 = vld [vmem:[%s4375_s24] ss:$0 sm:$0xff] }
 0x2a5   : > { %v4091_v38 = vpop.eup %4090 }
 0x2a6   : > { %v1414_v39 = vmul.f32 %v4091_v38, %v1403_v30  ;;  %v1832_v38 = vrot.slane %v1827_v34, %v4682_v14 }
 0x2a8   : > { %v1431_v40 = vpack.c.bf16 %v1414_v39, %v1414_v39  ;;  %v1839_v39 = vrot.slane %v1827_v34, %v4685_v15 }
 0x2aa   : > { %3827 = vmatmul.mubr.bf16.vlgmr.msra.gmra.mxu1 %v1431_v40 }
 0x2ab   : > { %3838 = vmatprep.mubr.msk.bf16.mxu1 %vm4305_vm1, %v4304_v8  ;;  %3831 = vmatpush3.bf16.msra.mxu1 %v4050_v6  ;;  %v4055_v6 = vld [vmem:[%s5213_s1 + $0x10] sm:$0xff]  }
 0x2ac   : > { %3832 = vmatprep.subr.bf16.mxu1 %v4304_v8 }
 0x2af   : > { %3833 = vmatpush3.bf16.msra.mxu1 %v4051_v7 }
 0x2b0   : > { %3834 = vmatprep.subr.bf16.mxu1 %v4304_v8 }
 0x2b3   : > { %3835 = vmatpush3.bf16.msra.mxu1 %v4052_v9 }
 0x2b4   : > { %3836 = vmatprep.subr.bf16.mxu1 %v4304_v8 }
 0x2b7   : > { %3837 = vmatpush3.bf16.msra.mxu1 %v4053_v10  ;;  %v4056_v10 = vld [vmem:[%s5213_s1 + $0x8] sm:$0xff]  }
 0x2b8   : > { %3848 = vmatprep.subr.bf16.mxu1 %v4304_v8 }
 0x36a   : > { %v1521_v42 = vpop.f32.mrf.mxu1 }
 0x36b   : > { %v1522_v43 = vadd.f32 %v3669_v41, %v1521_v42  ;;  %v1846_v41 = vrot.slane %v1827_v34, %v4691_v18 }
 0x36c   : > { %v3828_v44 = vpop.f32.mrf.mxu1 }
 0x36d   : > { %v1527_v45 = vmul.f32 0.5, %v1522_v43 }
 0x36e   : > { %v1524_v46 = vpop.f32.mrf.mxu1 }
 0x36f   : > { %v4643_v47 = vadd.f32 %v1527_v45, %v4604_v0  ;;  %v3678_v0 = vld [vmem:[%s5209_s3] ss:$0 sm:$0xff]  ;;  %s5227_s3 = sld [smem:[#allocation44_spill]] }
 0x370   : > { %v3829_v48 = vpop.f32.mrf.mxu1 }
 0x371   : > { %v1531_v49 = vsel %vm1312_vm0, %v4643_v47, 0.0 }
 0x372   : > { %1532 = vadd.xlane.f32.xlu1 %v1531_v49  ;;  %v1853_v49 = vrot.slane %v1827_v34, %v4696_v22 }
 0x3fb   : > { %v1533_v50 = vpop.xlane.xlu1 %1532 }
 0x3fc   : > { %v1534_v51 = vmul.f32 0.03125, %v1533_v50 }
 0x3fe   : > { %v1535_v52 = vsub.f32 %v4643_v47, %v1534_v51 }
 0x400   : > { %v1536_v53 = vmul.f32 %v1535_v52, %v1535_v52 }
 0x402   : > { %v1537_v54 = vsel %vm1312_vm0, %v1536_v53, 0.0 }
 0x403   : > { %1538 = vadd.xlane.f32.xlu1 %v1537_v54 }
 0x48c   : > { %v1539_v60 = vpop.xlane.xlu1 %1538 }
 0x48d   : > { %v1540_v61 = vmul.f32 0.03125, %v1539_v60 }
 0x48f   : > { %v1541_v62 = vadd.f32 1e-05, %v1540_v61 }
 0x491   : > { %4092 = vrsqrt.f32 %v1541_v62 }
 0x49e   : > { %v4093_v63 = vpop.eup %4092 }
 0x49f   : > { %v1543_v1 = vmul.f32 %v4093_v63, %v1535_v52 }
 0x4a1   : > { %v1550_v3 = vmul.f32 %v3678_v0, %v1543_v1 }
 0x4a3   : > { %v1557_v4 = vadd.f32 %v3679_v2, %v1550_v3 }
 0x4a5   : > { %v1562_v5 = vpack.c.bf16 %v1557_v4, %v1557_v4  ;;  %v4054_v4 = vld [vmem:[%s5213_s1 + $0x18] sm:$0xff]   ;;  %s5226_s1 = sld [smem:[#allocation39_spill]] }
 0x4a7   : > { %3684 = vmatmul.mubr.msk.bf16.vlgmr.msra.gmra.mxu0 %vm1312_vm0, %v1562_v5 }
 0x4a8   : > { %3844 = vmatprep.mubr.msk.bf16.mxu0 %vm4305_vm1, %v4304_v8 }
 0x567   : > { %v4677_v13 = vpop.f32.mrf.mxu0 }
 0x568   : > { %1627 = vst.msk [vmem:[#allocation2 + $0x8] sm:$0xff] %vm1304_vm2, %v4677_v13 }
 0x569   : > { %v4687_v16 = vpop.f32.mrf.mxu0 }
 0x56a   : > { %v2912_v34 = vsub.f32 0.0, %v4687_v16 }
 0x56b   : > { %v1624_v19 = vpop.f32.mrf.mxu0 }
 0x56c   : > { %v1748_v19 = vld [vmem:[%s5214_s11] sm:$0x1]  ;;  %s5216_s11 = sld [smem:[#allocation25_spill]] }
 0x56d   : > { %v1625_v23 = vpop.f32.mrf.mxu0 }
 0x56f   : > { %v1629_v25 = vld [vmem:[#allocation2 + $0x5] sm:$0xff] }
 0x570   : > { %v1636_v26 = vld [vmem:[#allocation2 + $0x6] sm:$0xff]  ;;  %v1634_v29 = vmul.f32 %v1633_v20, %v1629_v25  ;;  %v1763_v20 = vsel %vm1761_vm3, %v1748_v19, 0 }
 0x571   : > { %v1643_v27 = vld [vmem:[#allocation2 + $0x7] sm:$0xff]  ;;  %v1641_v30 = vmul.f32 %v1640_v21, %v1636_v26  ;;  %3843 = vmatpush3.bf16.msra.mxu0 %v1763_v20  ;;  %v1947_v21 = vld [vmem:[%s5215_s10] sm:$0x1]  ;;  %s5163_s10 = smov 64  }
 0x572   : > { %v1650_v28 = vld [vmem:[#allocation2 + $0x8] sm:$0xff]  ;;  %v1648_v33 = vmul.f32 %v1647_v24, %v1643_v27  ;;  %3860 = vmatprep.subr.bf16.mxu0 %v4304_v8  ;;  %v1960_v25 = vsel %vm1761_vm3, %v1947_v21, 0 }
 0x573   : > { %1826 = vst.msk [vmem:[#allocation2 + $0x8] sm:$0xff] %vm1304_vm2, %v4687_v16  ;;  %v1642_v32 = vadd.f32 %v1641_v30, %v1634_v29  ;;  %v1655_v36 = vmul.f32 %v1654_v31, %v1650_v28 }
 0x575   : > { %v1649_v35 = vadd.f32 %v1648_v33, %v1642_v32 }
 0x577   : > { %v1656_v40 = vadd.f32 %v1655_v36, %v1649_v35 }
 0x579   : > { %v1664_v42 = vadd.f32 %v3685_v37, %v1656_v40  ;;  %v2913_v37 = vmul.f32 1.442695, %v2912_v34  ;;  %v4746_v40 = vsub.s32 6, %v4675_v12 }
 0x57a   : > { %v1828_v43 = vld [vmem:[#allocation2 + $0xb] sm:$0xff] }
 0x57b   : > { %v1835_v44 = vld [vmem:[#allocation2 + $0xa] sm:$0xff]  ;;  %v1833_v46 = vmul.f32 %v1832_v38, %v1828_v43  ;;  %v1665_v50 = vsub.f32 0.0, %v1664_v42 }
 0x57c   : > { %v1842_v45 = vld [vmem:[#allocation2 + $0x9] sm:$0xff]  ;;  %v1840_v48 = vmul.f32 %v1839_v39, %v1835_v44  ;;  %v4743_v39 = vsub.s32 7, %v4675_v12  ;;  %v4751_v44 = vsub.s32 5, %v4675_v12 }
 0x57d   : > { %v1849_v51 = vld [vmem:[#allocation2 + $0x8] sm:$0xff]  ;;  %v1847_v53 = vmul.f32 %v1846_v41, %v1842_v45  ;;  %v1666_v54 = vmul.f32 1.442695, %v1665_v50  ;;  %v4754_v45 = vsub.s32 4, %v4675_v12 }
 0x57e   : > { %v1841_v52 = vadd.f32 %v1840_v48, %v1833_v46  ;;  %v1854_v56 = vmul.f32 %v1853_v49, %v1849_v51 }
 0x57f   : > { %4094 = vpow2.f32 %v1666_v54 }
 0x580   : > { %v1848_v55 = vadd.f32 %v1847_v53, %v1841_v52 }
 0x582   : > { %v1855_v58 = vadd.f32 %v1854_v56, %v1848_v55 }
 0x584   : > { %v1863_v59 = vadd.f32 %v3693_v57, %v1855_v58 }
 0x586   : > { %v1864_v60 = vsub.f32 0.0, %v1863_v59 }
 0x588   : > { %v1865_v61 = vmul.f32 1.442695, %v1864_v60 }
 0x58a   : > { %4096 = vpow2.f32 %v1865_v61 }
 0x58c   : > { %v4095_v62 = vpop.eup %4094 }
 0x58d   : > { %v1668_v63 = vadd.f32 1.0, %v4095_v62 }
 0x58f   : > { %4098 = vrcp.f32 %v1668_v63 }
 0x597   : > { %v4097_v0 = vpop.eup %4096 }
 0x598   : > { %v1867_v1 = vadd.f32 1.0, %v4097_v0 }
 0x59a   : > { %4100 = vrcp.f32 %v1867_v1 }
 0x59b   : > { %4102 = vpow2.f32 %v2913_v37 }
 0x59c   : > { %v4099_v2 = vpop.eup %4098 }
 0x59d   : > { %v1671_v3 = vmul.f32 %v4099_v2, %v1664_v42 }
 0x59f   : > { %v1680_v5 = vpack.c.bf16 %v1671_v3, %v1671_v3  ;;  %1814 = vst.msk [vmem:[#allocation4] sm:$0xff] %vm1304_vm2, %v1671_v3 }
 0x5a1   : > { %3839 = vmatmul.mubr.msk.bf16.vlgmr.msra.gmra.mxu1 %vm1304_vm2, %v1680_v5 }
 0x5a2   : > { %3849 = vmatpush3.bf16.msra.mxu1 %v4054_v4  ;;  %3856 = vmatprep.mubr.msk.bf16.mxu1 %vm4305_vm1, %v4304_v8 }
 0x5a3   : > { %3850 = vmatprep.subr.bf16.mxu1 %v4304_v8 }
 0x5a6   : > { %3851 = vmatpush3.bf16.msra.mxu1 %v4055_v6 }
 0x5a7   : > { %v4101_v7 = vpop.eup %4100  ;;  %3852 = vmatprep.subr.bf16.mxu1 %v4304_v8 }
 0x5a8   : > { %v1870_v9 = vmul.f32 %v4101_v7, %v1863_v59  ;;  %v4103_v51 = vpop.eup %4102 }
 0x5a9   : > { %v2915_v54 = vadd.f32 1.0, %v4103_v51 }
 0x5aa   : > { %2011 = vst.msk [vmem:[#allocation9] sm:$0xff] %vm1304_vm2, %v1870_v9  ;;  %3853 = vmatpush3.bf16.msra.mxu1 %v4056_v10  ;;  %v1879_v17 = vpack.c.bf16 %v1870_v9, %v1870_v9 }
 0x5ab   : > { %3854 = vmatprep.subr.bf16.mxu1 %v4304_v8  ;;  %4104 = vrcp.f32 %v2915_v54  ;;  %v4310_v54 = vmov 1966171168  }
 0x5ae   : > { %3855 = vmatpush3.bf16.msra.mxu1 %v4057_v11  ;;  %v3691_v11 = vld [vmem:[%s5216_s11] ss:$0 sm:$0xff]  ;;  %s5219_s11 = sld [smem:[#allocation35_spill]] }
 0x5af   : > { %3886 = vmatprep.subr.bf16.mxu1 %v4304_v8 }
 0x5b1   : > { %3857 = vmatmul.mubr.msk.bf16.vlgmr.msra.gmra.mxu1 %vm1304_vm2, %v1879_v17 }
 0x5b2   : > { %3890 = vmatprep.mubr.msk.bf16.mxu1 %vm4305_vm1, %v4304_v8 }
 0x5b8   : > { %v4105_v2 = vpop.eup %4104 }
 0x5b9   : > { %v2918_v3 = vmul.f32 %v4105_v2, %v4687_v16 }
 0x661   : > { %v1742_v23 = vpop.f32.mrf.mxu1 }
 0x662   : > { %v1749_v24 = vpack.c.bf16 %v1742_v23, %v1742_v23 }
 0x663   : > { %v3840_v26 = vpop.f32.mrf.mxu1 }
 0x664   : > { %3845 = vmatmul.mubr.msk.bf16.vlgmr.msra.gmra.mxu0 %vm1757_vm4, %v1749_v24 }
 0x665   : > { %v1745_v27 = vpop.f32.mrf.mxu1  ;;  %3861 = vmatpush3.bf16.msra.mxu0 %v1960_v25  ;;  %3862 = vmatprep.mubr.msk.bf16.mxu0 %vm4305_vm1, %v4304_v8 }
 0x666   : > { %3866 = vmatprep.subr.bf16.mxu0 %v4304_v8 }
 0x667   : > { %v3841_v28 = vpop.f32.mrf.mxu1 }
 0x671   : > { %v1941_v29 = vpop.f32.mrf.mxu1 }
 0x672   : > { %v1948_v30 = vpack.c.bf16 %v1941_v29, %v1941_v29  ;;  %2018 = vrot.lane.b32.xlu1 %v1941_v29, %s4307_s7  ;;  %2014 = vrot.lane.b32.xlu0 %v1941_v29, %s4308_s18 }
 0x673   : > { %v3858_v31 = vpop.f32.mrf.mxu1 }
 0x674   : > { %3863 = vmatmul.mubr.msk.bf16.vlgmr.msra.gmra.mxu0 %vm1757_vm4, %v1948_v30 }
 0x675   : > { %v1944_v32 = vpop.f32.mrf.mxu1  ;;  %3882 = vmatprep.mubr.msk.bf16.mxu0 %vm4305_vm1, %v4304_v8 }
 0x676   : > { %1817 = vrot.lane.b32.xlu1 %v1742_v23, %s4308_s18  ;;  %s5218_s18 = sld [smem:[#allocation33_spill]] }
 0x677   : > { %v3859_v33 = vpop.f32.mrf.mxu1 }
 0x6e4   : > { %v2019_v35 = vpop.permute.xlu1 %2018  ;;  %v2015_v36 = vpop.permute.xlu0 %2014 }
 0x6e5   : > { %2021 = vst.msk [vmem:[#allocation12] sm:$0xff] %vm1820_vm5, %v2019_v35  ;;  %2017 = vst.msk [vmem:[#allocation11] sm:$0xff] %vm1820_vm5, %v2015_v36 }
 0x6e8   : > { %v1818_v38 = vpop.permute.xlu1 %1817 }
 0x6e9   : > { %1821 = vst.msk [vmem:[#allocation6] sm:$0xff] %vm1820_vm5, %v1818_v38 }
 0x6ec   : > { %v2030_v41 = vld [vmem:[#allocation11] sm:$0xff]  ;;  %v2031_v53 = vld [vmem:[#allocation12] sm:$0xff] }
 0x6ed   : > { %v2474_v42 = vrot.slane %v2030_v41, %v4743_v39  ;;  %v2467_v43 = vrot.slane %v2030_v41, %v4746_v40  ;;  %v2460_v46 = vrot.slane %v2030_v41, %v4751_v44  ;;  %v2453_v48 = vrot.slane %v2030_v41, %v4754_v45 }
 0x6ee   : > { %v2446_v49 = vrot.slane %v2030_v41, %v4696_v22  ;;  %v2439_v50 = vrot.slane %v2030_v41, %v4691_v18  ;;  %v2432_v52 = vrot.slane %v2030_v41, %v4685_v15  ;;  %v2810_v55 = vrot.slane %v2031_v53, %v4685_v15 }
 0x6ef   : > { %2476 = vbcast.lane.b32.xlu1 %v2474_v42, 256  ;;  %2469 = vbcast.lane.b32.xlu0 %v2467_v43, 256  ;;  %v2425_v56 = vrot.slane %v2030_v41, %v4682_v14  ;;  %v2776_v57 = vrot.slane %v2031_v53, %v4691_v18  ;;  %v2844_v58 = vrot.slane %v2031_v53, %v4682_v14 }
 0x6f0   : > { %v2708_v59 = vrot.slane %v2031_v53, %v4754_v45  ;;  %v2742_v60 = vrot.slane %v2031_v53, %v4696_v22  ;;  %v2640_v61 = vrot.slane %v2031_v53, %v4746_v40  ;;  %v2674_v62 = vrot.slane %v2031_v53, %v4751_v44  ;;  %v2026_v63 = vld [vmem:[#allocation6] sm:$0xff] }
 0x6f1   : > { %v2149_v0 = vrot.slane %v2026_v63, %v4682_v14  ;;  %v2606_v1 = vrot.slane %v2031_v53, %v4743_v39  ;;  %v2156_v4 = vrot.slane %v2026_v63, %v4685_v15  ;;  %v2170_v5 = vrot.slane %v2026_v63, %v4696_v22 }
 0x6f2   : > { %v2163_v6 = vrot.slane %v2026_v63, %v4691_v18  ;;  %v2184_v7 = vrot.slane %v2026_v63, %v4751_v44  ;;  %v2177_v9 = vrot.slane %v2026_v63, %v4754_v45  ;;  %v2198_v16 = vrot.slane %v2026_v63, %v4743_v39 }
 0x6f3   : > { %2462 = vbcast.lane.b32.xlu1 %v2460_v46, 256  ;;  %2455 = vbcast.lane.b32.xlu0 %v2453_v48, 256  ;;  %v2191_v10 = vrot.slane %v2026_v63, %v4746_v40 }
 0x6f7   : > { %2448 = vbcast.lane.b32.xlu1 %v2446_v49, 256  ;;  %2441 = vbcast.lane.b32.xlu0 %v2439_v50, 256 }
 0x6fb   : > { %1822 = vrot.lane.b32.xlu1 %v1742_v23, %s4307_s7  ;;  %2434 = vbcast.lane.b32.xlu0 %v2432_v52, 256  ;;  %s5217_s7 = sld [smem:[#allocation32_spill]]  ;;  %v2889_v52 = vsub.f32 0.0, %v4677_v13 }
 0x6ff   : > { %2812 = vbcast.lane.b32.xlu0 %v2810_v55, 256  ;;  %2427 = vbcast.lane.b32.xlu1 %v2425_v56, 256  ;;  %v2035_v55 = vunpack.c.l.s4 %v4310_v54 }
 0x701   : > { %v3699_v27 = vld [vmem:[%s5217_s7] ss:$0 sm:$0xff]  ;;  %s5220_s7 = sld [smem:[#allocation26_spill]] }
 0x703   : > { %2778 = vbcast.lane.b32.xlu0 %v2776_v57, 256  ;;  %2846 = vbcast.lane.b32.xlu1 %v2844_v58, 256  ;;  %v2890_v57 = vmul.f32 1.442695, %v2889_v52  ;;  %v2036_v58 = vunpack.c.0.s8 %v2035_v55 }
 0x707   : > { %2710 = vbcast.lane.b32.xlu0 %v2708_v59, 256  ;;  %2744 = vbcast.lane.b32.xlu1 %v2742_v60, 256 }
 0x70b   : > { %2642 = vbcast.lane.b32.xlu0 %v2640_v61, 256  ;;  %2676 = vbcast.lane.b32.xlu1 %v2674_v62, 256  ;;  %v4791_v61 = vsub.s32 %v2036_v58, %v4675_v12 }
 0x70f   : > { %2151 = vbcast.lane.b32.xlu0 %v2149_v0, 256  ;;  %2608 = vbcast.lane.b32.xlu1 %v2606_v1, 256  ;;  %v4796_v1 = vld [vmem:[#allocation9] sm:$0xff] }
 0x710   : > { %v2487_v12 = vcombine.high %v4796_v1, %v4796_v1 }
 0x713   : > { %2158 = vbcast.lane.b32.xlu0 %v2156_v4, 256  ;;  %2920 = vrot.lane.b32.xlu1 %v2918_v3, %s5163_s10 }
 0x717   : > { %2172 = vbcast.lane.b32.xlu0 %v2170_v5, 256  ;;  %2165 = vbcast.lane.b32.xlu1 %v2163_v6, 256 }
 0x71b   : > { %2186 = vbcast.lane.b32.xlu0 %v2184_v7, 256  ;;  %2179 = vbcast.lane.b32.xlu1 %v2177_v9, 256 }
 0x71f   : > { %2200 = vbcast.lane.b32.xlu0 %v2198_v16, 256  ;;  %2193 = vbcast.lane.b32.xlu1 %v2191_v10, 256 }
 0x724   : > { %v1799_v17 = vpop.f32.mrf.mxu0 }
 0x725   : > { %v1800_v19 = vadd.f32 %v3691_v11, %v1799_v17 }
 0x726   : > { %v3846_v20 = vpop.f32.mrf.mxu0 }
 0x727   : > { %v1806_v21 = vand.u32 2147483647, %v1800_v19  ;;  %v1805_v42 = vmax.f32 %v1800_v19, 0.0  ;;  %v4807_v20 = vld [vmem:[%s5218_s18] sm:$0xff]  ;;  %s5221_s18 = sld [smem:[#allocation34_spill]] }
 0x728   : > { %v1802_v23 = vpop.f32.mrf.mxu0 }
 0x729   : > { %v1807_v24 = vsub.f32 0.0, %v1806_v21  ;;  %v2501_v21 = vrot.slane %v2487_v12, %v4791_v61 }
 0x72a   : > { %v3847_v25 = vpop.f32.mrf.mxu0 }
 0x72b   : > { %v1808_v26 = vmul.f32 1.442695, %v1807_v24 }
 0x72d   : > { %4106 = vpow2.f32 %v1808_v26 }
 0x734   : > { %v1996_v28 = vpop.f32.mrf.mxu0 }
 0x735   : > { %v1997_v29 = vadd.f32 %v3699_v27, %v1996_v28 }
 0x736   : > { %v3864_v30 = vpop.f32.mrf.mxu0 }
 0x737   : > { %v2003_v31 = vand.u32 2147483647, %v1997_v29  ;;  %v2002_v50 = vmax.f32 %v1997_v29, 0.0  ;;  %v2503_v30 = vcombine.high %v2501_v21, %v2501_v21 }
 0x738   : > { %v1999_v32 = vpop.f32.mrf.mxu0 }
 0x739   : > { %v2004_v33 = vsub.f32 0.0, %v2003_v31 }
 0x73a   : > { %v4107_v34 = vpop.eup %4106  ;;  %v3865_v35 = vpop.f32.mrf.mxu0 }
 0x73b   : > { %v1810_v36 = vadd.f32 1.0, %v4107_v34  ;;  %v2005_v37 = vmul.f32 1.442695, %v2004_v33 }
 0x73d   : > { %4108 = vlog2.f32 %v1810_v36 }
 0x73e   : > { %4110 = vpow2.f32 %v2005_v37 }
 0x74a   : > { %v4109_v38 = vpop.eup %4108 }
 0x74b   : > { %v4111_v41 = vpop.eup %4110  ;;  %v1812_v43 = vmul.f32 0.6931472, %v4109_v38 }
 0x74c   : > { %v2007_v46 = vadd.f32 1.0, %v4111_v41  ;;  %v4827_v41 = vrot.slane %v2503_v30, %v4791_v61 }
 0x74d   : > { %v1813_v48 = vadd.f32 %v1812_v43, %v1805_v42 }
 0x74e   : > { %4112 = vlog2.f32 %v2007_v46  ;;  %v2535_v52 = vcombine.high %v4827_v41, %v4827_v41  ;;  %v2559_v30 = vrot.slane %v4827_v41, %v4682_v14 }
 0x74f   : > { %1815 = vst.msk [vmem:[#allocation5] sm:$0xff] %vm1304_vm2, %v1813_v48  ;;  %4114 = vpow2.f32 %v2890_v57 }
 0x75b   : > { %v4113_v49 = vpop.eup %4112 }
 0x75c   : > { %v2009_v51 = vmul.f32 0.6931472, %v4113_v49  ;;  %v4115_v19 = vpop.eup %4114 }
 0x75d   : > { %v2892_v27 = vadd.f32 1.0, %v4115_v19 }
 0x75e   : > { %v2010_v53 = vadd.f32 %v2009_v51, %v2002_v50 }
 0x760   : > { %2012 = vst.msk [vmem:[#allocation10] sm:$0xff] %vm1304_vm2, %v2010_v53  ;;  %v4841_v53 = vrot.slane %v2501_v21, %v4791_v61 }
 0x761   : > { %v4786_v56 = vpop.permute.xlu1 %2476  ;;  %v2470_v17 = vpop.permute.xlu0 %2469 }
 0x762   : > { %v2555_v41 = vrot.slane %v4841_v53, %v4682_v14 }
 0x765   : > { %v4788_v59 = vpop.permute.xlu1 %2462  ;;  %v4822_v35 = vpop.permute.xlu0 %2455 }
 0x767   : > { %v2028_v60 = vld [vmem:[#allocation10] sm:$0xff] }
 0x768   : > { %v2309_v62 = vcombine.high %v2028_v60, %v2028_v60  ;;  %v2316_v4 = vrot.slane %v2028_v60, %v4791_v61 }
 0x769   : > { %v4793_v63 = vpop.permute.xlu1 %2448  ;;  %v4835_v50 = vpop.permute.xlu0 %2441 }
 0x76a   : > { %v2323_v0 = vrot.slane %v2309_v62, %v4791_v61  ;;  %v2324_v10 = vcombine.high %v2316_v4, %v2316_v4  ;;  %v2332_v32 = vrot.slane %v2316_v4, %v4791_v61  ;;  %v2567_v62 = vrot.slane %v2535_v52, %v4682_v14 }
 0x76c   : > { %v2325_v2 = vcombine.high %v2323_v0, %v2323_v0  ;;  %v2339_v3 = vrot.slane %v2323_v0, %v4791_v61  ;;  %v2346_v26 = vrot.slane %v2324_v10, %v4791_v61  ;;  %v2354_v42 = vcombine.high %v2332_v32, %v2332_v32 }
 0x76d   : > { %v1823_v5 = vpop.permute.xlu1 %1822  ;;  %v2533_v0 = vcombine.high %v4841_v53, %v4841_v53 }
 0x76e   : > { %v2353_v6 = vrot.slane %v2325_v2, %v4791_v61  ;;  %v2355_v7 = vcombine.high %v2339_v3, %v2339_v3  ;;  %1825 = vst.msk [vmem:[#allocation7] sm:$0xff] %vm1820_vm5, %v1823_v5  ;;  %v4817_v31 = vrot.slane %v2339_v3, %v4682_v14  ;;  %v2356_v36 = vcombine.high %v2346_v26, %v2346_v26  ;;  %v4858_v5 = vpop.permute.xlu0 %2434 }
 0x76f   : > { %v4846_v57 = vrot.slane %v2354_v42, %v4682_v14  ;;  %v2494_v2 = vrot.slane %v4796_v1, %v4791_v61  ;;  %v2563_v19 = vrot.slane %v2533_v0, %v4682_v14 }
 0x770   : > { %v2357_v9 = vcombine.high %v2353_v6, %v2353_v6  ;;  %v2385_v16 = vrot.slane %v2355_v7, %v4682_v14  ;;  %v4813_v25 = vrot.slane %v2353_v6, %v4682_v14  ;;  %v2402_v46 = vmul.f32 %v4817_v31, %v4807_v20 }
 0x771   : > { %v4832_v48 = vrot.slane %v2356_v36, %v4682_v14  ;;  %v2400_v4 = vmul.f32 %v4846_v57, %v4807_v20  ;;  %v2502_v21 = vcombine.high %v2494_v2, %v2494_v2  ;;  %v4894_v42 = vrot.slane %v2494_v2, %v4791_v61 }
 0x772   : > { %v2389_v11 = vrot.slane %v2357_v9, %v4682_v14  ;;  %v2404_v24 = vmul.f32 %v2385_v16, %v4807_v20  ;;  %v2403_v34 = vmul.f32 %v4813_v25, %v4807_v20  ;;  %v2414_v54 = vmul.f32 1.442695, %v2402_v46 }
 0x773   : > { %v2401_v55 = vmul.f32 %v4832_v48, %v4807_v20  ;;  %v2484_v9 = vmul.f32 %v2470_v17, %v2385_v16  ;;  %v2532_v53 = vcombine.high %v4894_v42, %v4894_v42  ;;  %v2480_v2 = vmul.f32 %v4835_v50, %v4846_v57 }
 0x774   : > { %v2405_v23 = vmul.f32 %v2389_v11, %v4807_v20  ;;  %v2418_v33 = vmul.f32 1.442695, %v2404_v24  ;;  %v2416_v43 = vmul.f32 1.442695, %v2403_v34  ;;  %v2485_v58 = vmul.f32 %v4786_v56, %v2389_v11  ;;  %v4863_v56 = vpop.permute.xlu1 %2427 }
 0x775   : > { %v2027_v29 = vld [vmem:[#allocation7] sm:$0xff]  ;;  %v2412_v3 = vmul.f32 1.442695, %v2401_v55 }
 0x776   : > { %v2420_v28 = vmul.f32 1.442695, %v2405_v23  ;;  %v2623_v37 = vrot.slane %v2027_v29, %v4685_v15  ;;  %v2589_v38 = vrot.slane %v2027_v29, %v4682_v14  ;;  %v2691_v49 = vrot.slane %v2027_v29, %v4696_v22 }
 0x777   : > { %v2657_v51 = vrot.slane %v2027_v29, %v4691_v18  ;;  %v2759_v22 = vrot.slane %v2027_v29, %v4751_v44  ;;  %v2725_v60 = vrot.slane %v2027_v29, %v4754_v45  ;;  %v4861_v44 = vrot.slane %v2346_v26, %v4682_v14 }
 0x778   : > { %4116 = vpow2.f32 %v2420_v28  ;;  %2625 = vbcast.lane.b32.xlu0 %v2623_v37, 256  ;;  %2591 = vbcast.lane.b32.xlu1 %v2589_v38, 256  ;;  %v2827_v6 = vrot.slane %v2027_v29, %v4743_v39  ;;  %v2583_v7 = vmul.f32 %v2567_v62, %v2485_v58  ;;  %v2793_v10 = vrot.slane %v2027_v29, %v4746_v40  ;;  %v4879_v29 = vpop.permute.xlu0 %2812 }
 0x779   : > { %4118 = vrcp.f32 %v2892_v27  ;;  %v4869_v23 = vrot.slane %v2332_v32, %v4682_v14  ;;  %v2410_v26 = vmul.f32 1.442695, %v2400_v4  ;;  %v2399_v39 = vmul.f32 %v4861_v44, %v4807_v20  ;;  %v4062_v4 = vld [vmem:[%s5219_s11 + $0x38] sm:$0xff]  }
 0x77a   : > { %4120 = vpow2.f32 %v2418_v33  ;;  %v2582_v40 = vmul.f32 %v2563_v19, %v2484_v9  ;;  %v2483_v28 = vmul.f32 %v4788_v59, %v4813_v25  ;;  %v2524_v32 = vrot.slane %v2502_v21, %v4791_v61  ;;  %v4884_v33 = vpop.permute.xlu1 %2846  ;;  %3867 = vmatpush3.bf16.msra.mxu0 %v4062_v4 }
 0x77b   : > { %4122 = vpow2.f32 %v2416_v43  ;;  %v2408_v36 = vmul.f32 1.442695, %v2399_v39  ;;  %v2482_v25 = vmul.f32 %v4822_v35, %v4817_v31  ;;  %v2479_v9 = vmul.f32 %v4858_v5, %v4861_v44  ;;  %3868 = vmatprep.subr.bf16.mxu0 %v4304_v8 }
 0x77c   : > { %2693 = vbcast.lane.b32.xlu0 %v2691_v49, 256  ;;  %2659 = vbcast.lane.b32.xlu1 %v2657_v51, 256  ;;  %4124 = vpow2.f32 %v2414_v54  ;;  %v2581_v38 = vmul.f32 %v2559_v30, %v2483_v28  ;;  %v2534_v46 = vcombine.high %v2524_v32, %v2524_v32  ;;  %v2779_v51 = vpop.permute.xlu0 %2778  ;;  %v2478_v5 = vmul.f32 %v4863_v56, %v4869_v23 }
 0x77d   : > { %4126 = vpow2.f32 %v2412_v3  ;;  %v2580_v54 = vmul.f32 %v2555_v41, %v2482_v25  ;;  %v4065_v41 = vld [vmem:[%s5219_s11 + $0x20] sm:$0xff]  }
 0x77e   : > { %4128 = vpow2.f32 %v2410_v26  ;;  %v2745_v52 = vpop.permute.xlu1 %2744  ;;  %v2551_v35 = vrot.slane %v2534_v46, %v4682_v14 }
 0x77f   : > { %4130 = vpow2.f32 %v2408_v36 }
 0x780   : > { %2761 = vbcast.lane.b32.xlu0 %v2759_v22, 256  ;;  %2727 = vbcast.lane.b32.xlu1 %v2725_v60, 256  ;;  %v2481_v22 = vmul.f32 %v4793_v63, %v4832_v48  ;;  %v4901_v60 = vld [vmem:[#allocation5] sm:$0xff]  ;;  %v2711_v3 = vpop.permute.xlu0 %2710  ;;  %v2547_v48 = vrot.slane %v2532_v53, %v4682_v14 }
 0x782   : > { %v2579_v62 = vmul.f32 %v2551_v35, %v2481_v22  ;;  %v4938_v22 = vld [vmem:[%s5220_s7] sm:$0xff]  ;;  %s5222_s7 = sld [smem:[#allocation27_spill]] }
 0x784   : > { %2829 = vbcast.lane.b32.xlu0 %v2827_v6, 256  ;;  %2795 = vbcast.lane.b32.xlu1 %v2793_v10, 256  ;;  %v2040_v6 = vrot.slane %v4901_v60, %v4791_v61  ;;  %v2578_v10 = vmul.f32 %v2547_v48, %v2480_v2  ;;  %v2643_v26 = vpop.permute.xlu0 %2642 }
 0x785   : > { %v4117_v45 = vpop.eup %4116 }
 0x786   : > { %v2601_v12 = vmul.f32 0.0, %v4117_v45  ;;  %v4119_v11 = vpop.eup %4118  ;;  %v2677_v45 = vpop.permute.xlu1 %2676 }
 0x787   : > { %v4121_v27 = vpop.eup %4120  ;;  %v2895_v16 = vmul.f32 %v4119_v11, %v4677_v13  ;;  %v2398_v13 = vmul.f32 %v4869_v23, %v4807_v20  ;;  %v2543_v11 = vrot.slane %v2524_v32, %v4682_v14 }
 0x788   : > { %v4871_v24 = vadd.f32 %v2601_v12, %v2583_v7  ;;  %v4123_v37 = vpop.eup %4122  ;;  %v4063_v7 = vld [vmem:[%s5219_s11 + $0x30] sm:$0xff]  }
 0x789   : > { %2897 = vrot.lane.b32.xlu1 %v2895_v16, %s5163_s10  ;;  %v2406_v49 = vmul.f32 1.442695, %v2398_v13  ;;  %v4125_v20 = vpop.eup %4124  ;;  %3869 = vmatpush3.bf16.msra.mxu0 %v4063_v7  ;;  %v4064_v16 = vld [vmem:[%s5219_s11 + $0x28] sm:$0xff]  }
 0x78a   : > { %v2635_v17 = vmul.f32 %v4121_v27, %v4871_v24  ;;  %v4127_v58 = vpop.eup %4126  ;;  %v4915_v27 = vrot.slane %v2040_v6, %v4791_v61  ;;  %v2609_v28 = vpop.permute.xlu1 %2608  ;;  %3870 = vmatprep.subr.bf16.mxu0 %v4304_v8 }
 0x78b   : > { %4132 = vpow2.f32 %v2406_v49  ;;  %v4129_v12 = vpop.eup %4128  ;;  %v2610_v13 = vmul.f32 %v2609_v28, %v4871_v24 }
 0x78c   : > { %v2636_v34 = vadd.f32 %v2635_v17, %v2582_v40  ;;  %v4131_v40 = vpop.eup %4130  ;;  %v2577_v17 = vmul.f32 %v2543_v11, %v2479_v9 }
 0x78d   : > { %3871 = vmatpush3.bf16.msra.mxu0 %v4064_v16 }
 0x78e   : > { %v2669_v59 = vmul.f32 %v4123_v37, %v2636_v34  ;;  %v2644_v44 = vmul.f32 %v2643_v26, %v2636_v34  ;;  %v2539_v37 = vrot.slane %v4894_v42, %v4682_v14  ;;  %v4930_v34 = vrot.slane %v4915_v27, %v4682_v14  ;;  %3872 = vmatprep.subr.bf16.mxu0 %v4304_v8 }
 0x790   : > { %v2670_v43 = vadd.f32 %v2669_v59, %v2581_v38  ;;  %v2048_v59 = vcombine.high %v2040_v6, %v2040_v6  ;;  %v2576_v24 = vmul.f32 %v2539_v37, %v2478_v5  ;;  %v2645_v49 = vsel %vm1304_vm2, %v2644_v44, 0.0 }
 0x791   : > { %3873 = vmatpush3.bf16.msra.mxu0 %v4065_v41 }
 0x792   : > { %v2703_v55 = vmul.f32 %v4125_v20, %v2670_v43  ;;  %v2678_v39 = vmul.f32 %v2677_v45, %v2670_v43  ;;  %3874 = vmatprep.subr.bf16.mxu0 %v4304_v8  ;;  %v2122_v45 = vmul.f32 %v4930_v34, %v4938_v22 }
 0x794   : > { %v2704_v31 = vadd.f32 %v2703_v55, %v2580_v54  ;;  %v2679_v23 = vsel %vm1304_vm2, %v2678_v39, 0.0  ;;  %v2611_v54 = vsel %vm1304_vm2, %v2610_v13, 0.0  ;;  %v2130_v26 = vmul.f32 1.442695, %v2122_v45 }
 0x795   : > { %v2680_v55 = vrot.slane %v2679_v23, 4 }
 0x796   : > { %v2737_v0 = vmul.f32 %v4127_v58, %v2704_v31  ;;  %v2712_v19 = vmul.f32 %v2711_v3, %v2704_v31  ;;  %v2646_v58 = vrot.slane %v2645_v49, 4  ;;  %v2612_v3 = vrot.slane %v2611_v54, 4 }
 0x797   : > { %v2681_v6 = vadd.f32 %v2680_v55, %v2679_v23  ;;  %4134 = vpow2.f32 %v2130_v26 }
 0x798   : > { %v2738_v63 = vadd.f32 %v2737_v0, %v2579_v62  ;;  %v2713_v38 = vsel %vm1304_vm2, %v2712_v19, 0.0  ;;  %v4133_v43 = vpop.eup %4132  ;;  %v4066_v62 = vld [vmem:[%s5219_s11 + $0x18] sm:$0xff]   ;;  %v2647_v9 = vadd.f32 %v2646_v58, %v2645_v49  ;;  %v2613_v19 = vadd.f32 %v2612_v3, %v2611_v54 }
 0x799   : > { %3875 = vmatpush3.bf16.msra.mxu0 %v4066_v62 }
 0x79a   : > { %v2771_v50 = vmul.f32 %v4129_v12, %v2738_v63  ;;  %v2746_v57 = vmul.f32 %v2745_v52, %v2738_v63  ;;  %v2714_v52 = vrot.slane %v2713_v38, 4  ;;  %v4947_v63 = vrot.slane %v2048_v59, %v4791_v61  ;;  %3876 = vmatprep.subr.bf16.mxu0 %v4304_v8 }
 0x79b   : > { %v2648_v44 = vrot.slane %v2647_v9, 2  ;;  %v2614_v13 = vrot.slane %v2613_v19, 2  ;;  %v2078_v59 = vcombine.high %v4915_v27, %v4915_v27 }
 0x79c   : > { %v2772_v21 = vadd.f32 %v2771_v50, %v2578_v10  ;;  %v2747_v36 = vsel %vm1304_vm2, %v2746_v57, 0.0  ;;  %v2715_v4 = vadd.f32 %v2714_v52, %v2713_v38  ;;  %v4067_v10 = vld [vmem:[%s5219_s11 + $0x10] sm:$0xff]   ;;  %v4956_v39 = vrot.slane %v4947_v63, %v4682_v14 }
 0x79d   : > { %v2748_v42 = vrot.slane %v2747_v36, 4  ;;  %3877 = vmatpush3.bf16.msra.mxu0 %v4067_v10  ;;  %v2615_v49 = vadd.f32 %v2614_v13, %v2613_v19  ;;  %v4974_v27 = vrot.slane %v2078_v59, %v4682_v14  ;;  %v2080_v3 = vcombine.high %v4947_v63, %v4947_v63 }
 0x79e   : > { %v2805_v30 = vmul.f32 %v4131_v40, %v2772_v21  ;;  %v2780_v32 = vmul.f32 %v2779_v51, %v2772_v21  ;;  %v2716_v21 = vrot.slane %v2715_v4, 2  ;;  %3878 = vmatprep.subr.bf16.mxu0 %v4304_v8  ;;  %v2123_v38 = vmul.f32 %v4956_v39, %v4938_v22 }
 0x79f   : > { %v2749_v2 = vadd.f32 %v2748_v42, %v2747_v36  ;;  %v2124_v45 = vmul.f32 %v4974_v27, %v4938_v22 }
 0x7a0   : > { %v2806_v25 = vadd.f32 %v2805_v30, %v2577_v17  ;;  %v2781_v56 = vsel %vm1304_vm2, %v2780_v32, 0.0  ;;  %v2682_v17 = vrot.slane %v2681_v6, 2  ;;  %v4068_v30 = vld [vmem:[%s5219_s11 + $0x8] sm:$0xff]   ;;  %v2717_v37 = vadd.f32 %v2716_v21, %v2715_v4 }
 0x7a1   : > { %v2782_v46 = vrot.slane %v2781_v56, 4  ;;  %v2750_v11 = vrot.slane %v2749_v2, 2  ;;  %3879 = vmatpush3.bf16.msra.mxu0 %v4068_v30  ;;  %v2134_v19 = vmul.f32 1.442695, %v2124_v45 }
 0x7a2   : > { %v2814_v51 = vmul.f32 %v4879_v29, %v2806_v25  ;;  %v2839_v20 = vmul.f32 %v4133_v43, %v2806_v25  ;;  %v2683_v23 = vadd.f32 %v2682_v17, %v2681_v6  ;;  %v2649_v43 = vadd.f32 %v2648_v44, %v2647_v9  ;;  %3880 = vmatprep.subr.bf16.mxu0 %v4304_v8 }
 0x7a3   : > { %v2783_v35 = vadd.f32 %v2782_v46, %v2781_v56  ;;  %v2751_v36 = vadd.f32 %v2750_v11, %v2749_v2  ;;  %v2616_v2 = vrot.slane %v2615_v49, 1  ;;  %v2097_v11 = vrot.slane %v2080_v3, %v4682_v14 }
 0x7a4   : > { %v2815_v31 = vsel %vm1304_vm2, %v2814_v51, 0.0  ;;  %v2840_v53 = vadd.f32 %v2839_v20, %v2576_v24  ;;  %v2718_v51 = vrot.slane %v2717_v37, 1  ;;  %v2132_v20 = vmul.f32 1.442695, %v2123_v38  ;;  %v4135_v26 = vpop.eup %4134 }
 0x7a5   : > { %v2816_v0 = vrot.slane %v2815_v31, 4  ;;  %v2784_v7 = vrot.slane %v2783_v35, 2  ;;  %v2752_v42 = vrot.slane %v2751_v36, 1  ;;  %v2684_v55 = vrot.slane %v2683_v23, 1 }
 0x7a6   : > { %v2848_v29 = vmul.f32 %v4884_v33, %v2840_v53  ;;  %v4951_v33 = vld [vmem:[#allocation4] sm:$0xff]  ;;  %v2033_v53 = vcombine.high %v4901_v60, %v4901_v60  ;;  %4136 = vpow2.f32 %v2132_v20  ;;  %v2617_v10 = vadd.f32 %v2616_v2, %v2615_v49 }
 0x7a7   : > { %v2817_v48 = vadd.f32 %v2816_v0, %v2815_v31  ;;  %v2785_v5 = vadd.f32 %v2784_v7, %v2783_v35  ;;  %v4960_v28 = vrot.slane %v4951_v33, %v4791_v61  ;;  %v2650_v35 = vrot.slane %v2649_v43, 1  ;;  %v2152_v0 = vpop.permute.xlu0 %2151 }
 0x7a8   : > { %v2849_v12 = vsel %vm1304_vm2, %v2848_v29, 0.0  ;;  %v2753_v62 = vadd.f32 %v2752_v42, %v2751_v36  ;;  %v2719_v29 = vadd.f32 %v2718_v51, %v2717_v37  ;;  %v2685_v6 = vadd.f32 %v2684_v55, %v2683_v23  ;;  %v2921_v36 = vpop.permute.xlu1 %2920 }
 0x7a9   : > { %v2818_v50 = vrot.slane %v2817_v48, 2  ;;  %v2850_v57 = vrot.slane %v2849_v12, 4  ;;  %v2786_v41 = vrot.slane %v2785_v5, 1  ;;  %v4970_v24 = vrot.slane %v4960_v28, %v4791_v61 }
 0x7aa   : > { %v2651_v60 = vadd.f32 %v2650_v35, %v2649_v43  ;;  %v2047_v21 = vrot.slane %v2033_v53, %v4791_v61  ;;  %v2584_v44 = vmul.f32 0.0, %v4135_v26  ;;  %4138 = vpow2.f32 %v2134_v19 }
 0x7ab   : > { %v2819_v16 = vadd.f32 %v2818_v50, %v2817_v48  ;;  %v2851_v40 = vadd.f32 %v2850_v57, %v2849_v12  ;;  %v2787_v31 = vadd.f32 %v2786_v41, %v2785_v5  ;;  %v2202_v12 = vmul.f32 %v2152_v0, %v4930_v34  ;;  %v2159_v5 = vpop.permute.xlu0 %2158 }
 0x7ac   : > { %v2263_v9 = vrot.slane %v4970_v24, %v4682_v14  ;;  %v2226_v50 = vcombine.high %v4960_v28, %v4960_v28  ;;  %v2125_v28 = vmul.f32 %v2097_v11, %v4938_v22  ;;  %v2063_v30 = vrot.slane %v2047_v21, %v4791_v61  ;;  %v2166_v20 = vpop.permute.xlu1 %2165 }
 0x7ad   : > { %v2852_v32 = vrot.slane %v2851_v40, 2  ;;  %v2820_v25 = vrot.slane %v2819_v16, 1  ;;  %v2203_v37 = vmul.f32 %v2159_v5, %v4956_v39  ;;  %v2256_v51 = vcombine.high %v4970_v24, %v4970_v24 }
 0x7ae   : > { %v2248_v17 = vrot.slane %v2226_v50, %v4791_v61  ;;  %v2101_v23 = vrot.slane %v2063_v30, %v4682_v14  ;;  %v2079_v2 = vcombine.high %v2063_v30, %v2063_v30 }
 0x7af   : > { %v2853_v56 = vadd.f32 %v2852_v32, %v2851_v40  ;;  %v2821_v52 = vadd.f32 %v2820_v25, %v2819_v16  ;;  %v2300_v16 = vmul.f32 %v2263_v9, %v2202_v12  ;;  %v4069_v40 = vld [vmem:[%s5219_s11] sm:$0xff]   ;;  %v2136_v25 = vmul.f32 1.442695, %v2125_v28  ;;  %v2173_v3 = vpop.permute.xlu0 %2172  ;;  %s4311_s11 = smov [#allocation17]  }
 0x7b0   : > { %3881 = vmatpush3.bf16.msra.mxu0 %v4069_v40  ;;  %v3702_v32 = vld [vmem:[%s5221_s18] ss:$0 sm:$0xff]  ;;  %v2267_v38 = vrot.slane %v2248_v17, %v4682_v14  ;;  %v2205_v45 = vmul.f32 %v2173_v3, %v2097_v11  ;;  %s5223_s18 = sld [smem:[#allocation38_spill]]  ;;  %s4198_s12 = sshll.u32 %s4311_s11, 4  ;;  %s4199_s12 = int_to_ptr.vmem [resolvable:$false] %s4198_s12 }
 0x7b1   : > { %v2854_v46 = vrot.slane %v2853_v56, 1  ;;  %3914 = vmatprep.subr.bf16.mxu0 %v4304_v8  ;;  %v5003_v13 = vadd.f32 %v2584_v44, %v2300_v16  ;;  %v2910_v59 = vmul.f32 %v3702_v32, %v4796_v1  ;;  %4140 = vpow2.f32 %v2136_v25 }
 0x7b2   : > { %v2126_v1 = vmul.f32 %v2101_v23, %v4938_v22 }
 0x7b3   : > { %v2855_v54 = vadd.f32 %v2854_v46, %v2853_v56  ;;  %v2049_v56 = vcombine.high %v2047_v21, %v2047_v21  ;;  %v4137_v41 = vpop.eup %4136  ;;  %v2301_v46 = vmul.f32 %v2267_v38, %v2203_v37  ;;  %v2187_v30 = vpop.permute.xlu0 %2186 }
 0x7b4   : > { %v2618_v49 = vmul.f32 %v4137_v41, %v5003_v13  ;;  %v2138_v53 = vmul.f32 1.442695, %v2126_v1 }
 0x7b5   : > { %v2870_v58 = vsel %vm1761_vm3, %v2855_v54, %v2821_v52  ;;  %v2077_v39 = vrot.slane %v2049_v56, %v4791_v61  ;;  %v2204_v54 = vmul.f32 %v2166_v20, %v4974_v27  ;;  %v2258_v27 = vcombine.high %v2248_v17, %v2248_v17 }
 0x7b6   : > { %v2871_v4 = vsel %vm2857_vm6, %v2870_v58, %v2787_v31  ;;  %v2619_v55 = vadd.f32 %v2618_v49, %v2301_v46  ;;  %v2271_v31 = vrot.slane %v2256_v51, %v4682_v14  ;;  %4142 = vpow2.f32 %v2138_v53 }
 0x7b7   : > { %v2872_v48 = vsel %vm2859_vm7, %v2871_v4, %v2753_v62  ;;  %v2105_v35 = vrot.slane %v2077_v39, %v4682_v14  ;;  %v4139_v58 = vpop.eup %4138 }
 0x7b8   : > { %v2873_v7 = vsel %vm2861_vm8, %v2872_v48, %v2719_v29  ;;  %v2302_v62 = vmul.f32 %v2271_v31, %v2204_v54  ;;  %v2652_v24 = vmul.f32 %v4139_v58, %v2619_v55  ;;  %v2211_v29 = vcombine.high %v4951_v33, %v4951_v33 }
 0x7b9   : > { %v2874_v63 = vsel %vm2863_vm9, %v2873_v7, %v2685_v6  ;;  %v2127_v0 = vmul.f32 %v2105_v35, %v4938_v22  ;;  %v2109_v6 = vrot.slane %v2079_v2, %v4682_v14  ;;  %v2275_v7 = vrot.slane %v2258_v27, %v4682_v14 }
 0x7ba   : > { %v2875_v57 = vsel %vm2865_vm10, %v2874_v63, %v2651_v60  ;;  %v2653_v4 = vadd.f32 %v2652_v24, %v2302_v62  ;;  %v2225_v12 = vrot.slane %v2211_v29, %v4791_v61  ;;  %v2207_v37 = vmul.f32 %v2187_v30, %v2105_v35 }
 0x7bb   : > { %v2876_v34 = vsel %vm2867_vm11, %v2875_v57, %v2617_v10  ;;  %v2140_v48 = vmul.f32 1.442695, %v2127_v0  ;;  %v2303_v9 = vmul.f32 %v2275_v7, %v2205_v45  ;;  %v2081_v10 = vcombine.high %v2077_v39, %v2077_v39  ;;  %v2180_v57 = vpop.permute.xlu1 %2179 }
 0x7bc   : > { %2877 = vst.msk [vmem:[#allocation13] sm:$0xff] %vm1304_vm2, %v2876_v34  ;;  %v2128_v50 = vmul.f32 %v2109_v6, %v4938_v22  ;;  %v2241_v19 = vrot.slane %v2225_v12, %v4791_v61  ;;  %v2206_v26 = vmul.f32 %v2180_v57, %v2101_v23  ;;  %v2227_v40 = vcombine.high %v2225_v12, %v2225_v12 }
 0x7bd   : > { %4144 = vpow2.f32 %v2140_v48  ;;  %v2113_v11 = vrot.slane %v2081_v10, %v4682_v14 }
 0x7be   : > { %v4141_v60 = vpop.eup %4140  ;;  %v2142_v34 = vmul.f32 1.442695, %v2128_v50  ;;  %v2279_v17 = vrot.slane %v2241_v19, %v4682_v14  ;;  %v2255_v32 = vrot.slane %v2227_v40, %v4791_v61 }
 0x7bf   : > { %v2686_v63 = vmul.f32 %v4141_v60, %v2653_v4  ;;  %v2129_v28 = vmul.f32 %v2113_v11, %v4938_v22  ;;  %v2194_v41 = vpop.permute.xlu1 %2193 }
 0x7c0   : > { %v2304_v44 = vmul.f32 %v2279_v17, %v2206_v26  ;;  %4146 = vpow2.f32 %v2142_v34  ;;  %v2283_v25 = vrot.slane %v2255_v32, %v4682_v14  ;;  %v2208_v49 = vmul.f32 %v2194_v41, %v2109_v6 }
 0x7c1   : > { %v2687_v21 = vadd.f32 %v2686_v63, %v2303_v9  ;;  %v2144_v38 = vmul.f32 1.442695, %v2129_v28  ;;  %v2259_v31 = vcombine.high %v2255_v32, %v2255_v32 }
 0x7c2   : > { %v2305_v23 = vmul.f32 %v2283_v25, %v2207_v37 }
 0x7c3   : > { %v2901_v43 = vld [vmem:[#allocation13] sm:$0xff]  ;;  %v4143_v16 = vpop.eup %4142  ;;  %4148 = vpow2.f32 %v2144_v38 }
 0x7c4   : > { %v2911_v42 = vadd.f32 %v2910_v59, %v2901_v43  ;;  %v2720_v5 = vmul.f32 %v4143_v16, %v2687_v21  ;;  %v2257_v43 = vcombine.high %v2241_v19, %v2241_v19 }
 0x7c6   : > { %v2923_v52 = vmul.f32 %v2921_v36, %v2911_v42  ;;  %v2721_v36 = vadd.f32 %v2720_v5, %v2304_v44  ;;  %v2201_v42 = vpop.permute.xlu0 %2200  ;;  %v2287_v22 = vrot.slane %v2257_v43, %v4682_v14 }
 0x7c7   : > { %v2209_v0 = vmul.f32 %v2201_v42, %v2113_v11 }
 0x7c8   : > { %2925 = vrot.lane.b32.xlu0 %v2923_v52, %s5163_s10  ;;  %v2306_v61 = vmul.f32 %v2287_v22, %v2208_v49  ;;  %s5225_s10 = sld [smem:[#allocation37_spill]] }
 0x7ca   : > { %v4145_v59 = vpop.eup %4144 }
 0x7cb   : > { %v2754_v56 = vmul.f32 %v4145_v59, %v2721_v36 }
 0x7cd   : > { %v2755_v46 = vadd.f32 %v2754_v56, %v2305_v23  ;;  %v4147_v51 = vpop.eup %4146 }
 0x7cf   : > { %v2788_v20 = vmul.f32 %v4147_v51, %v2755_v46 }
 0x7d0   : > { %v4149_v27 = vpop.eup %4148 }
 0x7d1   : > { %v2789_v53 = vadd.f32 %v2788_v20, %v2306_v61 }
 0x7d3   : > { %v2822_v60 = vmul.f32 %v4149_v27, %v2789_v53 }
 0x7ea   : > { %v2626_v52 = vpop.permute.xlu0 %2625  ;;  %v2592_v1 = vpop.permute.xlu1 %2591 }
 0x7eb   : > { %v2627_v39 = vmul.f32 %v2626_v52, %v2619_v55  ;;  %v2593_v54 = vmul.f32 %v2592_v1, %v5003_v13  ;;  %v2291_v55 = vrot.slane %v2259_v31, %v4682_v14 }
 0x7ed   : > { %v2628_v35 = vsel %vm1304_vm2, %v2627_v39, 0.0  ;;  %v2594_v62 = vsel %vm1304_vm2, %v2593_v54, 0.0  ;;  %v2307_v10 = vmul.f32 %v2291_v55, %v2209_v0 }
 0x7ee   : > { %v2629_v58 = vrot.slane %v2628_v35, 4  ;;  %v2694_v24 = vpop.permute.xlu0 %2693  ;;  %v2595_v2 = vrot.slane %v2594_v62, 4  ;;  %v2660_v29 = vpop.permute.xlu1 %2659 }
 0x7ef   : > { %v2695_v3 = vmul.f32 %v2694_v24, %v2687_v21  ;;  %v2661_v48 = vmul.f32 %v2660_v29, %v2653_v4  ;;  %v2823_v17 = vadd.f32 %v2822_v60, %v2307_v10 }
 0x7f0   : > { %v2630_v45 = vadd.f32 %v2629_v58, %v2628_v35  ;;  %v2596_v6 = vadd.f32 %v2595_v2, %v2594_v62 }
 0x7f1   : > { %v2696_v13 = vsel %vm1304_vm2, %v2695_v3, 0.0  ;;  %v2662_v63 = vsel %vm1304_vm2, %v2661_v48, 0.0 }
 0x7f2   : > { %v2631_v7 = vrot.slane %v2630_v45, 2  ;;  %v2697_v12 = vrot.slane %v2696_v13, 4  ;;  %v2762_v9 = vpop.permute.xlu0 %2761  ;;  %v2597_v50 = vrot.slane %v2596_v6, 2  ;;  %v2663_v57 = vrot.slane %v2662_v63, 4  ;;  %v2728_v21 = vpop.permute.xlu1 %2727 }
 0x7f3   : > { %v2763_v19 = vmul.f32 %v2762_v9, %v2755_v46  ;;  %v2729_v34 = vmul.f32 %v2728_v21, %v2721_v36  ;;  %v3701_v21 = vld [vmem:[%s5222_s7] ss:$0 sm:$0xff]  ;;  %s5224_s7 = sld [smem:[#allocation36_spill]] }
 0x7f4   : > { %v2632_v26 = vadd.f32 %v2631_v7, %v2630_v45  ;;  %v2698_v11 = vadd.f32 %v2697_v12, %v2696_v13  ;;  %v2598_v4 = vadd.f32 %v2597_v50, %v2596_v6  ;;  %v2664_v16 = vadd.f32 %v2663_v57, %v2662_v63 }
 0x7f5   : > { %v2764_v40 = vsel %vm1304_vm2, %v2763_v19, 0.0  ;;  %v2730_v30 = vsel %vm1304_vm2, %v2729_v34, 0.0 }
 0x7f6   : > { %v2633_v5 = vrot.slane %v2632_v26, 1  ;;  %v2699_v44 = vrot.slane %v2698_v11, 2  ;;  %v2765_v28 = vrot.slane %v2764_v40, 4  ;;  %v2830_v32 = vpop.permute.xlu0 %2829  ;;  %v2599_v37 = vrot.slane %v2598_v4, 1  ;;  %v2796_v56 = vpop.permute.xlu1 %2795 }
 0x7f7   : > { %v2665_v38 = vrot.slane %v2664_v16, 2  ;;  %v2731_v59 = vrot.slane %v2730_v30, 4  ;;  %v2831_v25 = vmul.f32 %v2830_v32, %v2823_v17  ;;  %v2797_v36 = vmul.f32 %v2796_v56, %v2789_v53 }
 0x7f8   : > { %v2634_v23 = vadd.f32 %v2633_v5, %v2632_v26  ;;  %v2700_v41 = vadd.f32 %v2699_v44, %v2698_v11  ;;  %v2766_v43 = vadd.f32 %v2765_v28, %v2764_v40  ;;  %v2600_v46 = vadd.f32 %v2599_v37, %v2598_v4 }
 0x7f9   : > { %v2666_v42 = vadd.f32 %v2665_v38, %v2664_v16  ;;  %v2732_v49 = vadd.f32 %v2731_v59, %v2730_v30  ;;  %v2832_v51 = vsel %vm1304_vm2, %v2831_v25, 0.0  ;;  %v2798_v61 = vsel %vm1304_vm2, %v2797_v36, 0.0 }
 0x7fa   : > { %v2701_v22 = vrot.slane %v2700_v41, 1  ;;  %v2767_v20 = vrot.slane %v2766_v43, 2  ;;  %v2833_v52 = vrot.slane %v2832_v51, 4  ;;  %v2799_v54 = vrot.slane %v2798_v61, 4 }
 0x7fb   : > { %v2667_v39 = vrot.slane %v2666_v42, 1  ;;  %v2733_v1 = vrot.slane %v2732_v49, 2  ;;  %v2856_v53 = vsel %vm1761_vm3, %v2600_v46, %v2634_v23  ;;  %v2887_v11 = vmul.f32 %v3701_v21, %v4951_v33  ;;  %v2898_v4 = vpop.permute.xlu1 %2897 }
 0x7fc   : > { %v2768_v31 = vadd.f32 %v2767_v20, %v2766_v43  ;;  %v2834_v35 = vadd.f32 %v2833_v52, %v2832_v51  ;;  %v2800_v24 = vadd.f32 %v2799_v54, %v2798_v61  ;;  %v2702_v0 = vadd.f32 %v2701_v22, %v2700_v41  ;;  %v4070_v41 = vld [vmem:[%s5223_s18 + $0x8] sm:$0xff]   ;;  %v3712_v22 = vld [vmem:[%s5225_s10] ss:$0 sm:$0xff]  ;;  %s5228_s10 = sld [smem:[#allocation40_spill]] }
 0x7fd   : > { %v2668_v58 = vadd.f32 %v2667_v39, %v2666_v42  ;;  %v2734_v62 = vadd.f32 %v2733_v1, %v2732_v49  ;;  %3887 = vmatpush3.bf16.msra.mxu1 %v4070_v41  ;;  %v3711_v49 = vld [vmem:[%s5224_s7] ss:$0 sm:$0xff]  ;;  %s5230_s7 = sld [smem:[#allocation41_spill]] }
 0x7fe   : > { %v2769_v2 = vrot.slane %v2768_v31, 1  ;;  %v2835_v3 = vrot.slane %v2834_v35, 2  ;;  %v2801_v45 = vrot.slane %v2800_v24, 2  ;;  %3888 = vmatprep.subr.bf16.mxu1 %v4304_v8  ;;  %v3713_v39 = vld [vmem:[%s5226_s1] ss:$0 sm:$0xff]  ;;  %s5229_s1 = smov 64  }
 0x7ff   : > { %v2858_v29 = vsel %vm2857_vm6, %v2856_v53, %v2668_v58  ;;  %v2735_v27 = vrot.slane %v2734_v62, 1 }
 0x800   : > { %v2836_v48 = vadd.f32 %v2835_v3, %v2834_v35  ;;  %v2802_v6 = vadd.f32 %v2801_v45, %v2800_v24  ;;  %v2770_v13 = vadd.f32 %v2769_v2, %v2768_v31  ;;  %v2860_v60 = vsel %vm2859_vm7, %v2858_v29, %v2702_v0  ;;  %v4072_v2 = vld [vmem:[%s5227_s3 + $0x18] sm:$0xff]   ;;  %v4073_v3 = vld [vmem:[%s5227_s3 + $0x10] sm:$0xff]   ;;  %v4074_v29 = vld [vmem:[%s5227_s3 + $0x8] sm:$0xff]  }
 0x801   : > { %v2736_v55 = vadd.f32 %v2735_v27, %v2734_v62  ;;  %v4075_v45 = vld [vmem:[%s5227_s3] sm:$0xff]  }
 0x802   : > { %v2837_v7 = vrot.slane %v2836_v48, 1  ;;  %v2803_v63 = vrot.slane %v2802_v6, 1 }
 0x803   : > { %v2862_v12 = vsel %vm2861_vm8, %v2860_v60, %v2736_v55  ;;  %v3717_v21 = vld [vmem:[%s5230_s7] ss:$0 sm:$0xff]  ;;  %s5237_s7 = sld [smem:[#allocation50_spill]] }
 0x804   : > { %v2838_v9 = vadd.f32 %v2837_v7, %v2836_v48  ;;  %v2804_v10 = vadd.f32 %v2803_v63, %v2802_v6  ;;  %v2864_v50 = vsel %vm2863_vm9, %v2862_v12, %v2770_v13  ;;  %v3143_v6 = vld [vmem:[%s5228_s10] sm:$0x7]  ;;  %s5236_s10 = sld [smem:[#allocation47_spill]] }
 0x805   : > { %v3148_v13 = vrot.slane %v3143_v6, %v4682_v14  ;;  %v3155_v60 = vrot.slane %v3143_v6, %v4685_v15  ;;  %v3162_v7 = vrot.slane %v3143_v6, %v4691_v18 }
 0x806   : > { %v2866_v57 = vsel %vm2865_vm10, %v2864_v50, %v2804_v10 }
 0x807   : > { %v2868_v19 = vsel %vm2867_vm11, %v2866_v57, %v2838_v9 }
 0x808   : > { %2869 = vst.msk [vmem:[#allocation8] sm:$0xff] %vm1304_vm2, %v2868_v19 }
 0x80f   : > { %v2878_v26 = vld [vmem:[#allocation8] sm:$0xff] }
 0x810   : > { %v2888_v34 = vadd.f32 %v2887_v11, %v2878_v26  ;;  %v3718_v11 = vld [vmem:[%s5231_s4] ss:$0 sm:$0xff]  ;;  %s5234_s4 = sld [smem:[#allocation48_spill]] }
 0x812   : > { %v2900_v16 = vmul.f32 %v2898_v4, %v2888_v34  ;;  %v3719_v4 = vld [vmem:[%s5232_s5] ss:$0 sm:$0xff]  ;;  %s5235_s5 = sld [smem:[#allocation46_spill]] }
 0x83a   : > { %v2926_v40 = vpop.permute.xlu0 %2925 }
 0x83b   : > { %v2928_v17 = vsel %vm1304_vm2, %v2900_v16, %v2926_v40 }
 0x83c   : > { %v2945_v5 = vpack.c.bf16 %v2928_v17, %v2928_v17 }
 0x83e   : > { %3883 = vmatmul.mubr.bf16.vlgmr.msra.gmra.mxu0 %v2945_v5 }
 0x83f   : > { %3930 = vmatprep.mubr.msk.bf16.mxu0 %vm4305_vm1, %v4304_v8 }
 0x8fe   : > { %v3028_v44 = vpop.f32.mrf.mxu0 }
 0x8ff   : > { %v5056_v28 = vadd.f32 %v3028_v44, %v4643_v47  ;;  %v4071_v47 = vld [vmem:[%s5223_s18] sm:$0xff]  }
 0x900   : > { %v3884_v30 = vpop.f32.mrf.mxu0  ;;  %3889 = vmatpush3.bf16.msra.mxu1 %v4071_v47 }
 0x901   : > { %v3037_v33 = vsel %vm1312_vm0, %v5056_v28, 0.0  ;;  %3894 = vmatprep.subr.bf16.mxu1 %v4304_v8 }
 0x902   : > { %3038 = vadd.xlane.f32.xlu1 %v3037_v33  ;;  %v3031_v32 = vpop.f32.mrf.mxu0 }
 0x904   : > { %v3885_v37 = vpop.f32.mrf.mxu0 }
 0x98b   : > { %v3039_v38 = vpop.xlane.xlu1 %3038 }
 0x98c   : > { %v3040_v59 = vmul.f32 0.03125, %v3039_v38 }
 0x98e   : > { %v3041_v25 = vsub.f32 %v5056_v28, %v3040_v59 }
 0x990   : > { %v3042_v56 = vmul.f32 %v3041_v25, %v3041_v25 }
 0x992   : > { %v3043_v23 = vsel %vm1312_vm0, %v3042_v56, 0.0 }
 0x993   : > { %3044 = vadd.xlane.f32.xlu0 %v3043_v23 }
 0xa1c   : > { %v3045_v43 = vpop.xlane.xlu0 %3044 }
 0xa1d   : > { %v3046_v36 = vmul.f32 0.03125, %v3045_v43 }
 0xa1f   : > { %v3047_v46 = vadd.f32 1e-05, %v3046_v36 }
 0xa21   : > { %4150 = vrsqrt.f32 %v3047_v46 }
 0xa2e   : > { %v4151_v42 = vpop.eup %4150 }
 0xa2f   : > { %v3049_v51 = vmul.f32 %v4151_v42, %v3041_v25  ;;  %v4076_v42 = vld [vmem:[%s5234_s4 + $0x8] sm:$0xff]  }
 0xa31   : > { %v3056_v20 = vmul.f32 %v3711_v49, %v3049_v51 }
 0xa33   : > { %v3063_v52 = vadd.f32 %v3712_v22, %v3056_v20 }
 0xa35   : > { %v3068_v61 = vpack.c.bf16 %v3063_v52, %v3063_v52  ;;  %v3726_v52 = vld [vmem:[%s5235_s5] ss:$0 sm:$0xff]  ;;  %s1296_s5 = sand.u32 1, %s4250_s23  }
 0xa36   : > { %s3528_s8 = scalar_lea.sflag [#allocation16], %s1296_s5 }
 0xa37   : > { %3891 = vmatmul.mubr.msk.bf16.vlgmr.msra.gmra.mxu1 %vm1312_vm0, %v3068_v61 }
 0xa38   : > { %3902 = vmatprep.mubr.msk.bf16.mxu1 %vm4305_vm1, %v4304_v8  ;;  %3895 = vmatpush3.bf16.msra.mxu1 %v4072_v2  ;;  %v4084_v2 = vld [vmem:[%s5237_s7 + $0x8] sm:$0xff]  }
 0xa39   : > { %3896 = vmatprep.subr.bf16.mxu1 %v4304_v8 }
 0xa3c   : > { %3897 = vmatpush3.bf16.msra.mxu1 %v4073_v3  ;;  %v4085_v3 = vld [vmem:[%s5237_s7] sm:$0xff]  }
 0xa3d   : > { %3898 = vmatprep.subr.bf16.mxu1 %v4304_v8 }
 0xa40   : > { %3899 = vmatpush3.bf16.msra.mxu1 %v4074_v29 }
 0xa41   : > { %3900 = vmatprep.subr.bf16.mxu1 %v4304_v8 }
 0xa44   : > { %3901 = vmatpush3.bf16.msra.mxu1 %v4075_v45 }
 0xa45   : > { %3906 = vmatprep.subr.bf16.mxu1 %v4304_v8 }
 0xaf7   : > { %v3125_v1 = vpop.f32.mrf.mxu1 }
 0xaf8   : > { %v3126_v54 = vadd.f32 %v3713_v39, %v3125_v1  ;;  %v3727_v39 = vld [vmem:[%s5236_s10] ss:$0 sm:$0xff]  ;;  %s3661_s10 = sshll.u32 %s1296_s5, 3 }
 0xaf9   : > { %v3892_v31 = vpop.f32.mrf.mxu1  ;;  %s1298_s3 = scalar_lea.vmem [#allocation17], %s3661_s10 }
 0xafa   : > { %v3131_v35 = vsub.f32 0.0, %v3126_v54 }
 0xafb   : > { %v3128_v58 = vpop.f32.mrf.mxu1 }
 0xafc   : > { %v3132_v62 = vmul.f32 1.442695, %v3131_v35  ;;  %v4078_v35 = vld [vmem:[%s5237_s7 + $0x38] sm:$0xff]   ;;  %v4079_v58 = vld [vmem:[%s5237_s7 + $0x30] sm:$0xff]  }
 0xafd   : > { %v3893_v24 = vpop.f32.mrf.mxu1  ;;  %3915 = vmatpush3.bf16.msra.mxu0 %v4078_v35 }
 0xafe   : > { %4152 = vpow2.f32 %v3132_v62  ;;  %3916 = vmatprep.subr.bf16.mxu0 %v4304_v8  ;;  %v4080_v62 = vld [vmem:[%s5237_s7 + $0x28] sm:$0xff]   ;;  %v4081_v24 = vld [vmem:[%s5237_s7 + $0x20] sm:$0xff]  }
 0xb01   : > { %3917 = vmatpush3.bf16.msra.mxu0 %v4079_v58 }
 0xb02   : > { %3918 = vmatprep.subr.bf16.mxu0 %v4304_v8 }
 0xb05   : > { %3919 = vmatpush3.bf16.msra.mxu0 %v4080_v62 }
 0xb06   : > { %3920 = vmatprep.subr.bf16.mxu0 %v4304_v8 }
 0xb09   : > { %3921 = vmatpush3.bf16.msra.mxu0 %v4081_v24 }
 0xb0a   : > { %3922 = vmatprep.subr.bf16.mxu0 %v4304_v8 }
 0xb0b   : > { %v4153_v53 = vpop.eup %4152 }
 0xb0c   : > { %v3134_v0 = vadd.f32 1.0, %v4153_v53  ;;  %v4082_v53 = vld [vmem:[%s5237_s7 + $0x18] sm:$0xff]  }
 0xb0d   : > { %3923 = vmatpush3.bf16.msra.mxu0 %v4082_v53 }
 0xb0e   : > { %4154 = vrcp.f32 %v3134_v0  ;;  %3924 = vmatprep.subr.bf16.mxu0 %v4304_v8  ;;  %v4083_v0 = vld [vmem:[%s5237_s7 + $0x10] sm:$0xff]  }
 0xb11   : > { %3925 = vmatpush3.bf16.msra.mxu0 %v4083_v0 }
 0xb12   : > { %3926 = vmatprep.subr.bf16.mxu0 %v4304_v8 }
 0xb15   : > { %3927 = vmatpush3.bf16.msra.mxu0 %v4084_v2 }
 0xb16   : > { %3928 = vmatprep.subr.bf16.mxu0 %v4304_v8 }
 0xb19   : > { %3929 = vmatpush3.bf16.msra.mxu0 %v4085_v3 }
 0xb1b   : > { %v4155_v27 = vpop.eup %4154 }
 0xb1c   : > { %3138 = vrot.lane.b32.xlu0 %v4155_v27, %s5229_s1  ;;  %s5233_s1 = sld [smem:[#allocation45_spill]] }
 0xb22   : > { %v3720_v33 = vld [vmem:[%s5233_s1] ss:$0 sm:$0xff]  ;;  %s5238_s1 = sld [smem:[#allocation49_spill]] }
 0xb28   : > { %v3728_v29 = vld [vmem:[%s5238_s1] ss:$0 sm:$0xff]  ;;  %s3744_s1 = sshll.u32 %s4558_s0, 7 }
 0xb29   : > { %s3539_s7 = scalar_lea.hbm %s4535_s20, %s3744_s1 }
 0xb8e   : > { %v3139_v48 = vpop.permute.xlu0 %3138 }
 0xb8f   : > { %v3141_v55 = vmul.f32 %v3139_v48, %v3126_v54 }
 0xb91   : > { %3142 = vst.msk [vmem:[#allocation3 + $0x8] sm:$0xff] %vm1304_vm2, %v3141_v55 }
 0xb98   : > { %v3144_v12 = vld [vmem:[#allocation3 + $0x7] sm:$0xff] }
 0xb99   : > { %v3151_v63 = vld [vmem:[#allocation3 + $0x8] sm:$0xff]  ;;  %v3149_v10 = vmul.f32 %v3148_v13, %v3144_v12 }
 0xb9a   : > { %v3158_v9 = vld [vmem:[#allocation3 + $0x9] sm:$0xff]  ;;  %v3156_v50 = vmul.f32 %v3155_v60, %v3151_v63 }
 0xb9b   : > { %v3163_v19 = vmul.f32 %v3162_v7, %v3158_v9 }
 0xb9c   : > { %v3157_v57 = vadd.f32 %v3156_v50, %v3149_v10  ;;  %v3732_v50 = vld [vmem:[%s4520_s27] ss:$0 sm:$0xff] }
 0xb9e   : > { %v3164_v26 = vadd.f32 %v3163_v19, %v3157_v57 }
 0xba0   : > { %v3172_v34 = vadd.f32 %v3717_v21, %v3164_v26 }
 0xba2   : > { %v3180_v16 = vmul.f32 %v3718_v11, %v3172_v34 }
 0xba4   : > { %v3188_v40 = vadd.f32 %v3719_v4, %v3180_v16 }
 0xba6   : > { %v3189_v14 = vsub.f32 0.0, %v3188_v40 }
 0xba8   : > { %v3190_v17 = vmul.f32 1.442695, %v3189_v14 }
 0xbaa   : > { %4156 = vpow2.f32 %v3190_v17 }
 0xbb7   : > { %v4157_v15 = vpop.eup %4156 }
 0xbb8   : > { %v3192_v18 = vadd.f32 1.0, %v4157_v15 }
 0xbba   : > { %4158 = vrcp.f32 %v3192_v18 }
 0xbc7   : > { %v4159_v5 = vpop.eup %4158 }
 0xbc8   : > { %v3195_v44 = vmul.f32 %v4159_v5, %v3188_v40 }
 0xbca   : > { %v3204_v30 = vpack.c.bf16 %v3195_v44, %v3195_v44 }
 0xbcc   : > { %3903 = vmatmul.mubr.msk.bf16.vlgmr.msra.gmra.mxu1 %vm1304_vm2, %v3204_v30 }
 0xbcd   : > { %3910 = vmatprep.mubr.msk.bf16.mxu1 %vm4305_vm1, %v4304_v8  ;;  %3907 = vmatpush3.bf16.msra.mxu1 %v4076_v42 }
 0xbce   : > { %3908 = vmatprep.subr.bf16.mxu1 %v4304_v8 }
 0xc8c   : > { %v3273_v32 = vpop.f32.mrf.mxu1 }
 0xc8d   : > { %v3274_v37 = vadd.f32 %v3720_v33, %v3273_v32  ;;  %v3741_v33 = vld [vmem:[%s5239_s6] ss:$0 sm:$0xff]  ;;  %s4200_s6 = scalar_lea.vmem %s4199_s12, 256 }
 0xc8e   : > { %v3904_v38 = vpop.f32.mrf.mxu1 }
 0xc8f   : > { %v5094_v59 = vadd.f32 %v3274_v37, %v5056_v28  ;;  %v4077_v28 = vld [vmem:[%s5234_s4] sm:$0xff]   ;;  %s3541_s4 = sshll.u32 %s1298_s3, 4  ;;  %s3542_s4 = int_to_ptr.vmem [resolvable:$true] %s3541_s4 }
 0xc90   : > { %v3276_v25 = vpop.f32.mrf.mxu1  ;;  %3909 = vmatpush3.bf16.msra.mxu1 %v4077_v28  ;;  %v3742_v37 = vld [vmem:[#allocation14] ss:$0 sm:$0xff]  ;;  %s4194_s9 = scalar_lea.vmem %s3542_s4, 128  ;;  %p4201_p13 = scmp.lt.s32.totalorder %s3542_s4, %s4199_s12 }
 0xc91   : > { %v3282_v56 = vsel %vm1312_vm0, %v5094_v59, 0.0  ;;  %p4195_p9 = scmp.ne.s32.totalorder %s3542_s4, %s4194_s9  ;;  %p4202_p0 = scmp.lt.s32.totalorder %s4200_s6, %s4194_s9 }
 0xc92   : > { %3283 = vadd.xlane.f32.xlu1 %v3282_v56  ;;  %v3905_v23 = vpop.f32.mrf.mxu1 }
 0xc93   : > { %p4196_p10 = pnand %p4195_p9, %p4575_p5  ;;  %p4203_p1 = por %p4202_p0, %p4201_p13 }
 0xc95   : > { %p4197_p12 = pneg %p4196_p10 }
 0xc97   : > { %p4204_p2 = pnand %p4203_p1, %p4197_p12 }
 0xd1b   : > { %v3284_v41 = vpop.xlane.xlu1 %3283 }
 0xd1c   : > { %v3285_v47 = vmul.f32 0.03125, %v3284_v41 }
 0xd1e   : > { %v3286_v43 = vsub.f32 %v5094_v59, %v3285_v47 }
 0xd20   : > { %v3287_v36 = vmul.f32 %v3286_v43, %v3286_v43 }
 0xd22   : > { %v3288_v46 = vsel %vm1312_vm0, %v3287_v36, 0.0 }
 0xd23   : > { %3289 = vadd.xlane.f32.xlu1 %v3288_v46 }
 0xdac   : > { %v3290_v49 = vpop.xlane.xlu1 %3289 }
 0xdad   : > { %v3291_v51 = vmul.f32 0.03125, %v3290_v49 }
 0xdaf   : > { %v3292_v22 = vadd.f32 1e-05, %v3291_v51 }
 0xdb1   : > { %4160 = vrsqrt.f32 %v3292_v22 }
 0xdbe   : > { %v4161_v20 = vpop.eup %4160 }
 0xdbf   : > { %v3294_v61 = vmul.f32 %v4161_v20, %v3286_v43 }
 0xdc1   : > { %v3301_v1 = vmul.f32 %v3726_v52, %v3294_v61 }
 0xdc3   : > { %v3308_v54 = vadd.f32 %v3727_v39, %v3301_v1 }
 0xdc5   : > { %v3313_v31 = vpack.c.bf16 %v3308_v54, %v3308_v54 }
 0xdc7   : > { %3911 = vmatmul.mubr.msk.bf16.vlgmr.msra.gmra.mxu1 %vm1312_vm0, %v3313_v31 }
 0xe87   : > { %v3370_v27 = vpop.f32.mrf.mxu1 }
 0xe88   : > { %v3371_v45 = vadd.f32 %v3728_v29, %v3370_v27 }
 0xe89   : > { %v3912_v48 = vpop.f32.mrf.mxu1 }
 0xe8a   : > { %v3376_v55 = vsub.f32 0.0, %v3371_v45 }
 0xe8b   : > { %v3373_v6 = vpop.f32.mrf.mxu1 }
 0xe8c   : > { %v3377_v13 = vmul.f32 1.442695, %v3376_v55 }
 0xe8d   : > { %v3913_v60 = vpop.f32.mrf.mxu1 }
 0xe8e   : > { %4162 = vpow2.f32 %v3377_v13 }
 0xe9b   : > { %v4163_v7 = vpop.eup %4162 }
 0xe9c   : > { %v3379_v12 = vadd.f32 1.0, %v4163_v7 }
 0xe9e   : > { %4164 = vrcp.f32 %v3379_v12 }
 0xeab   : > { %v4165_v63 = vpop.eup %4164 }
 0xeac   : > { %v3382_v9 = vmul.f32 %v4165_v63, %v3371_v45 }
 0xeae   : > { %v3399_v10 = vpack.c.bf16 %v3382_v9, %v3382_v9 }
 0xeb0   : > { %3931 = vmatmul.mubr.bf16.vlgmr.msra.gmra.mxu0 %v3399_v10 }
 0xf70   : > { %v3489_v8 = vpop.f32.mrf.mxu0 }
 0xf71   : > { %v3490_v57 = vadd.f32 %v3732_v50, %v3489_v8 }
 0xf72   : > { %v3932_v19 = vpop.f32.mrf.mxu0 }
 0xf73   : > { %v3495_v21 = vmul.f32 0.5, %v3490_v57 }
 0xf74   : > { %v3492_v26 = vpop.f32.mrf.mxu0 }
 0xf75   : > { %v3496_v11 = vadd.f32 %v3495_v21, %v5094_v59 }
 0xf76   : > { %v3933_v34 = vpop.f32.mrf.mxu0 }
 0xf77   : > { %v3499_v4 = vsel %vm1312_vm0, %v3496_v11, 0.0 }
 0xf78   : > { %3500 = vadd.xlane.f32.xlu1 %v3499_v4 }
0x1001   : > { %v3501_v16 = vpop.xlane.xlu1 %3500 }
0x1002   : > { %v3502_v40 = vmul.f32 0.03125, %v3501_v16 }
0x1004   : > { %v3503_v14 = vsub.f32 %v3496_v11, %v3502_v40 }
0x1006   : > { %v3504_v17 = vmul.f32 %v3503_v14, %v3503_v14 }
0x1008   : > { %v3505_v15 = vsel %vm1312_vm0, %v3504_v17, 0.0 }
0x1009   : > { %3506 = vadd.xlane.f32.xlu1 %v3505_v15 }
0x1092   : > { %v3507_v18 = vpop.xlane.xlu1 %3506 }
0x1093   : > { %v3508_v5 = vmul.f32 0.03125, %v3507_v18 }
0x1095   : > { %v3509_v44 = vadd.f32 1e-05, %v3508_v5 }
0x1097   : > { %4166 = vrsqrt.f32 %v3509_v44 }
0x10a4   : > { %v4167_v30 = vpop.eup %4166 }
0x10a5   : > { %v3511_v32 = vmul.f32 %v4167_v30, %v3503_v14 }
0x10a7   : > { %v3518_v38 = vmul.f32 %v3741_v33, %v3511_v32 }
0x10a9   : > { %v3525_v59 = vadd.f32 %v3742_v37, %v3518_v38 }
0x10ab   : > { %3526 = vst.msk [vmem:[%s1298_s3] sm:$0xff] %vm1312_vm0, %v3525_v59 }
0x10ac   : > { %4207 = shalt.err (!%p4204_p2)
}
0x10ad   : > { %s4208_s0 = scalar_lea.hbm %s3539_s7, 128  ;;  %s4212_s3 = scalar_lea.hbm %s4535_s20, 256 }
0x10ae   : > { %p4209_p3 = scmp.ne.s32.totalorder %s3539_s7, %s4208_s0  ;;  %p4213_p8 = scmp.lt.s32.totalorder %s3539_s7, %s4535_s20 }
0x10af   : > { %p4214_p11 = scmp.lt.s32.totalorder %s4212_s3, %s4208_s0 }
0x10b0   : > { %p4210_p4 = pnand %p4209_p3, %p4575_p5 }
0x10b1   : > { %p4215_p9 = por %p4214_p11, %p4213_p8 }
0x10b2   : > { %p4211_p7 = pneg %p4210_p4 }
0x10b4   : > { %p4216_p10 = pnand %p4215_p9, %p4211_p7 }
0x10b6   : > { %4219 = shalt.err (!%p4216_p10)
}
0x10b7   : > { %3938 = dma.vmem_to_hbm [thread:$0]  (%p4575_p5), %s3542_s4, 128, %s3539_s7, %s3528_s8  }
0x10b8 PF: > { %p3950_p12 = scmp.ge.s32.totalorder %s4258_s28, 2  ;;  %s3553_s9 = sand.u32 1, %s4246_s22  }
0x10b9   : > { %s3554_s6 = scalar_lea.sflag [#allocation16], %s3553_s9 }
0x10ba   : > { %p3945_p13 = pnand %p3950_p12, %p4579_p6 }
0x10bc   : > { %p3946_p0 = pneg %p3945_p13 }
0x10be   : > { %4241 = dma.done.wait (%p3946_p0), %s3554_s6, 128  }
0x10bf   : > { %4243 = vsyncadd (%p3946_p0), %s3554_s6, 4294967168  ;;  %s5240_s12 = sld [smem:[#allocation53_spill]]  ;;  %p98_p1 = scmp.ge.s32.totalorder %s4562_s2, 4  }
0x10c0   : > { %s5241_s22 = smov %s4250_s23  ;;  %s5242_s23 = smov %s4254_s26 }
0x10c1   : > { %s5244_s28 = smov %s4562_s2  ;;  %100 = sbr.rel (!%p98_p1) target bundleno = 98 (0x62), region = 275 }
0x10c5   : > { %s5243_s26 = smov %s5240_s12 }
0x10c6   :  { %3559 = vsyncpa [#allocation15], 1 }
0x10c7   :  { %3561 = vsyncpa [#allocation15 + $0x1], 1 }
0x10c8   :  { %3562 = vsyncpa [#allocation16], 1 }
0x10c9   :  { %3564 = vsyncpa [#allocation16 + $0x1], 1 }

</bundles_post_ra>
